<compile_context>
chip_gen: v7x
topology: tpu7x:2x2x1
jax: 0.10.0
libtpu: 0.0.40
codegen_flags: <defaults>
</compile_context>

<pallas_src>
import functools
import math

import jax
import jax.numpy as jnp
import numpy as np
from jax.experimental import pallas as pl
from jax.experimental.pallas import tpu as pltpu


def _round_up(x, m):
    return (x + m - 1) // m * m


def _layout(H, W):
    """Flat padded-row layout constants (row stride S, multiple of 8)."""
    S = _round_up(W + 2, 8)                       # padded row stride (>= W+2)
    L = H * S                                     # flat conv-output length per image
    Hp = H + 2
    PADL1 = _round_up(max(Hp * S, 2 * S + 2 + L), 128)   # padded input buffer length
    F2 = (-(S + 1)) % 128                         # front pad so interior starts 128-aligned
    INT_LO = F2 + S + 1                           # hidden interior start (multiple of 128)
    INT_HI = INT_LO + L
    PADL2 = _round_up(F2 + 2 * S + 2 + L, 128)    # padded hidden buffer length
    return S, L, PADL1, F2, INT_LO, INT_HI, PADL2


# ----------------------------------------------------------------------------
# Fused FRUnit kernel (Nb batch elements per grid step)
# ----------------------------------------------------------------------------
def make_fr_kernel(C, H, W, Nb, mu):
    S, L, PADL1, F2, INT_LO, INT_HI, PADL2 = _layout(H, W)
    C2 = 2 * C
    OFF_ID = S + 1                                # flat offset of pixel (0,0) in padded x
    TAPS = [ky * S + kx for ky in range(3) for kx in range(3)]

    def kernel(x_ref, mask_ref, w1_ref, w2i_ref, w2v_ref, s1_ref, b1_ref,
               s2_ref, b2_ref, inv_out, var_out, mix_out,
               xbf_ref, imcol_ref, hpad_ref):
        # ---- cast padded input once to bf16 (taps below slice this ref) ----------
        for b in range(Nb):
            xbf_ref[b] = x_ref[b].astype(jnp.bfloat16)

        # ---- conv1: im2col (lane-aligned stores) + ONE large-K dot ---------------
        for b in range(Nb):
            for k, off in enumerate(TAPS):
                imcol_ref[k * C:(k + 1) * C, b * L:(b + 1) * L] = \
                    xbf_ref[b, :, off:off + L]
        h = jnp.dot(w1_ref[...], imcol_ref[...],
                    preferred_element_type=jnp.float32)            # (2C, Nb*L) f32
        h = jnp.maximum(h * s1_ref[...] + b1_ref[...], 0.0) * mask_ref[...]

        # ---- re-pad hidden activation; interior store is lane-aligned ------------
        # (halo is only 2 x 128 lanes; re-zeroed every step for megacore safety)
        hpad_ref[:, :, :INT_LO] = jnp.zeros((Nb, C2, INT_LO), jnp.bfloat16)
        hpad_ref[:, :, INT_HI:] = jnp.zeros((Nb, C2, PADL2 - INT_HI), jnp.bfloat16)
        hb = h.astype(jnp.bfloat16)
        for b in range(Nb):
            hpad_ref[b, :, INT_LO:INT_HI] = hb[:, b * L:(b + 1) * L]

        # ---- conv2 + BN + residual + ReLU + L2-normalize, one branch at a time ---
        def run_branch(br, w2_ref, out_ref, coef, accumulate_mix):
            for b in range(Nb):
                for k, off in enumerate(TAPS):
                    imcol_ref[k * C:(k + 1) * C, b * L:(b + 1) * L] = \
                        hpad_ref[b, br * C:(br + 1) * C, F2 + off:F2 + off + L]
            y = jnp.dot(w2_ref[...], imcol_ref[...],
                        preferred_element_type=jnp.float32)        # (C, Nb*L) f32
            y = y * s2_ref[br * C:(br + 1) * C] + b2_ref[br * C:(br + 1) * C]
            for b in range(Nb):
                identity = x_ref[b, :, OFF_ID:OFF_ID + L]          # (C, L) f32
                t = jnp.maximum(y[:, b * L:(b + 1) * L] + identity, 0.0)
                ss = jnp.sum(t * t, axis=0, keepdims=True)         # (1, L)
                tn = t * jax.lax.rsqrt(jnp.maximum(ss, 1e-24))     # t / max(||t||, 1e-12)
                out_ref[b] = tn.astype(out_ref.dtype)
                if accumulate_mix:
                    mix_out[b] = mix_out[b] + (coef * tn).astype(mix_out.dtype)
                else:
                    mix_out[b] = (coef * tn).astype(mix_out.dtype)

        run_branch(0, w2i_ref, inv_out, 1.0 - mu, False)   # inv branch, seeds mix
        run_branch(1, w2v_ref, var_out, mu, True)          # var branch, finishes mix

    return kernel


# ----------------------------------------------------------------------------
# FRUnit forward (manual reweighting, normalize=True), NCHW in / NCHW out
# ----------------------------------------------------------------------------
@functools.partial(jax.jit, static_argnames=("mu", "batch_block"))
def fr_unit_forward(feat_nchw, params, mu=0.5, batch_block=2):
    N, C, H, W = feat_nchw.shape
    S, L, PADL1, F2, INT_LO, INT_HI, PADL2 = _layout(H, W)
    Hp = H + 2
    Nb = max(1, math.gcd(batch_block, N))          # images per grid step
    grid = N // Nb

    # zero-pad into the flat row-stride-S layout (1 left col, S-1-W right cols)
    x = feat_nchw.astype(jnp.float32)
    xp = jnp.pad(x, ((0, 0), (0, 0), (1, 1), (1, S - 1 - W)))      # (N, C, Hp, S)
    xflat = jnp.pad(xp.reshape(N, C, Hp * S),
                    ((0, 0), (0, 0), (0, PADL1 - Hp * S)))

    # lane mask: 1.0 where the S-strided column is a real pixel (w < W)
    mask1 = (jnp.arange(L, dtype=jnp.int32) % S < W).astype(jnp.float32)
    mask = jnp.tile(mask1, (Nb,)).reshape(1, Nb * L)

    kernel = make_fr_kernel(C, H, W, Nb, float(mu))
    bmap = lambda i: (i, 0, 0)
    cmap = lambda i: (0, 0)
    out_sd = jax.ShapeDtypeStruct((N, C, L), jnp.float32)
    out_spec = pl.BlockSpec((Nb, C, L), bmap)

    inv_f, var_f, mix_f = pl.pallas_call(
        kernel,
        out_shape=(out_sd, out_sd, out_sd),
        grid=(grid,),
        in_specs=[
            pl.BlockSpec((Nb, C, PADL1), bmap),        # padded input (Nb images/step)
            pl.BlockSpec((1, Nb * L), cmap),           # column mask
            pl.BlockSpec((2 * C, 9 * C), cmap),        # conv1 weights (inv;var rows)
            pl.BlockSpec((C, 9 * C), cmap),            # conv2 weights, inv branch
            pl.BlockSpec((C, 9 * C), cmap),            # conv2 weights, var branch
            pl.BlockSpec((2 * C, 1), cmap),            # bn1 scale
            pl.BlockSpec((2 * C, 1), cmap),            # bn1 bias
            pl.BlockSpec((2 * C, 1), cmap),            # bn2 scale
            pl.BlockSpec((2 * C, 1), cmap),            # bn2 bias
        ],
        out_specs=(out_spec, out_spec, out_spec),
        scratch_shapes=[
            pltpu.VMEM((Nb, C, PADL1), jnp.bfloat16),      # bf16 copy of padded input
            pltpu.VMEM((9 * C, Nb * L), jnp.bfloat16),     # shared im2col buffer
            pltpu.VMEM((Nb, 2 * C, PADL2), jnp.bfloat16),  # padded hidden (both branches)
        ],
        compiler_params=pltpu.CompilerParams(dimension_semantics=("parallel",)),
    )(xflat, mask, params["w1"], params["w2i"], params["w2v"],
      params["s1"], params["b1"], params["s2"], params["b2"])

    def unflat(t):                                     # (N, C, H*S) -> (N, C, H, W)
        return t.reshape(N, C, H, S)[:, :, :, :W]

    return unflat(inv_f), unflat(var_f), unflat(mix_f)


# ----------------------------------------------------------------------------
# Deterministic parameter init (synthetic, no checkpoint)
# ----------------------------------------------------------------------------
def init_fr_params(key, C):
    k1i, k1v, k2i, k2v = jax.random.split(key, 4)
    fan_in = 9 * C
    bound = float(fan_in) ** -0.5

    def conv_w(k, co):
        # tap-major (9, co, C) -> (co, 9*C); column order = tap*C + cin, matching
        # the kernel's im2col row order.
        w = jax.random.uniform(k, (9, co, C), jnp.float32, -bound, bound)
        return jnp.transpose(w, (1, 0, 2)).reshape(co, 9 * C)

    w1 = jnp.concatenate([conv_w(k1i, C), conv_w(k1v, C)], axis=0)   # (2C, 9C)
    w2i = conv_w(k2i, C)
    w2v = conv_w(k2v, C)

    # Folded inference BatchNorm with fresh-init stats: gamma=1, beta=0, mean=0, var=1.
    eps = 1e-5
    gamma = jnp.ones((2 * C, 1), jnp.float32)
    beta = jnp.zeros((2 * C, 1), jnp.float32)
    rmean = jnp.zeros((2 * C, 1), jnp.float32)
    rvar = jnp.ones((2 * C, 1), jnp.float32)
    scale = gamma / jnp.sqrt(rvar + eps)
    bias = beta - rmean * scale
    return {"w1": w1.astype(jnp.bfloat16),
            "w2i": w2i.astype(jnp.bfloat16),
            "w2v": w2v.astype(jnp.bfloat16),
            "s1": scale, "b1": bias, "s2": scale, "b2": bias}


# ----------------------------------------------------------------------------
# Pure-JAX/XLA reference (f32 convs, same bf16-rounded weights) for validation
# ----------------------------------------------------------------------------
def _ref_forward(feat, params, mu):
    C = feat.shape[1]

    def to_oihw(w):                    # (Cout, 9*Cin), cols = tap*Cin + cin -> OIHW
        co = w.shape[0]
        return jnp.transpose(w.astype(jnp.float32).reshape(co, 3, 3, C), (0, 3, 1, 2))

    def conv(x, w):
        return jax.lax.conv_general_dilated(
            x, to_oihw(w), (1, 1), "SAME",
            dimension_numbers=("NCHW", "OIHW", "NCHW"))

    def bn(v, lo):
        return v[lo:lo + C].astype(jnp.float32).reshape(1, C, 1, 1)

    outs = {}
    for name, lo, w2 in (("inv", 0, params["w2i"]), ("var", C, params["w2v"])):
        w1 = params["w1"][lo:lo + C]
        h = jnp.maximum(conv(feat, w1) * bn(params["s1"], lo) + bn(params["b1"], lo), 0.0)
        y = conv(h, w2) * bn(params["s2"], lo) + bn(params["b2"], lo) + feat
        outs[name] = jnp.maximum(y, 0.0)

    def l2n(t):
        n = jnp.sqrt(jnp.sum(t * t, axis=1, keepdims=True))
        return t / jnp.maximum(n, 1e-12)

    inv_n, var_n = l2n(outs["inv"]), l2n(outs["var"])
    return inv_n, var_n, mu * var_n + (1.0 - mu) * inv_n


if __name__ == "__main__":
    key = jax.random.PRNGKey(0)
    k_feat, k_par = jax.random.split(key)

    N, C, H, W = 4, 32, 16, 16                     # channels=32 (FRUnit default)
    feat = jax.random.normal(k_feat, (N, C, H, W), jnp.float32)   # NCHW like PyTorch
    params = init_fr_params(k_par, C)

    inv_f, var_f, mix_f = fr_unit_forward(feat, params, mu=0.5, batch_block=2)
    jax.block_until_ready((inv_f, var_f, mix_f))

    assert inv_f.shape == (N, C, H, W)
    assert var_f.shape == (N, C, H, W)
    assert mix_f.shape == (N, C, H, W)

    # correctness vs a pure-XLA f32 reference (loose tol: bf16 MXU operands in-kernel)
    ref_inv, ref_var, ref_mix = _ref_forward(feat, params, 0.5)
    for got, ref in ((inv_f, ref_inv), (var_f, ref_var), (mix_f, ref_mix)):
        np.testing.assert_allclose(np.asarray(got), np.asarray(ref),
                                   atol=2e-2, rtol=2e-2)

    print("KERNEL_OK")
</pallas_src>

<mosaic_0001>
module attributes {stable_mosaic.version = 11 : i64} {
  func.func @kernel(%arg0: i32, %arg1: memref<2x32x512xf32, #tpu.memory_space<vmem>>, %arg2: memref<1x768xf32, #tpu.memory_space<vmem>>, %arg3: memref<64x288xbf16, #tpu.memory_space<vmem>>, %arg4: memref<32x288xbf16, #tpu.memory_space<vmem>>, %arg5: memref<32x288xbf16, #tpu.memory_space<vmem>>, %arg6: memref<64x1xf32, #tpu.memory_space<vmem>>, %arg7: memref<64x1xf32, #tpu.memory_space<vmem>>, %arg8: memref<64x1xf32, #tpu.memory_space<vmem>>, %arg9: memref<64x1xf32, #tpu.memory_space<vmem>>, %arg10: memref<2x32x384xf32, #tpu.memory_space<vmem>>, %arg11: memref<2x32x384xf32, #tpu.memory_space<vmem>>, %arg12: memref<2x32x384xf32, #tpu.memory_space<vmem>>, %arg13: memref<2x32x512xbf16, #tpu.memory_space<vmem>>, %arg14: memref<288x768xbf16, #tpu.memory_space<vmem>>, %arg15: memref<2x64x640xbf16, #tpu.memory_space<vmem>>) attributes {dimension_semantics = [#tpu.dimension_semantics<parallel>], iteration_bounds = array<i64: 2>, scalar_prefetch = 0 : i64, scratch_operands = 3 : i64, tpu.core_type = #tpu.core_type<tc>, window_params = [{transform_indices = @transform_0, window_bounds = array<i64: 2, 32, 512>}, {pipeline_mode = #tpu.pipeline_mode<synchronous>, transform_indices = @transform_1, window_bounds = array<i64: 1, 768>}, {pipeline_mode = #tpu.pipeline_mode<synchronous>, transform_indices = @transform_2, window_bounds = array<i64: 64, 288>}, {pipeline_mode = #tpu.pipeline_mode<synchronous>, transform_indices = @transform_3, window_bounds = array<i64: 32, 288>}, {pipeline_mode = #tpu.pipeline_mode<synchronous>, transform_indices = @transform_4, window_bounds = array<i64: 32, 288>}, {pipeline_mode = #tpu.pipeline_mode<synchronous>, transform_indices = @transform_5, window_bounds = array<i64: 64, 1>}, {pipeline_mode = #tpu.pipeline_mode<synchronous>, transform_indices = @transform_6, window_bounds = array<i64: 64, 1>}, {pipeline_mode = #tpu.pipeline_mode<synchronous>, transform_indices = @transform_7, window_bounds = array<i64: 64, 1>}, {pipeline_mode = #tpu.pipeline_mode<synchronous>, transform_indices = @transform_8, window_bounds = array<i64: 64, 1>}, {transform_indices = @transform_9, window_bounds = array<i64: 2, 32, 384>}, {transform_indices = @transform_10, window_bounds = array<i64: 2, 32, 384>}, {transform_indices = @transform_11, window_bounds = array<i64: 2, 32, 384>}]} {
    %c0 = arith.constant 0 : index
    %c0_0 = arith.constant 0 : index
    %c0_1 = arith.constant 0 : index
    %0 = vector.load %arg1[%c0, %c0_0, %c0_1] : memref<2x32x512xf32, #tpu.memory_space<vmem>>, vector<1x32x512xf32>
    %1 = vector.shape_cast %0 : vector<1x32x512xf32> to vector<32x512xf32>
    %2 = arith.truncf %1 : vector<32x512xf32> to vector<32x512xbf16>
    %c0_2 = arith.constant 0 : index
    %c0_3 = arith.constant 0 : index
    %c0_4 = arith.constant 0 : index
    %3 = vector.load %arg13[%c0_2, %c0_3, %c0_4] : memref<2x32x512xbf16, #tpu.memory_space<vmem>>, vector<1x32x512xbf16>
    %4 = vector.shape_cast %3 : vector<1x32x512xbf16> to vector<32x512xbf16>
    %5 = vector.shape_cast %2 : vector<32x512xbf16> to vector<1x32x512xbf16>
    tpu.vector_store %arg13[%c0_2, %c0_3, %c0_4], %5 {strides = array<i32>} : memref<2x32x512xbf16, #tpu.memory_space<vmem>>, vector<1x32x512xbf16>,
    %c1 = arith.constant 1 : index
    %c0_5 = arith.constant 0 : index
    %c0_6 = arith.constant 0 : index
    %6 = vector.load %arg1[%c1, %c0_5, %c0_6] : memref<2x32x512xf32, #tpu.memory_space<vmem>>, vector<1x32x512xf32>
    %7 = vector.shape_cast %6 : vector<1x32x512xf32> to vector<32x512xf32>
    %8 = arith.truncf %7 : vector<32x512xf32> to vector<32x512xbf16>
    %c1_7 = arith.constant 1 : index
    %c0_8 = arith.constant 0 : index
    %c0_9 = arith.constant 0 : index
    %9 = vector.load %arg13[%c1_7, %c0_8, %c0_9] : memref<2x32x512xbf16, #tpu.memory_space<vmem>>, vector<1x32x512xbf16>
    %10 = vector.shape_cast %9 : vector<1x32x512xbf16> to vector<32x512xbf16>
    %11 = vector.shape_cast %8 : vector<32x512xbf16> to vector<1x32x512xbf16>
    tpu.vector_store %arg13[%c1_7, %c0_8, %c0_9], %11 {strides = array<i32>} : memref<2x32x512xbf16, #tpu.memory_space<vmem>>, vector<1x32x512xbf16>,
    %c0_10 = arith.constant 0 : index
    %c0_11 = arith.constant 0 : index
    %c0_12 = arith.constant 0 : index
    %12 = vector.load %arg13[%c0_10, %c0_11, %c0_12] : memref<2x32x512xbf16, #tpu.memory_space<vmem>>, vector<1x32x384xbf16>
    %13 = vector.shape_cast %12 : vector<1x32x384xbf16> to vector<32x384xbf16>
    %c0_13 = arith.constant 0 : index
    %c0_14 = arith.constant 0 : index
    %14 = vector.load %arg14[%c0_13, %c0_14] : memref<288x768xbf16, #tpu.memory_space<vmem>>, vector<32x384xbf16>
    tpu.vector_store %arg14[%c0_13, %c0_14], %13 {strides = array<i32>} : memref<288x768xbf16, #tpu.memory_space<vmem>>, vector<32x384xbf16>,
    %c0_15 = arith.constant 0 : index
    %c0_16 = arith.constant 0 : index
    %c1_17 = arith.constant 1 : index
    %15 = vector.load %arg13[%c0_15, %c0_16, %c1_17] : memref<2x32x512xbf16, #tpu.memory_space<vmem>>, vector<1x32x384xbf16>
    %16 = vector.shape_cast %15 : vector<1x32x384xbf16> to vector<32x384xbf16>
    %c32 = arith.constant 32 : index
    %c0_18 = arith.constant 0 : index
    %17 = vector.load %arg14[%c32, %c0_18] : memref<288x768xbf16, #tpu.memory_space<vmem>>, vector<32x384xbf16>
    tpu.vector_store %arg14[%c32, %c0_18], %16 {strides = array<i32>} : memref<288x768xbf16, #tpu.memory_space<vmem>>, vector<32x384xbf16>,
    %c0_19 = arith.constant 0 : index
    %c0_20 = arith.constant 0 : index
    %c2 = arith.constant 2 : index
    %18 = vector.load %arg13[%c0_19, %c0_20, %c2] : memref<2x32x512xbf16, #tpu.memory_space<vmem>>, vector<1x32x384xbf16>
    %19 = vector.shape_cast %18 : vector<1x32x384xbf16> to vector<32x384xbf16>
    %c64 = arith.constant 64 : index
    %c0_21 = arith.constant 0 : index
    %20 = vector.load %arg14[%c64, %c0_21] : memref<288x768xbf16, #tpu.memory_space<vmem>>, vector<32x384xbf16>
    tpu.vector_store %arg14[%c64, %c0_21], %19 {strides = array<i32>} : memref<288x768xbf16, #tpu.memory_space<vmem>>, vector<32x384xbf16>,
    %c0_22 = arith.constant 0 : index
    %c0_23 = arith.constant 0 : index
    %c24 = arith.constant 24 : index
    %21 = vector.load %arg13[%c0_22, %c0_23, %c24] : memref<2x32x512xbf16, #tpu.memory_space<vmem>>, vector<1x32x384xbf16>
    %22 = vector.shape_cast %21 : vector<1x32x384xbf16> to vector<32x384xbf16>
    %c96 = arith.constant 96 : index
    %c0_24 = arith.constant 0 : index
    %23 = vector.load %arg14[%c96, %c0_24] : memref<288x768xbf16, #tpu.memory_space<vmem>>, vector<32x384xbf16>
    tpu.vector_store %arg14[%c96, %c0_24], %22 {strides = array<i32>} : memref<288x768xbf16, #tpu.memory_space<vmem>>, vector<32x384xbf16>,
    %c0_25 = arith.constant 0 : index
    %c0_26 = arith.constant 0 : index
    %c25 = arith.constant 25 : index
    %24 = vector.load %arg13[%c0_25, %c0_26, %c25] : memref<2x32x512xbf16, #tpu.memory_space<vmem>>, vector<1x32x384xbf16>
    %25 = vector.shape_cast %24 : vector<1x32x384xbf16> to vector<32x384xbf16>
    %c128 = arith.constant 128 : index
    %c0_27 = arith.constant 0 : index
    %26 = vector.load %arg14[%c128, %c0_27] : memref<288x768xbf16, #tpu.memory_space<vmem>>, vector<32x384xbf16>
    tpu.vector_store %arg14[%c128, %c0_27], %25 {strides = array<i32>} : memref<288x768xbf16, #tpu.memory_space<vmem>>, vector<32x384xbf16>,
    %c0_28 = arith.constant 0 : index
    %c0_29 = arith.constant 0 : index
    %c26 = arith.constant 26 : index
    %27 = vector.load %arg13[%c0_28, %c0_29, %c26] : memref<2x32x512xbf16, #tpu.memory_space<vmem>>, vector<1x32x384xbf16>
    %28 = vector.shape_cast %27 : vector<1x32x384xbf16> to vector<32x384xbf16>
    %c160 = arith.constant 160 : index
    %c0_30 = arith.constant 0 : index
    %29 = vector.load %arg14[%c160, %c0_30] : memref<288x768xbf16, #tpu.memory_space<vmem>>, vector<32x384xbf16>
    tpu.vector_store %arg14[%c160, %c0_30], %28 {strides = array<i32>} : memref<288x768xbf16, #tpu.memory_space<vmem>>, vector<32x384xbf16>,
    %c0_31 = arith.constant 0 : index
    %c0_32 = arith.constant 0 : index
    %c48 = arith.constant 48 : index
    %30 = vector.load %arg13[%c0_31, %c0_32, %c48] : memref<2x32x512xbf16, #tpu.memory_space<vmem>>, vector<1x32x384xbf16>
    %31 = vector.shape_cast %30 : vector<1x32x384xbf16> to vector<32x384xbf16>
    %c192 = arith.constant 192 : index
    %c0_33 = arith.constant 0 : index
    %32 = vector.load %arg14[%c192, %c0_33] : memref<288x768xbf16, #tpu.memory_space<vmem>>, vector<32x384xbf16>
    tpu.vector_store %arg14[%c192, %c0_33], %31 {strides = array<i32>} : memref<288x768xbf16, #tpu.memory_space<vmem>>, vector<32x384xbf16>,
    %c0_34 = arith.constant 0 : index
    %c0_35 = arith.constant 0 : index
    %c49 = arith.constant 49 : index
    %33 = vector.load %arg13[%c0_34, %c0_35, %c49] : memref<2x32x512xbf16, #tpu.memory_space<vmem>>, vector<1x32x384xbf16>
    %34 = vector.shape_cast %33 : vector<1x32x384xbf16> to vector<32x384xbf16>
    %c224 = arith.constant 224 : index
    %c0_36 = arith.constant 0 : index
    %35 = vector.load %arg14[%c224, %c0_36] : memref<288x768xbf16, #tpu.memory_space<vmem>>, vector<32x384xbf16>
    tpu.vector_store %arg14[%c224, %c0_36], %34 {strides = array<i32>} : memref<288x768xbf16, #tpu.memory_space<vmem>>, vector<32x384xbf16>,
    %c0_37 = arith.constant 0 : index
    %c0_38 = arith.constant 0 : index
    %c50 = arith.constant 50 : index
    %36 = vector.load %arg13[%c0_37, %c0_38, %c50] : memref<2x32x512xbf16, #tpu.memory_space<vmem>>, vector<1x32x384xbf16>
    %37 = vector.shape_cast %36 : vector<1x32x384xbf16> to vector<32x384xbf16>
    %c256 = arith.constant 256 : index
    %c0_39 = arith.constant 0 : index
    %38 = vector.load %arg14[%c256, %c0_39] : memref<288x768xbf16, #tpu.memory_space<vmem>>, vector<32x384xbf16>
    tpu.vector_store %arg14[%c256, %c0_39], %37 {strides = array<i32>} : memref<288x768xbf16, #tpu.memory_space<vmem>>, vector<32x384xbf16>,
    %c1_40 = arith.constant 1 : index
    %c0_41 = arith.constant 0 : index
    %c0_42 = arith.constant 0 : index
    %39 = vector.load %arg13[%c1_40, %c0_41, %c0_42] : memref<2x32x512xbf16, #tpu.memory_space<vmem>>, vector<1x32x384xbf16>
    %40 = vector.shape_cast %39 : vector<1x32x384xbf16> to vector<32x384xbf16>
    %c0_43 = arith.constant 0 : index
    %c384 = arith.constant 384 : index
    %41 = vector.load %arg14[%c0_43, %c384] : memref<288x768xbf16, #tpu.memory_space<vmem>>, vector<32x384xbf16>
    tpu.vector_store %arg14[%c0_43, %c384], %40 {strides = array<i32>} : memref<288x768xbf16, #tpu.memory_space<vmem>>, vector<32x384xbf16>,
    %c1_44 = arith.constant 1 : index
    %c0_45 = arith.constant 0 : index
    %c1_46 = arith.constant 1 : index
    %42 = vector.load %arg13[%c1_44, %c0_45, %c1_46] : memref<2x32x512xbf16, #tpu.memory_space<vmem>>, vector<1x32x384xbf16>
    %43 = vector.shape_cast %42 : vector<1x32x384xbf16> to vector<32x384xbf16>
    %c32_47 = arith.constant 32 : index
    %c384_48 = arith.constant 384 : index
    %44 = vector.load %arg14[%c32_47, %c384_48] : memref<288x768xbf16, #tpu.memory_space<vmem>>, vector<32x384xbf16>
    tpu.vector_store %arg14[%c32_47, %c384_48], %43 {strides = array<i32>} : memref<288x768xbf16, #tpu.memory_space<vmem>>, vector<32x384xbf16>,
    %c1_49 = arith.constant 1 : index
    %c0_50 = arith.constant 0 : index
    %c2_51 = arith.constant 2 : index
    %45 = vector.load %arg13[%c1_49, %c0_50, %c2_51] : memref<2x32x512xbf16, #tpu.memory_space<vmem>>, vector<1x32x384xbf16>
    %46 = vector.shape_cast %45 : vector<1x32x384xbf16> to vector<32x384xbf16>
    %c64_52 = arith.constant 64 : index
    %c384_53 = arith.constant 384 : index
    %47 = vector.load %arg14[%c64_52, %c384_53] : memref<288x768xbf16, #tpu.memory_space<vmem>>, vector<32x384xbf16>
    tpu.vector_store %arg14[%c64_52, %c384_53], %46 {strides = array<i32>} : memref<288x768xbf16, #tpu.memory_space<vmem>>, vector<32x384xbf16>,
    %c1_54 = arith.constant 1 : index
    %c0_55 = arith.constant 0 : index
    %c24_56 = arith.constant 24 : index
    %48 = vector.load %arg13[%c1_54, %c0_55, %c24_56] : memref<2x32x512xbf16, #tpu.memory_space<vmem>>, vector<1x32x384xbf16>
    %49 = vector.shape_cast %48 : vector<1x32x384xbf16> to vector<32x384xbf16>
    %c96_57 = arith.constant 96 : index
    %c384_58 = arith.constant 384 : index
    %50 = vector.load %arg14[%c96_57, %c384_58] : memref<288x768xbf16, #tpu.memory_space<vmem>>, vector<32x384xbf16>
    tpu.vector_store %arg14[%c96_57, %c384_58], %49 {strides = array<i32>} : memref<288x768xbf16, #tpu.memory_space<vmem>>, vector<32x384xbf16>,
    %c1_59 = arith.constant 1 : index
    %c0_60 = arith.constant 0 : index
    %c25_61 = arith.constant 25 : index
    %51 = vector.load %arg13[%c1_59, %c0_60, %c25_61] : memref<2x32x512xbf16, #tpu.memory_space<vmem>>, vector<1x32x384xbf16>
    %52 = vector.shape_cast %51 : vector<1x32x384xbf16> to vector<32x384xbf16>
    %c128_62 = arith.constant 128 : index
    %c384_63 = arith.constant 384 : index
    %53 = vector.load %arg14[%c128_62, %c384_63] : memref<288x768xbf16, #tpu.memory_space<vmem>>, vector<32x384xbf16>
    tpu.vector_store %arg14[%c128_62, %c384_63], %52 {strides = array<i32>} : memref<288x768xbf16, #tpu.memory_space<vmem>>, vector<32x384xbf16>,
    %c1_64 = arith.constant 1 : index
    %c0_65 = arith.constant 0 : index
    %c26_66 = arith.constant 26 : index
    %54 = vector.load %arg13[%c1_64, %c0_65, %c26_66] : memref<2x32x512xbf16, #tpu.memory_space<vmem>>, vector<1x32x384xbf16>
    %55 = vector.shape_cast %54 : vector<1x32x384xbf16> to vector<32x384xbf16>
    %c160_67 = arith.constant 160 : index
    %c384_68 = arith.constant 384 : index
    %56 = vector.load %arg14[%c160_67, %c384_68] : memref<288x768xbf16, #tpu.memory_space<vmem>>, vector<32x384xbf16>
    tpu.vector_store %arg14[%c160_67, %c384_68], %55 {strides = array<i32>} : memref<288x768xbf16, #tpu.memory_space<vmem>>, vector<32x384xbf16>,
    %c1_69 = arith.constant 1 : index
    %c0_70 = arith.constant 0 : index
    %c48_71 = arith.constant 48 : index
    %57 = vector.load %arg13[%c1_69, %c0_70, %c48_71] : memref<2x32x512xbf16, #tpu.memory_space<vmem>>, vector<1x32x384xbf16>
    %58 = vector.shape_cast %57 : vector<1x32x384xbf16> to vector<32x384xbf16>
    %c192_72 = arith.constant 192 : index
    %c384_73 = arith.constant 384 : index
    %59 = vector.load %arg14[%c192_72, %c384_73] : memref<288x768xbf16, #tpu.memory_space<vmem>>, vector<32x384xbf16>
    tpu.vector_store %arg14[%c192_72, %c384_73], %58 {strides = array<i32>} : memref<288x768xbf16, #tpu.memory_space<vmem>>, vector<32x384xbf16>,
    %c1_74 = arith.constant 1 : index
    %c0_75 = arith.constant 0 : index
    %c49_76 = arith.constant 49 : index
    %60 = vector.load %arg13[%c1_74, %c0_75, %c49_76] : memref<2x32x512xbf16, #tpu.memory_space<vmem>>, vector<1x32x384xbf16>
    %61 = vector.shape_cast %60 : vector<1x32x384xbf16> to vector<32x384xbf16>
    %c224_77 = arith.constant 224 : index
    %c384_78 = arith.constant 384 : index
    %62 = vector.load %arg14[%c224_77, %c384_78] : memref<288x768xbf16, #tpu.memory_space<vmem>>, vector<32x384xbf16>
    tpu.vector_store %arg14[%c224_77, %c384_78], %61 {strides = array<i32>} : memref<288x768xbf16, #tpu.memory_space<vmem>>, vector<32x384xbf16>,
    %c1_79 = arith.constant 1 : index
    %c0_80 = arith.constant 0 : index
    %c50_81 = arith.constant 50 : index
    %63 = vector.load %arg13[%c1_79, %c0_80, %c50_81] : memref<2x32x512xbf16, #tpu.memory_space<vmem>>, vector<1x32x384xbf16>
    %64 = vector.shape_cast %63 : vector<1x32x384xbf16> to vector<32x384xbf16>
    %c256_82 = arith.constant 256 : index
    %c384_83 = arith.constant 384 : index
    %65 = vector.load %arg14[%c256_82, %c384_83] : memref<288x768xbf16, #tpu.memory_space<vmem>>, vector<32x384xbf16>
    tpu.vector_store %arg14[%c256_82, %c384_83], %64 {strides = array<i32>} : memref<288x768xbf16, #tpu.memory_space<vmem>>, vector<32x384xbf16>,
    %c0_84 = arith.constant 0 : index
    %c0_85 = arith.constant 0 : index
    %66 = vector.load %arg3[%c0_84, %c0_85] : memref<64x288xbf16, #tpu.memory_space<vmem>>, vector<64x288xbf16>
    %c0_86 = arith.constant 0 : index
    %c0_87 = arith.constant 0 : index
    %67 = vector.load %arg14[%c0_86, %c0_87] : memref<288x768xbf16, #tpu.memory_space<vmem>>, vector<288x768xbf16>
    %cst = arith.constant dense<0.000000e+00> : vector<64x768xf32>
    %68 = tpu.matmul %66, %67, %cst {dimension_numbers = #tpu.dot_dimension_numbers<[1], [0], [0], [1], [0, 0, 1, 1], [], []>} : vector<64x288xbf16>, vector<288x768xbf16>, vector<64x768xf32> -> vector<64x768xf32>
    %c0_88 = arith.constant 0 : index
    %c0_89 = arith.constant 0 : index
    %69 = vector.load %arg6[%c0_88, %c0_89] : memref<64x1xf32, #tpu.memory_space<vmem>>, vector<64x1xf32>
    %70 = vector.broadcast %69 : vector<64x1xf32> to vector<64x768xf32>
    %71 = arith.mulf %68, %70 : vector<64x768xf32>
    %c0_90 = arith.constant 0 : index
    %c0_91 = arith.constant 0 : index
    %72 = vector.load %arg7[%c0_90, %c0_91] : memref<64x1xf32, #tpu.memory_space<vmem>>, vector<64x1xf32>
    %73 = vector.broadcast %72 : vector<64x1xf32> to vector<64x768xf32>
    %74 = arith.addf %71, %73 : vector<64x768xf32>
    %cst_92 = arith.constant 0.000000e+00 : f32
    %75 = vector.broadcast %cst_92 : f32 to vector<64x768xf32>
    %76 = arith.maximumf %74, %75 : vector<64x768xf32>
    %c0_93 = arith.constant 0 : index
    %c0_94 = arith.constant 0 : index
    %77 = vector.load %arg2[%c0_93, %c0_94] : memref<1x768xf32, #tpu.memory_space<vmem>>, vector<1x768xf32>
    %78 = vector.broadcast %77 : vector<1x768xf32> to vector<64x768xf32>
    %79 = arith.mulf %76, %78 : vector<64x768xf32>
    %cst_95 = arith.constant 0.000000e+00 : bf16
    %80 = vector.broadcast %cst_95 : bf16 to vector<2x64x128xbf16>
    %c0_96 = arith.constant 0 : index
    %c0_97 = arith.constant 0 : index
    %c0_98 = arith.constant 0 : index
    %81 = vector.load %arg15[%c0_96, %c0_97, %c0_98] : memref<2x64x640xbf16, #tpu.memory_space<vmem>>, vector<2x64x128xbf16>
    tpu.vector_store %arg15[%c0_96, %c0_97, %c0_98], %80 {strides = array<i32>} : memref<2x64x640xbf16, #tpu.memory_space<vmem>>, vector<2x64x128xbf16>,
    %cst_99 = arith.constant 0.000000e+00 : bf16
    %82 = vector.broadcast %cst_99 : bf16 to vector<2x64x128xbf16>
    %c0_100 = arith.constant 0 : index
    %c0_101 = arith.constant 0 : index
    %c512 = arith.constant 512 : index
    %83 = vector.load %arg15[%c0_100, %c0_101, %c512] : memref<2x64x640xbf16, #tpu.memory_space<vmem>>, vector<2x64x128xbf16>
    tpu.vector_store %arg15[%c0_100, %c0_101, %c512], %82 {strides = array<i32>} : memref<2x64x640xbf16, #tpu.memory_space<vmem>>, vector<2x64x128xbf16>,
    %84 = arith.truncf %79 : vector<64x768xf32> to vector<64x768xbf16>
    %85 = vector.extract_strided_slice %84 {offsets = [0, 0], sizes = [64, 384], strides = [1, 1]} : vector<64x768xbf16> to vector<64x384xbf16>
    %c0_102 = arith.constant 0 : index
    %c0_103 = arith.constant 0 : index
    %c128_104 = arith.constant 128 : index
    %86 = vector.load %arg15[%c0_102, %c0_103, %c128_104] : memref<2x64x640xbf16, #tpu.memory_space<vmem>>, vector<1x64x384xbf16>
    %87 = vector.shape_cast %86 : vector<1x64x384xbf16> to vector<64x384xbf16>
    %88 = vector.shape_cast %85 : vector<64x384xbf16> to vector<1x64x384xbf16>
    tpu.vector_store %arg15[%c0_102, %c0_103, %c128_104], %88 {strides = array<i32>} : memref<2x64x640xbf16, #tpu.memory_space<vmem>>, vector<1x64x384xbf16>,
    %89 = vector.extract_strided_slice %84 {offsets = [0, 384], sizes = [64, 384], strides = [1, 1]} : vector<64x768xbf16> to vector<64x384xbf16>
    %c1_105 = arith.constant 1 : index
    %c0_106 = arith.constant 0 : index
    %c128_107 = arith.constant 128 : index
    %90 = vector.load %arg15[%c1_105, %c0_106, %c128_107] : memref<2x64x640xbf16, #tpu.memory_space<vmem>>, vector<1x64x384xbf16>
    %91 = vector.shape_cast %90 : vector<1x64x384xbf16> to vector<64x384xbf16>
    %92 = vector.shape_cast %89 : vector<64x384xbf16> to vector<1x64x384xbf16>
    tpu.vector_store %arg15[%c1_105, %c0_106, %c128_107], %92 {strides = array<i32>} : memref<2x64x640xbf16, #tpu.memory_space<vmem>>, vector<1x64x384xbf16>,
    %c0_108 = arith.constant 0 : index
    %c0_109 = arith.constant 0 : index
    %c103 = arith.constant 103 : index
    %93 = vector.load %arg15[%c0_108, %c0_109, %c103] : memref<2x64x640xbf16, #tpu.memory_space<vmem>>, vector<1x32x384xbf16>
    %94 = vector.shape_cast %93 : vector<1x32x384xbf16> to vector<32x384xbf16>
    %c0_110 = arith.constant 0 : index
    %c0_111 = arith.constant 0 : index
    %95 = vector.load %arg14[%c0_110, %c0_111] : memref<288x768xbf16, #tpu.memory_space<vmem>>, vector<32x384xbf16>
    tpu.vector_store %arg14[%c0_110, %c0_111], %94 {strides = array<i32>} : memref<288x768xbf16, #tpu.memory_space<vmem>>, vector<32x384xbf16>,
    %c0_112 = arith.constant 0 : index
    %c0_113 = arith.constant 0 : index
    %c104 = arith.constant 104 : index
    %96 = vector.load %arg15[%c0_112, %c0_113, %c104] : memref<2x64x640xbf16, #tpu.memory_space<vmem>>, vector<1x32x384xbf16>
    %97 = vector.shape_cast %96 : vector<1x32x384xbf16> to vector<32x384xbf16>
    %c32_114 = arith.constant 32 : index
    %c0_115 = arith.constant 0 : index
    %98 = vector.load %arg14[%c32_114, %c0_115] : memref<288x768xbf16, #tpu.memory_space<vmem>>, vector<32x384xbf16>
    tpu.vector_store %arg14[%c32_114, %c0_115], %97 {strides = array<i32>} : memref<288x768xbf16, #tpu.memory_space<vmem>>, vector<32x384xbf16>,
    %c0_116 = arith.constant 0 : index
    %c0_117 = arith.constant 0 : index
    %c105 = arith.constant 105 : index
    %99 = vector.load %arg15[%c0_116, %c0_117, %c105] : memref<2x64x640xbf16, #tpu.memory_space<vmem>>, vector<1x32x384xbf16>
    %100 = vector.shape_cast %99 : vector<1x32x384xbf16> to vector<32x384xbf16>
    %c64_118 = arith.constant 64 : index
    %c0_119 = arith.constant 0 : index
    %101 = vector.load %arg14[%c64_118, %c0_119] : memref<288x768xbf16, #tpu.memory_space<vmem>>, vector<32x384xbf16>
    tpu.vector_store %arg14[%c64_118, %c0_119], %100 {strides = array<i32>} : memref<288x768xbf16, #tpu.memory_space<vmem>>, vector<32x384xbf16>,
    %c0_120 = arith.constant 0 : index
    %c0_121 = arith.constant 0 : index
    %c127 = arith.constant 127 : index
    %102 = vector.load %arg15[%c0_120, %c0_121, %c127] : memref<2x64x640xbf16, #tpu.memory_space<vmem>>, vector<1x32x384xbf16>
    %103 = vector.shape_cast %102 : vector<1x32x384xbf16> to vector<32x384xbf16>
    %c96_122 = arith.constant 96 : index
    %c0_123 = arith.constant 0 : index
    %104 = vector.load %arg14[%c96_122, %c0_123] : memref<288x768xbf16, #tpu.memory_space<vmem>>, vector<32x384xbf16>
    tpu.vector_store %arg14[%c96_122, %c0_123], %103 {strides = array<i32>} : memref<288x768xbf16, #tpu.memory_space<vmem>>, vector<32x384xbf16>,
    %c0_124 = arith.constant 0 : index
    %c0_125 = arith.constant 0 : index
    %c128_126 = arith.constant 128 : index
    %105 = vector.load %arg15[%c0_124, %c0_125, %c128_126] : memref<2x64x640xbf16, #tpu.memory_space<vmem>>, vector<1x32x384xbf16>
    %106 = vector.shape_cast %105 : vector<1x32x384xbf16> to vector<32x384xbf16>
    %c128_127 = arith.constant 128 : index
    %c0_128 = arith.constant 0 : index
    %107 = vector.load %arg14[%c128_127, %c0_128] : memref<288x768xbf16, #tpu.memory_space<vmem>>, vector<32x384xbf16>
    tpu.vector_store %arg14[%c128_127, %c0_128], %106 {strides = array<i32>} : memref<288x768xbf16, #tpu.memory_space<vmem>>, vector<32x384xbf16>,
    %c0_129 = arith.constant 0 : index
    %c0_130 = arith.constant 0 : index
    %c129 = arith.constant 129 : index
    %108 = vector.load %arg15[%c0_129, %c0_130, %c129] : memref<2x64x640xbf16, #tpu.memory_space<vmem>>, vector<1x32x384xbf16>
    %109 = vector.shape_cast %108 : vector<1x32x384xbf16> to vector<32x384xbf16>
    %c160_131 = arith.constant 160 : index
    %c0_132 = arith.constant 0 : index
    %110 = vector.load %arg14[%c160_131, %c0_132] : memref<288x768xbf16, #tpu.memory_space<vmem>>, vector<32x384xbf16>
    tpu.vector_store %arg14[%c160_131, %c0_132], %109 {strides = array<i32>} : memref<288x768xbf16, #tpu.memory_space<vmem>>, vector<32x384xbf16>,
    %c0_133 = arith.constant 0 : index
    %c0_134 = arith.constant 0 : index
    %c151 = arith.constant 151 : index
    %111 = vector.load %arg15[%c0_133, %c0_134, %c151] : memref<2x64x640xbf16, #tpu.memory_space<vmem>>, vector<1x32x384xbf16>
    %112 = vector.shape_cast %111 : vector<1x32x384xbf16> to vector<32x384xbf16>
    %c192_135 = arith.constant 192 : index
    %c0_136 = arith.constant 0 : index
    %113 = vector.load %arg14[%c192_135, %c0_136] : memref<288x768xbf16, #tpu.memory_space<vmem>>, vector<32x384xbf16>
    tpu.vector_store %arg14[%c192_135, %c0_136], %112 {strides = array<i32>} : memref<288x768xbf16, #tpu.memory_space<vmem>>, vector<32x384xbf16>,
    %c0_137 = arith.constant 0 : index
    %c0_138 = arith.constant 0 : index
    %c152 = arith.constant 152 : index
    %114 = vector.load %arg15[%c0_137, %c0_138, %c152] : memref<2x64x640xbf16, #tpu.memory_space<vmem>>, vector<1x32x384xbf16>
    %115 = vector.shape_cast %114 : vector<1x32x384xbf16> to vector<32x384xbf16>
    %c224_139 = arith.constant 224 : index
    %c0_140 = arith.constant 0 : index
    %116 = vector.load %arg14[%c224_139, %c0_140] : memref<288x768xbf16, #tpu.memory_space<vmem>>, vector<32x384xbf16>
    tpu.vector_store %arg14[%c224_139, %c0_140], %115 {strides = array<i32>} : memref<288x768xbf16, #tpu.memory_space<vmem>>, vector<32x384xbf16>,
    %c0_141 = arith.constant 0 : index
    %c0_142 = arith.constant 0 : index
    %c153 = arith.constant 153 : index
    %117 = vector.load %arg15[%c0_141, %c0_142, %c153] : memref<2x64x640xbf16, #tpu.memory_space<vmem>>, vector<1x32x384xbf16>
    %118 = vector.shape_cast %117 : vector<1x32x384xbf16> to vector<32x384xbf16>
    %c256_143 = arith.constant 256 : index
    %c0_144 = arith.constant 0 : index
    %119 = vector.load %arg14[%c256_143, %c0_144] : memref<288x768xbf16, #tpu.memory_space<vmem>>, vector<32x384xbf16>
    tpu.vector_store %arg14[%c256_143, %c0_144], %118 {strides = array<i32>} : memref<288x768xbf16, #tpu.memory_space<vmem>>, vector<32x384xbf16>,
    %c1_145 = arith.constant 1 : index
    %c0_146 = arith.constant 0 : index
    %c103_147 = arith.constant 103 : index
    %120 = vector.load %arg15[%c1_145, %c0_146, %c103_147] : memref<2x64x640xbf16, #tpu.memory_space<vmem>>, vector<1x32x384xbf16>
    %121 = vector.shape_cast %120 : vector<1x32x384xbf16> to vector<32x384xbf16>
    %c0_148 = arith.constant 0 : index
    %c384_149 = arith.constant 384 : index
    %122 = vector.load %arg14[%c0_148, %c384_149] : memref<288x768xbf16, #tpu.memory_space<vmem>>, vector<32x384xbf16>
    tpu.vector_store %arg14[%c0_148, %c384_149], %121 {strides = array<i32>} : memref<288x768xbf16, #tpu.memory_space<vmem>>, vector<32x384xbf16>,
    %c1_150 = arith.constant 1 : index
    %c0_151 = arith.constant 0 : index
    %c104_152 = arith.constant 104 : index
    %123 = vector.load %arg15[%c1_150, %c0_151, %c104_152] : memref<2x64x640xbf16, #tpu.memory_space<vmem>>, vector<1x32x384xbf16>
    %124 = vector.shape_cast %123 : vector<1x32x384xbf16> to vector<32x384xbf16>
    %c32_153 = arith.constant 32 : index
    %c384_154 = arith.constant 384 : index
    %125 = vector.load %arg14[%c32_153, %c384_154] : memref<288x768xbf16, #tpu.memory_space<vmem>>, vector<32x384xbf16>
    tpu.vector_store %arg14[%c32_153, %c384_154], %124 {strides = array<i32>} : memref<288x768xbf16, #tpu.memory_space<vmem>>, vector<32x384xbf16>,
    %c1_155 = arith.constant 1 : index
    %c0_156 = arith.constant 0 : index
    %c105_157 = arith.constant 105 : index
    %126 = vector.load %arg15[%c1_155, %c0_156, %c105_157] : memref<2x64x640xbf16, #tpu.memory_space<vmem>>, vector<1x32x384xbf16>
    %127 = vector.shape_cast %126 : vector<1x32x384xbf16> to vector<32x384xbf16>
    %c64_158 = arith.constant 64 : index
    %c384_159 = arith.constant 384 : index
    %128 = vector.load %arg14[%c64_158, %c384_159] : memref<288x768xbf16, #tpu.memory_space<vmem>>, vector<32x384xbf16>
    tpu.vector_store %arg14[%c64_158, %c384_159], %127 {strides = array<i32>} : memref<288x768xbf16, #tpu.memory_space<vmem>>, vector<32x384xbf16>,
    %c1_160 = arith.constant 1 : index
    %c0_161 = arith.constant 0 : index
    %c127_162 = arith.constant 127 : index
    %129 = vector.load %arg15[%c1_160, %c0_161, %c127_162] : memref<2x64x640xbf16, #tpu.memory_space<vmem>>, vector<1x32x384xbf16>
    %130 = vector.shape_cast %129 : vector<1x32x384xbf16> to vector<32x384xbf16>
    %c96_163 = arith.constant 96 : index
    %c384_164 = arith.constant 384 : index
    %131 = vector.load %arg14[%c96_163, %c384_164] : memref<288x768xbf16, #tpu.memory_space<vmem>>, vector<32x384xbf16>
    tpu.vector_store %arg14[%c96_163, %c384_164], %130 {strides = array<i32>} : memref<288x768xbf16, #tpu.memory_space<vmem>>, vector<32x384xbf16>,
    %c1_165 = arith.constant 1 : index
    %c0_166 = arith.constant 0 : index
    %c128_167 = arith.constant 128 : index
    %132 = vector.load %arg15[%c1_165, %c0_166, %c128_167] : memref<2x64x640xbf16, #tpu.memory_space<vmem>>, vector<1x32x384xbf16>
    %133 = vector.shape_cast %132 : vector<1x32x384xbf16> to vector<32x384xbf16>
    %c128_168 = arith.constant 128 : index
    %c384_169 = arith.constant 384 : index
    %134 = vector.load %arg14[%c128_168, %c384_169] : memref<288x768xbf16, #tpu.memory_space<vmem>>, vector<32x384xbf16>
    tpu.vector_store %arg14[%c128_168, %c384_169], %133 {strides = array<i32>} : memref<288x768xbf16, #tpu.memory_space<vmem>>, vector<32x384xbf16>,
    %c1_170 = arith.constant 1 : index
    %c0_171 = arith.constant 0 : index
    %c129_172 = arith.constant 129 : index
    %135 = vector.load %arg15[%c1_170, %c0_171, %c129_172] : memref<2x64x640xbf16, #tpu.memory_space<vmem>>, vector<1x32x384xbf16>
    %136 = vector.shape_cast %135 : vector<1x32x384xbf16> to vector<32x384xbf16>
    %c160_173 = arith.constant 160 : index
    %c384_174 = arith.constant 384 : index
    %137 = vector.load %arg14[%c160_173, %c384_174] : memref<288x768xbf16, #tpu.memory_space<vmem>>, vector<32x384xbf16>
    tpu.vector_store %arg14[%c160_173, %c384_174], %136 {strides = array<i32>} : memref<288x768xbf16, #tpu.memory_space<vmem>>, vector<32x384xbf16>,
    %c1_175 = arith.constant 1 : index
    %c0_176 = arith.constant 0 : index
    %c151_177 = arith.constant 151 : index
    %138 = vector.load %arg15[%c1_175, %c0_176, %c151_177] : memref<2x64x640xbf16, #tpu.memory_space<vmem>>, vector<1x32x384xbf16>
    %139 = vector.shape_cast %138 : vector<1x32x384xbf16> to vector<32x384xbf16>
    %c192_178 = arith.constant 192 : index
    %c384_179 = arith.constant 384 : index
    %140 = vector.load %arg14[%c192_178, %c384_179] : memref<288x768xbf16, #tpu.memory_space<vmem>>, vector<32x384xbf16>
    tpu.vector_store %arg14[%c192_178, %c384_179], %139 {strides = array<i32>} : memref<288x768xbf16, #tpu.memory_space<vmem>>, vector<32x384xbf16>,
    %c1_180 = arith.constant 1 : index
    %c0_181 = arith.constant 0 : index
    %c152_182 = arith.constant 152 : index
    %141 = vector.load %arg15[%c1_180, %c0_181, %c152_182] : memref<2x64x640xbf16, #tpu.memory_space<vmem>>, vector<1x32x384xbf16>
    %142 = vector.shape_cast %141 : vector<1x32x384xbf16> to vector<32x384xbf16>
    %c224_183 = arith.constant 224 : index
    %c384_184 = arith.constant 384 : index
    %143 = vector.load %arg14[%c224_183, %c384_184] : memref<288x768xbf16, #tpu.memory_space<vmem>>, vector<32x384xbf16>
    tpu.vector_store %arg14[%c224_183, %c384_184], %142 {strides = array<i32>} : memref<288x768xbf16, #tpu.memory_space<vmem>>, vector<32x384xbf16>,
    %c1_185 = arith.constant 1 : index
    %c0_186 = arith.constant 0 : index
    %c153_187 = arith.constant 153 : index
    %144 = vector.load %arg15[%c1_185, %c0_186, %c153_187] : memref<2x64x640xbf16, #tpu.memory_space<vmem>>, vector<1x32x384xbf16>
    %145 = vector.shape_cast %144 : vector<1x32x384xbf16> to vector<32x384xbf16>
    %c256_188 = arith.constant 256 : index
    %c384_189 = arith.constant 384 : index
    %146 = vector.load %arg14[%c256_188, %c384_189] : memref<288x768xbf16, #tpu.memory_space<vmem>>, vector<32x384xbf16>
    tpu.vector_store %arg14[%c256_188, %c384_189], %145 {strides = array<i32>} : memref<288x768xbf16, #tpu.memory_space<vmem>>, vector<32x384xbf16>,
    %c0_190 = arith.constant 0 : index
    %c0_191 = arith.constant 0 : index
    %147 = vector.load %arg4[%c0_190, %c0_191] : memref<32x288xbf16, #tpu.memory_space<vmem>>, vector<32x288xbf16>
    %c0_192 = arith.constant 0 : index
    %c0_193 = arith.constant 0 : index
    %148 = vector.load %arg14[%c0_192, %c0_193] : memref<288x768xbf16, #tpu.memory_space<vmem>>, vector<288x768xbf16>
    %cst_194 = arith.constant dense<0.000000e+00> : vector<32x768xf32>
    %149 = tpu.matmul %147, %148, %cst_194 {dimension_numbers = #tpu.dot_dimension_numbers<[1], [0], [0], [1], [0, 0, 1, 1], [], []>} : vector<32x288xbf16>, vector<288x768xbf16>, vector<32x768xf32> -> vector<32x768xf32>
    %c0_195 = arith.constant 0 : index
    %c0_196 = arith.constant 0 : index
    %150 = vector.load %arg8[%c0_195, %c0_196] : memref<64x1xf32, #tpu.memory_space<vmem>>, vector<32x1xf32>
    %151 = vector.broadcast %150 : vector<32x1xf32> to vector<32x768xf32>
    %152 = arith.mulf %149, %151 : vector<32x768xf32>
    %c0_197 = arith.constant 0 : index
    %c0_198 = arith.constant 0 : index
    %153 = vector.load %arg9[%c0_197, %c0_198] : memref<64x1xf32, #tpu.memory_space<vmem>>, vector<32x1xf32>
    %154 = vector.broadcast %153 : vector<32x1xf32> to vector<32x768xf32>
    %155 = arith.addf %152, %154 : vector<32x768xf32>
    %c0_199 = arith.constant 0 : index
    %c0_200 = arith.constant 0 : index
    %c25_201 = arith.constant 25 : index
    %156 = vector.load %arg1[%c0_199, %c0_200, %c25_201] : memref<2x32x512xf32, #tpu.memory_space<vmem>>, vector<1x32x384xf32>
    %157 = vector.shape_cast %156 : vector<1x32x384xf32> to vector<32x384xf32>
    %158 = vector.extract_strided_slice %155 {offsets = [0, 0], sizes = [32, 384], strides = [1, 1]} : vector<32x768xf32> to vector<32x384xf32>
    %159 = arith.addf %158, %157 : vector<32x384xf32>
    %cst_202 = arith.constant 0.000000e+00 : f32
    %160 = vector.broadcast %cst_202 : f32 to vector<32x384xf32>
    %161 = arith.maximumf %159, %160 : vector<32x384xf32>
    %162 = arith.mulf %161, %161 : vector<32x384xf32>
    %cst_203 = arith.constant dense<0.000000e+00> : vector<384xf32>
    %163 = vector.multi_reduction <add>, %162, %cst_203 [0] : vector<32x384xf32> to vector<384xf32>
    %164 = vector.shape_cast %163 : vector<384xf32> to vector<1x384xf32>
    %cst_204 = arith.constant 1.000000e-24 : f32
    %165 = vector.broadcast %cst_204 : f32 to vector<1x384xf32>
    %166 = arith.maximumf %164, %165 : vector<1x384xf32>
    %167 = math.rsqrt %166 : vector<1x384xf32>
    %168 = vector.broadcast %167 : vector<1x384xf32> to vector<32x384xf32>
    %169 = arith.mulf %161, %168 : vector<32x384xf32>
    %c0_205 = arith.constant 0 : index
    %c0_206 = arith.constant 0 : index
    %c0_207 = arith.constant 0 : index
    %170 = vector.load %arg10[%c0_205, %c0_206, %c0_207] : memref<2x32x384xf32, #tpu.memory_space<vmem>>, vector<1x32x384xf32>
    %171 = vector.shape_cast %170 : vector<1x32x384xf32> to vector<32x384xf32>
    %172 = vector.shape_cast %169 : vector<32x384xf32> to vector<1x32x384xf32>
    tpu.vector_store %arg10[%c0_205, %c0_206, %c0_207], %172 {strides = array<i32>} : memref<2x32x384xf32, #tpu.memory_space<vmem>>, vector<1x32x384xf32>,
    %cst_208 = arith.constant 5.000000e-01 : f32
    %173 = vector.broadcast %cst_208 : f32 to vector<32x384xf32>
    %174 = arith.mulf %173, %169 : vector<32x384xf32>
    %c0_209 = arith.constant 0 : index
    %c0_210 = arith.constant 0 : index
    %c0_211 = arith.constant 0 : index
    %175 = vector.load %arg12[%c0_209, %c0_210, %c0_211] : memref<2x32x384xf32, #tpu.memory_space<vmem>>, vector<1x32x384xf32>
    %176 = vector.shape_cast %175 : vector<1x32x384xf32> to vector<32x384xf32>
    %177 = vector.shape_cast %174 : vector<32x384xf32> to vector<1x32x384xf32>
    tpu.vector_store %arg12[%c0_209, %c0_210, %c0_211], %177 {strides = array<i32>} : memref<2x32x384xf32, #tpu.memory_space<vmem>>, vector<1x32x384xf32>,
    %c1_212 = arith.constant 1 : index
    %c0_213 = arith.constant 0 : index
    %c25_214 = arith.constant 25 : index
    %178 = vector.load %arg1[%c1_212, %c0_213, %c25_214] : memref<2x32x512xf32, #tpu.memory_space<vmem>>, vector<1x32x384xf32>
    %179 = vector.shape_cast %178 : vector<1x32x384xf32> to vector<32x384xf32>
    %180 = vector.extract_strided_slice %155 {offsets = [0, 384], sizes = [32, 384], strides = [1, 1]} : vector<32x768xf32> to vector<32x384xf32>
    %181 = arith.addf %180, %179 : vector<32x384xf32>
    %cst_215 = arith.constant 0.000000e+00 : f32
    %182 = vector.broadcast %cst_215 : f32 to vector<32x384xf32>
    %183 = arith.maximumf %181, %182 : vector<32x384xf32>
    %184 = arith.mulf %183, %183 : vector<32x384xf32>
    %cst_216 = arith.constant dense<0.000000e+00> : vector<384xf32>
    %185 = vector.multi_reduction <add>, %184, %cst_216 [0] : vector<32x384xf32> to vector<384xf32>
    %186 = vector.shape_cast %185 : vector<384xf32> to vector<1x384xf32>
    %cst_217 = arith.constant 1.000000e-24 : f32
    %187 = vector.broadcast %cst_217 : f32 to vector<1x384xf32>
    %188 = arith.maximumf %186, %187 : vector<1x384xf32>
    %189 = math.rsqrt %188 : vector<1x384xf32>
    %190 = vector.broadcast %189 : vector<1x384xf32> to vector<32x384xf32>
    %191 = arith.mulf %183, %190 : vector<32x384xf32>
    %c1_218 = arith.constant 1 : index
    %c0_219 = arith.constant 0 : index
    %c0_220 = arith.constant 0 : index
    %192 = vector.load %arg10[%c1_218, %c0_219, %c0_220] : memref<2x32x384xf32, #tpu.memory_space<vmem>>, vector<1x32x384xf32>
    %193 = vector.shape_cast %192 : vector<1x32x384xf32> to vector<32x384xf32>
    %194 = vector.shape_cast %191 : vector<32x384xf32> to vector<1x32x384xf32>
    tpu.vector_store %arg10[%c1_218, %c0_219, %c0_220], %194 {strides = array<i32>} : memref<2x32x384xf32, #tpu.memory_space<vmem>>, vector<1x32x384xf32>,
    %cst_221 = arith.constant 5.000000e-01 : f32
    %195 = vector.broadcast %cst_221 : f32 to vector<32x384xf32>
    %196 = arith.mulf %195, %191 : vector<32x384xf32>
    %c1_222 = arith.constant 1 : index
    %c0_223 = arith.constant 0 : index
    %c0_224 = arith.constant 0 : index
    %197 = vector.load %arg12[%c1_222, %c0_223, %c0_224] : memref<2x32x384xf32, #tpu.memory_space<vmem>>, vector<1x32x384xf32>
    %198 = vector.shape_cast %197 : vector<1x32x384xf32> to vector<32x384xf32>
    %199 = vector.shape_cast %196 : vector<32x384xf32> to vector<1x32x384xf32>
    tpu.vector_store %arg12[%c1_222, %c0_223, %c0_224], %199 {strides = array<i32>} : memref<2x32x384xf32, #tpu.memory_space<vmem>>, vector<1x32x384xf32>,
    %c0_225 = arith.constant 0 : index
    %c32_226 = arith.constant 32 : index
    %c103_227 = arith.constant 103 : index
    %200 = vector.load %arg15[%c0_225, %c32_226, %c103_227] : memref<2x64x640xbf16, #tpu.memory_space<vmem>>, vector<1x32x384xbf16>
    %201 = vector.shape_cast %200 : vector<1x32x384xbf16> to vector<32x384xbf16>
    %c0_228 = arith.constant 0 : index
    %c0_229 = arith.constant 0 : index
    %202 = vector.load %arg14[%c0_228, %c0_229] : memref<288x768xbf16, #tpu.memory_space<vmem>>, vector<32x384xbf16>
    tpu.vector_store %arg14[%c0_228, %c0_229], %201 {strides = array<i32>} : memref<288x768xbf16, #tpu.memory_space<vmem>>, vector<32x384xbf16>,
    %c0_230 = arith.constant 0 : index
    %c32_231 = arith.constant 32 : index
    %c104_232 = arith.constant 104 : index
    %203 = vector.load %arg15[%c0_230, %c32_231, %c104_232] : memref<2x64x640xbf16, #tpu.memory_space<vmem>>, vector<1x32x384xbf16>
    %204 = vector.shape_cast %203 : vector<1x32x384xbf16> to vector<32x384xbf16>
    %c32_233 = arith.constant 32 : index
    %c0_234 = arith.constant 0 : index
    %205 = vector.load %arg14[%c32_233, %c0_234] : memref<288x768xbf16, #tpu.memory_space<vmem>>, vector<32x384xbf16>
    tpu.vector_store %arg14[%c32_233, %c0_234], %204 {strides = array<i32>} : memref<288x768xbf16, #tpu.memory_space<vmem>>, vector<32x384xbf16>,
    %c0_235 = arith.constant 0 : index
    %c32_236 = arith.constant 32 : index
    %c105_237 = arith.constant 105 : index
    %206 = vector.load %arg15[%c0_235, %c32_236, %c105_237] : memref<2x64x640xbf16, #tpu.memory_space<vmem>>, vector<1x32x384xbf16>
    %207 = vector.shape_cast %206 : vector<1x32x384xbf16> to vector<32x384xbf16>
    %c64_238 = arith.constant 64 : index
    %c0_239 = arith.constant 0 : index
    %208 = vector.load %arg14[%c64_238, %c0_239] : memref<288x768xbf16, #tpu.memory_space<vmem>>, vector<32x384xbf16>
    tpu.vector_store %arg14[%c64_238, %c0_239], %207 {strides = array<i32>} : memref<288x768xbf16, #tpu.memory_space<vmem>>, vector<32x384xbf16>,
    %c0_240 = arith.constant 0 : index
    %c32_241 = arith.constant 32 : index
    %c127_242 = arith.constant 127 : index
    %209 = vector.load %arg15[%c0_240, %c32_241, %c127_242] : memref<2x64x640xbf16, #tpu.memory_space<vmem>>, vector<1x32x384xbf16>
    %210 = vector.shape_cast %209 : vector<1x32x384xbf16> to vector<32x384xbf16>
    %c96_243 = arith.constant 96 : index
    %c0_244 = arith.constant 0 : index
    %211 = vector.load %arg14[%c96_243, %c0_244] : memref<288x768xbf16, #tpu.memory_space<vmem>>, vector<32x384xbf16>
    tpu.vector_store %arg14[%c96_243, %c0_244], %210 {strides = array<i32>} : memref<288x768xbf16, #tpu.memory_space<vmem>>, vector<32x384xbf16>,
    %c0_245 = arith.constant 0 : index
    %c32_246 = arith.constant 32 : index
    %c128_247 = arith.constant 128 : index
    %212 = vector.load %arg15[%c0_245, %c32_246, %c128_247] : memref<2x64x640xbf16, #tpu.memory_space<vmem>>, vector<1x32x384xbf16>
    %213 = vector.shape_cast %212 : vector<1x32x384xbf16> to vector<32x384xbf16>
    %c128_248 = arith.constant 128 : index
    %c0_249 = arith.constant 0 : index
    %214 = vector.load %arg14[%c128_248, %c0_249] : memref<288x768xbf16, #tpu.memory_space<vmem>>, vector<32x384xbf16>
    tpu.vector_store %arg14[%c128_248, %c0_249], %213 {strides = array<i32>} : memref<288x768xbf16, #tpu.memory_space<vmem>>, vector<32x384xbf16>,
    %c0_250 = arith.constant 0 : index
    %c32_251 = arith.constant 32 : index
    %c129_252 = arith.constant 129 : index
    %215 = vector.load %arg15[%c0_250, %c32_251, %c129_252] : memref<2x64x640xbf16, #tpu.memory_space<vmem>>, vector<1x32x384xbf16>
    %216 = vector.shape_cast %215 : vector<1x32x384xbf16> to vector<32x384xbf16>
    %c160_253 = arith.constant 160 : index
    %c0_254 = arith.constant 0 : index
    %217 = vector.load %arg14[%c160_253, %c0_254] : memref<288x768xbf16, #tpu.memory_space<vmem>>, vector<32x384xbf16>
    tpu.vector_store %arg14[%c160_253, %c0_254], %216 {strides = array<i32>} : memref<288x768xbf16, #tpu.memory_space<vmem>>, vector<32x384xbf16>,
    %c0_255 = arith.constant 0 : index
    %c32_256 = arith.constant 32 : index
    %c151_257 = arith.constant 151 : index
    %218 = vector.load %arg15[%c0_255, %c32_256, %c151_257] : memref<2x64x640xbf16, #tpu.memory_space<vmem>>, vector<1x32x384xbf16>
    %219 = vector.shape_cast %218 : vector<1x32x384xbf16> to vector<32x384xbf16>
    %c192_258 = arith.constant 192 : index
    %c0_259 = arith.constant 0 : index
    %220 = vector.load %arg14[%c192_258, %c0_259] : memref<288x768xbf16, #tpu.memory_space<vmem>>, vector<32x384xbf16>
    tpu.vector_store %arg14[%c192_258, %c0_259], %219 {strides = array<i32>} : memref<288x768xbf16, #tpu.memory_space<vmem>>, vector<32x384xbf16>,
    %c0_260 = arith.constant 0 : index
    %c32_261 = arith.constant 32 : index
    %c152_262 = arith.constant 152 : index
    %221 = vector.load %arg15[%c0_260, %c32_261, %c152_262] : memref<2x64x640xbf16, #tpu.memory_space<vmem>>, vector<1x32x384xbf16>
    %222 = vector.shape_cast %221 : vector<1x32x384xbf16> to vector<32x384xbf16>
    %c224_263 = arith.constant 224 : index
    %c0_264 = arith.constant 0 : index
    %223 = vector.load %arg14[%c224_263, %c0_264] : memref<288x768xbf16, #tpu.memory_space<vmem>>, vector<32x384xbf16>
    tpu.vector_store %arg14[%c224_263, %c0_264], %222 {strides = array<i32>} : memref<288x768xbf16, #tpu.memory_space<vmem>>, vector<32x384xbf16>,
    %c0_265 = arith.constant 0 : index
    %c32_266 = arith.constant 32 : index
    %c153_267 = arith.constant 153 : index
    %224 = vector.load %arg15[%c0_265, %c32_266, %c153_267] : memref<2x64x640xbf16, #tpu.memory_space<vmem>>, vector<1x32x384xbf16>
    %225 = vector.shape_cast %224 : vector<1x32x384xbf16> to vector<32x384xbf16>
    %c256_268 = arith.constant 256 : index
    %c0_269 = arith.constant 0 : index
    %226 = vector.load %arg14[%c256_268, %c0_269] : memref<288x768xbf16, #tpu.memory_space<vmem>>, vector<32x384xbf16>
    tpu.vector_store %arg14[%c256_268, %c0_269], %225 {strides = array<i32>} : memref<288x768xbf16, #tpu.memory_space<vmem>>, vector<32x384xbf16>,
    %c1_270 = arith.constant 1 : index
    %c32_271 = arith.constant 32 : index
    %c103_272 = arith.constant 103 : index
    %227 = vector.load %arg15[%c1_270, %c32_271, %c103_272] : memref<2x64x640xbf16, #tpu.memory_space<vmem>>, vector<1x32x384xbf16>
    %228 = vector.shape_cast %227 : vector<1x32x384xbf16> to vector<32x384xbf16>
    %c0_273 = arith.constant 0 : index
    %c384_274 = arith.constant 384 : index
    %229 = vector.load %arg14[%c0_273, %c384_274] : memref<288x768xbf16, #tpu.memory_space<vmem>>, vector<32x384xbf16>
    tpu.vector_store %arg14[%c0_273, %c384_274], %228 {strides = array<i32>} : memref<288x768xbf16, #tpu.memory_space<vmem>>, vector<32x384xbf16>,
    %c1_275 = arith.constant 1 : index
    %c32_276 = arith.constant 32 : index
    %c104_277 = arith.constant 104 : index
    %230 = vector.load %arg15[%c1_275, %c32_276, %c104_277] : memref<2x64x640xbf16, #tpu.memory_space<vmem>>, vector<1x32x384xbf16>
    %231 = vector.shape_cast %230 : vector<1x32x384xbf16> to vector<32x384xbf16>
    %c32_278 = arith.constant 32 : index
    %c384_279 = arith.constant 384 : index
    %232 = vector.load %arg14[%c32_278, %c384_279] : memref<288x768xbf16, #tpu.memory_space<vmem>>, vector<32x384xbf16>
    tpu.vector_store %arg14[%c32_278, %c384_279], %231 {strides = array<i32>} : memref<288x768xbf16, #tpu.memory_space<vmem>>, vector<32x384xbf16>,
    %c1_280 = arith.constant 1 : index
    %c32_281 = arith.constant 32 : index
    %c105_282 = arith.constant 105 : index
    %233 = vector.load %arg15[%c1_280, %c32_281, %c105_282] : memref<2x64x640xbf16, #tpu.memory_space<vmem>>, vector<1x32x384xbf16>
    %234 = vector.shape_cast %233 : vector<1x32x384xbf16> to vector<32x384xbf16>
    %c64_283 = arith.constant 64 : index
    %c384_284 = arith.constant 384 : index
    %235 = vector.load %arg14[%c64_283, %c384_284] : memref<288x768xbf16, #tpu.memory_space<vmem>>, vector<32x384xbf16>
    tpu.vector_store %arg14[%c64_283, %c384_284], %234 {strides = array<i32>} : memref<288x768xbf16, #tpu.memory_space<vmem>>, vector<32x384xbf16>,
    %c1_285 = arith.constant 1 : index
    %c32_286 = arith.constant 32 : index
    %c127_287 = arith.constant 127 : index
    %236 = vector.load %arg15[%c1_285, %c32_286, %c127_287] : memref<2x64x640xbf16, #tpu.memory_space<vmem>>, vector<1x32x384xbf16>
    %237 = vector.shape_cast %236 : vector<1x32x384xbf16> to vector<32x384xbf16>
    %c96_288 = arith.constant 96 : index
    %c384_289 = arith.constant 384 : index
    %238 = vector.load %arg14[%c96_288, %c384_289] : memref<288x768xbf16, #tpu.memory_space<vmem>>, vector<32x384xbf16>
    tpu.vector_store %arg14[%c96_288, %c384_289], %237 {strides = array<i32>} : memref<288x768xbf16, #tpu.memory_space<vmem>>, vector<32x384xbf16>,
    %c1_290 = arith.constant 1 : index
    %c32_291 = arith.constant 32 : index
    %c128_292 = arith.constant 128 : index
    %239 = vector.load %arg15[%c1_290, %c32_291, %c128_292] : memref<2x64x640xbf16, #tpu.memory_space<vmem>>, vector<1x32x384xbf16>
    %240 = vector.shape_cast %239 : vector<1x32x384xbf16> to vector<32x384xbf16>
    %c128_293 = arith.constant 128 : index
    %c384_294 = arith.constant 384 : index
    %241 = vector.load %arg14[%c128_293, %c384_294] : memref<288x768xbf16, #tpu.memory_space<vmem>>, vector<32x384xbf16>
    tpu.vector_store %arg14[%c128_293, %c384_294], %240 {strides = array<i32>} : memref<288x768xbf16, #tpu.memory_space<vmem>>, vector<32x384xbf16>,
    %c1_295 = arith.constant 1 : index
    %c32_296 = arith.constant 32 : index
    %c129_297 = arith.constant 129 : index
    %242 = vector.load %arg15[%c1_295, %c32_296, %c129_297] : memref<2x64x640xbf16, #tpu.memory_space<vmem>>, vector<1x32x384xbf16>
    %243 = vector.shape_cast %242 : vector<1x32x384xbf16> to vector<32x384xbf16>
    %c160_298 = arith.constant 160 : index
    %c384_299 = arith.constant 384 : index
    %244 = vector.load %arg14[%c160_298, %c384_299] : memref<288x768xbf16, #tpu.memory_space<vmem>>, vector<32x384xbf16>
    tpu.vector_store %arg14[%c160_298, %c384_299], %243 {strides = array<i32>} : memref<288x768xbf16, #tpu.memory_space<vmem>>, vector<32x384xbf16>,
    %c1_300 = arith.constant 1 : index
    %c32_301 = arith.constant 32 : index
    %c151_302 = arith.constant 151 : index
    %245 = vector.load %arg15[%c1_300, %c32_301, %c151_302] : memref<2x64x640xbf16, #tpu.memory_space<vmem>>, vector<1x32x384xbf16>
    %246 = vector.shape_cast %245 : vector<1x32x384xbf16> to vector<32x384xbf16>
    %c192_303 = arith.constant 192 : index
    %c384_304 = arith.constant 384 : index
    %247 = vector.load %arg14[%c192_303, %c384_304] : memref<288x768xbf16, #tpu.memory_space<vmem>>, vector<32x384xbf16>
    tpu.vector_store %arg14[%c192_303, %c384_304], %246 {strides = array<i32>} : memref<288x768xbf16, #tpu.memory_space<vmem>>, vector<32x384xbf16>,
    %c1_305 = arith.constant 1 : index
    %c32_306 = arith.constant 32 : index
    %c152_307 = arith.constant 152 : index
    %248 = vector.load %arg15[%c1_305, %c32_306, %c152_307] : memref<2x64x640xbf16, #tpu.memory_space<vmem>>, vector<1x32x384xbf16>
    %249 = vector.shape_cast %248 : vector<1x32x384xbf16> to vector<32x384xbf16>
    %c224_308 = arith.constant 224 : index
    %c384_309 = arith.constant 384 : index
    %250 = vector.load %arg14[%c224_308, %c384_309] : memref<288x768xbf16, #tpu.memory_space<vmem>>, vector<32x384xbf16>
    tpu.vector_store %arg14[%c224_308, %c384_309], %249 {strides = array<i32>} : memref<288x768xbf16, #tpu.memory_space<vmem>>, vector<32x384xbf16>,
    %c1_310 = arith.constant 1 : index
    %c32_311 = arith.constant 32 : index
    %c153_312 = arith.constant 153 : index
    %251 = vector.load %arg15[%c1_310, %c32_311, %c153_312] : memref<2x64x640xbf16, #tpu.memory_space<vmem>>, vector<1x32x384xbf16>
    %252 = vector.shape_cast %251 : vector<1x32x384xbf16> to vector<32x384xbf16>
    %c256_313 = arith.constant 256 : index
    %c384_314 = arith.constant 384 : index
    %253 = vector.load %arg14[%c256_313, %c384_314] : memref<288x768xbf16, #tpu.memory_space<vmem>>, vector<32x384xbf16>
    tpu.vector_store %arg14[%c256_313, %c384_314], %252 {strides = array<i32>} : memref<288x768xbf16, #tpu.memory_space<vmem>>, vector<32x384xbf16>,
    %c0_315 = arith.constant 0 : index
    %c0_316 = arith.constant 0 : index
    %254 = vector.load %arg5[%c0_315, %c0_316] : memref<32x288xbf16, #tpu.memory_space<vmem>>, vector<32x288xbf16>
    %c0_317 = arith.constant 0 : index
    %c0_318 = arith.constant 0 : index
    %255 = vector.load %arg14[%c0_317, %c0_318] : memref<288x768xbf16, #tpu.memory_space<vmem>>, vector<288x768xbf16>
    %cst_319 = arith.constant dense<0.000000e+00> : vector<32x768xf32>
    %256 = tpu.matmul %254, %255, %cst_319 {dimension_numbers = #tpu.dot_dimension_numbers<[1], [0], [0], [1], [0, 0, 1, 1], [], []>} : vector<32x288xbf16>, vector<288x768xbf16>, vector<32x768xf32> -> vector<32x768xf32>
    %c32_320 = arith.constant 32 : index
    %c0_321 = arith.constant 0 : index
    %257 = vector.load %arg8[%c32_320, %c0_321] : memref<64x1xf32, #tpu.memory_space<vmem>>, vector<32x1xf32>
    %258 = vector.broadcast %257 : vector<32x1xf32> to vector<32x768xf32>
    %259 = arith.mulf %256, %258 : vector<32x768xf32>
    %c32_322 = arith.constant 32 : index
    %c0_323 = arith.constant 0 : index
    %260 = vector.load %arg9[%c32_322, %c0_323] : memref<64x1xf32, #tpu.memory_space<vmem>>, vector<32x1xf32>
    %261 = vector.broadcast %260 : vector<32x1xf32> to vector<32x768xf32>
    %262 = arith.addf %259, %261 : vector<32x768xf32>
    %c0_324 = arith.constant 0 : index
    %c0_325 = arith.constant 0 : index
    %c25_326 = arith.constant 25 : index
    %263 = vector.load %arg1[%c0_324, %c0_325, %c25_326] : memref<2x32x512xf32, #tpu.memory_space<vmem>>, vector<1x32x384xf32>
    %264 = vector.shape_cast %263 : vector<1x32x384xf32> to vector<32x384xf32>
    %265 = vector.extract_strided_slice %262 {offsets = [0, 0], sizes = [32, 384], strides = [1, 1]} : vector<32x768xf32> to vector<32x384xf32>
    %266 = arith.addf %265, %264 : vector<32x384xf32>
    %cst_327 = arith.constant 0.000000e+00 : f32
    %267 = vector.broadcast %cst_327 : f32 to vector<32x384xf32>
    %268 = arith.maximumf %266, %267 : vector<32x384xf32>
    %269 = arith.mulf %268, %268 : vector<32x384xf32>
    %cst_328 = arith.constant dense<0.000000e+00> : vector<384xf32>
    %270 = vector.multi_reduction <add>, %269, %cst_328 [0] : vector<32x384xf32> to vector<384xf32>
    %271 = vector.shape_cast %270 : vector<384xf32> to vector<1x384xf32>
    %cst_329 = arith.constant 1.000000e-24 : f32
    %272 = vector.broadcast %cst_329 : f32 to vector<1x384xf32>
    %273 = arith.maximumf %271, %272 : vector<1x384xf32>
    %274 = math.rsqrt %273 : vector<1x384xf32>
    %275 = vector.broadcast %274 : vector<1x384xf32> to vector<32x384xf32>
    %276 = arith.mulf %268, %275 : vector<32x384xf32>
    %c0_330 = arith.constant 0 : index
    %c0_331 = arith.constant 0 : index
    %c0_332 = arith.constant 0 : index
    %277 = vector.load %arg11[%c0_330, %c0_331, %c0_332] : memref<2x32x384xf32, #tpu.memory_space<vmem>>, vector<1x32x384xf32>
    %278 = vector.shape_cast %277 : vector<1x32x384xf32> to vector<32x384xf32>
    %279 = vector.shape_cast %276 : vector<32x384xf32> to vector<1x32x384xf32>
    tpu.vector_store %arg11[%c0_330, %c0_331, %c0_332], %279 {strides = array<i32>} : memref<2x32x384xf32, #tpu.memory_space<vmem>>, vector<1x32x384xf32>,
    %c0_333 = arith.constant 0 : index
    %c0_334 = arith.constant 0 : index
    %c0_335 = arith.constant 0 : index
    %280 = vector.load %arg12[%c0_333, %c0_334, %c0_335] : memref<2x32x384xf32, #tpu.memory_space<vmem>>, vector<1x32x384xf32>
    %281 = vector.shape_cast %280 : vector<1x32x384xf32> to vector<32x384xf32>
    %cst_336 = arith.constant 5.000000e-01 : f32
    %282 = vector.broadcast %cst_336 : f32 to vector<32x384xf32>
    %283 = arith.mulf %282, %276 : vector<32x384xf32>
    %284 = arith.addf %281, %283 : vector<32x384xf32>
    %c0_337 = arith.constant 0 : index
    %c0_338 = arith.constant 0 : index
    %c0_339 = arith.constant 0 : index
    %285 = vector.load %arg12[%c0_337, %c0_338, %c0_339] : memref<2x32x384xf32, #tpu.memory_space<vmem>>, vector<1x32x384xf32>
    %286 = vector.shape_cast %285 : vector<1x32x384xf32> to vector<32x384xf32>
    %287 = vector.shape_cast %284 : vector<32x384xf32> to vector<1x32x384xf32>
    tpu.vector_store %arg12[%c0_337, %c0_338, %c0_339], %287 {strides = array<i32>} : memref<2x32x384xf32, #tpu.memory_space<vmem>>, vector<1x32x384xf32>,
    %c1_340 = arith.constant 1 : index
    %c0_341 = arith.constant 0 : index
    %c25_342 = arith.constant 25 : index
    %288 = vector.load %arg1[%c1_340, %c0_341, %c25_342] : memref<2x32x512xf32, #tpu.memory_space<vmem>>, vector<1x32x384xf32>
    %289 = vector.shape_cast %288 : vector<1x32x384xf32> to vector<32x384xf32>
    %290 = vector.extract_strided_slice %262 {offsets = [0, 384], sizes = [32, 384], strides = [1, 1]} : vector<32x768xf32> to vector<32x384xf32>
    %291 = arith.addf %290, %289 : vector<32x384xf32>
    %cst_343 = arith.constant 0.000000e+00 : f32
    %292 = vector.broadcast %cst_343 : f32 to vector<32x384xf32>
    %293 = arith.maximumf %291, %292 : vector<32x384xf32>
    %294 = arith.mulf %293, %293 : vector<32x384xf32>
    %cst_344 = arith.constant dense<0.000000e+00> : vector<384xf32>
    %295 = vector.multi_reduction <add>, %294, %cst_344 [0] : vector<32x384xf32> to vector<384xf32>
    %296 = vector.shape_cast %295 : vector<384xf32> to vector<1x384xf32>
    %cst_345 = arith.constant 1.000000e-24 : f32
    %297 = vector.broadcast %cst_345 : f32 to vector<1x384xf32>
    %298 = arith.maximumf %296, %297 : vector<1x384xf32>
    %299 = math.rsqrt %298 : vector<1x384xf32>
    %300 = vector.broadcast %299 : vector<1x384xf32> to vector<32x384xf32>
    %301 = arith.mulf %293, %300 : vector<32x384xf32>
    %c1_346 = arith.constant 1 : index
    %c0_347 = arith.constant 0 : index
    %c0_348 = arith.constant 0 : index
    %302 = vector.load %arg11[%c1_346, %c0_347, %c0_348] : memref<2x32x384xf32, #tpu.memory_space<vmem>>, vector<1x32x384xf32>
    %303 = vector.shape_cast %302 : vector<1x32x384xf32> to vector<32x384xf32>
    %304 = vector.shape_cast %301 : vector<32x384xf32> to vector<1x32x384xf32>
    tpu.vector_store %arg11[%c1_346, %c0_347, %c0_348], %304 {strides = array<i32>} : memref<2x32x384xf32, #tpu.memory_space<vmem>>, vector<1x32x384xf32>,
    %c1_349 = arith.constant 1 : index
    %c0_350 = arith.constant 0 : index
    %c0_351 = arith.constant 0 : index
    %305 = vector.load %arg12[%c1_349, %c0_350, %c0_351] : memref<2x32x384xf32, #tpu.memory_space<vmem>>, vector<1x32x384xf32>
    %306 = vector.shape_cast %305 : vector<1x32x384xf32> to vector<32x384xf32>
    %cst_352 = arith.constant 5.000000e-01 : f32
    %307 = vector.broadcast %cst_352 : f32 to vector<32x384xf32>
    %308 = arith.mulf %307, %301 : vector<32x384xf32>
    %309 = arith.addf %306, %308 : vector<32x384xf32>
    %c1_353 = arith.constant 1 : index
    %c0_354 = arith.constant 0 : index
    %c0_355 = arith.constant 0 : index
    %310 = vector.load %arg12[%c1_353, %c0_354, %c0_355] : memref<2x32x384xf32, #tpu.memory_space<vmem>>, vector<1x32x384xf32>
    %311 = vector.shape_cast %310 : vector<1x32x384xf32> to vector<32x384xf32>
    %312 = vector.shape_cast %309 : vector<32x384xf32> to vector<1x32x384xf32>
    tpu.vector_store %arg12[%c1_353, %c0_354, %c0_355], %312 {strides = array<i32>} : memref<2x32x384xf32, #tpu.memory_space<vmem>>, vector<1x32x384xf32>,
    return
  }
  func.func @transform_0(%arg0: i32) -> (i32, i32, i32) {
    %c0_i32 = arith.constant 0 : i32
    %c0_i32_0 = arith.constant 0 : i32
    %c0_i32_1 = arith.constant 0 : i32
    return %arg0, %c0_i32, %c0_i32_0 : i32, i32, i32
  }
  func.func @transform_1(%arg0: i32) -> (i32, i32) {
    %c0_i32 = arith.constant 0 : i32
    %c0_i32_0 = arith.constant 0 : i32
    %c0_i32_1 = arith.constant 0 : i32
    return %c0_i32, %c0_i32_0 : i32, i32
  }
  func.func @transform_2(%arg0: i32) -> (i32, i32) {
    %c0_i32 = arith.constant 0 : i32
    %c0_i32_0 = arith.constant 0 : i32
    %c0_i32_1 = arith.constant 0 : i32
    return %c0_i32, %c0_i32_0 : i32, i32
  }
  func.func @transform_3(%arg0: i32) -> (i32, i32) {
    %c0_i32 = arith.constant 0 : i32
    %c0_i32_0 = arith.constant 0 : i32
    %c0_i32_1 = arith.constant 0 : i32
    return %c0_i32, %c0_i32_0 : i32, i32
  }
  func.func @transform_4(%arg0: i32) -> (i32, i32) {
    %c0_i32 = arith.constant 0 : i32
    %c0_i32_0 = arith.constant 0 : i32
    %c0_i32_1 = arith.constant 0 : i32
    return %c0_i32, %c0_i32_0 : i32, i32
  }
  func.func @transform_5(%arg0: i32) -> (i32, i32) {
    %c0_i32 = arith.constant 0 : i32
    %c0_i32_0 = arith.constant 0 : i32
    %c0_i32_1 = arith.constant 0 : i32
    return %c0_i32, %c0_i32_0 : i32, i32
  }
  func.func @transform_6(%arg0: i32) -> (i32, i32) {
    %c0_i32 = arith.constant 0 : i32
    %c0_i32_0 = arith.constant 0 : i32
    %c0_i32_1 = arith.constant 0 : i32
    return %c0_i32, %c0_i32_0 : i32, i32
  }
  func.func @transform_7(%arg0: i32) -> (i32, i32) {
    %c0_i32 = arith.constant 0 : i32
    %c0_i32_0 = arith.constant 0 : i32
    %c0_i32_1 = arith.constant 0 : i32
    return %c0_i32, %c0_i32_0 : i32, i32
  }
  func.func @transform_8(%arg0: i32) -> (i32, i32) {
    %c0_i32 = arith.constant 0 : i32
    %c0_i32_0 = arith.constant 0 : i32
    %c0_i32_1 = arith.constant 0 : i32
    return %c0_i32, %c0_i32_0 : i32, i32
  }
  func.func @transform_9(%arg0: i32) -> (i32, i32, i32) {
    %c0_i32 = arith.constant 0 : i32
    %c0_i32_0 = arith.constant 0 : i32
    %c0_i32_1 = arith.constant 0 : i32
    return %arg0, %c0_i32, %c0_i32_0 : i32, i32, i32
  }
  func.func @transform_10(%arg0: i32) -> (i32, i32, i32) {
    %c0_i32 = arith.constant 0 : i32
    %c0_i32_0 = arith.constant 0 : i32
    %c0_i32_1 = arith.constant 0 : i32
    return %arg0, %c0_i32, %c0_i32_0 : i32, i32, i32
  }
  func.func @transform_11(%arg0: i32) -> (i32, i32, i32) {
    %c0_i32 = arith.constant 0 : i32
    %c0_i32_0 = arith.constant 0 : i32
    %c0_i32_1 = arith.constant 0 : i32
    return %arg0, %c0_i32, %c0_i32_0 : i32, i32, i32
  }
}

</mosaic_0001>

<bundles_post_ra>
// kernel: fr_unit_forward.1
= control target key start
LH: loop header
LB: loop body
LE: loop exit
PB: predicated region body
PF: predicated region fallthrough
CT: control target
= control target key end

     0   :  { %s6714_s17 = smov 0   ;;  %s10187_s0 = inlined_call_operand.vmem [shape: f32[4,32,512], index: 0, kind: input, shape index: {}]   ;;  %s10188_s1 = inlined_call_operand.vmem [shape: f32[1,768], index: 1, kind: input, shape index: {}]   ;;  %s10189_s2 = inlined_call_operand.vmem [shape: bf16[64,288], index: 2, kind: input, shape index: {}]   ;;  %s10190_s3 = inlined_call_operand.vmem [shape: bf16[32,288], index: 3, kind: input, shape index: {}]   ;;  %s10191_s4 = inlined_call_operand.vmem [shape: bf16[32,288], index: 4, kind: input, shape index: {}]   ;;  %s10192_s5 = inlined_call_operand.vmem [shape: f32[64,1], index: 5, kind: input, shape index: {}]   ;;  %s10193_s6 = inlined_call_operand.vmem [shape: f32[64,1], index: 6, kind: input, shape index: {}]   ;;  %s10194_s7 = inlined_call_operand.vmem [shape: f32[64,1], index: 7, kind: input, shape index: {}]   ;;  %s10195_s8 = inlined_call_operand.vmem [shape: f32[64,1], index: 8, kind: input, shape index: {}]   ;;  %s10196_s9 = inlined_call_operand.vmem [shape: f32[4,32,384], index: 9, kind: output, shape index: {0}]   ;;  %s10197_s10 = inlined_call_operand.vmem [shape: f32[4,32,384], index: 10, kind: output, shape index: {1}]   ;;  %s10198_s11 = inlined_call_operand.vmem [shape: f32[4,32,384], index: 11, kind: output, shape index: {2}]  }
   0x1 LB: > { %s6132_s18 = sadd.s32 4294967295, %s6638_s17   ;;  %p6136_p0 = scmp.ge.s32.totalorder %s6638_s17, 1  ;;  %s6638_s17 = sphi %s6714_s17, %s22_s17  }
   0x2   : > { %p344_p1 = scmp.lt.s32.totalorder %s6638_s17, 3 }
   0x4   : > { %p345_p2 = pnand %p6136_p0, %p344_p1 }
   0x6   : > { %348 = sbr.rel (%p345_p2) target bundleno = 1295 (0x50f), region = 56 }
   0xd   : > { %s6137_s19 = sshll.u32 %s6132_s18, 1  ;;  %s6640_s24 = smov 127   ;;  %v6845_v24 = vld [vmem:[%s10189_s2 + $0x4] ss:$12 sps:$4 sm:$0xff]   ;;  %v10199_v37 = vmov 0   ;;  %vm537_vm0 = vcmask 1039360  }
   0xe   : > { %p399_p3 = scmp.lt.s32.totalorder %s6137_s19, 3  ;;  %s6641_s25 = smov 126   ;;  %1554 = vmatprep.mubr.bf16.mxu0 %v6845_v24  ;;  %1700 = vmatprep.mubr.bf16.mxu1 %v6845_v24  ;;  %vm588_vm1 = vcmask 1031168   ;;  %vm639_vm2 = vcmask 850944   ;;  %vm690_vm3 = vcmask 842752   ;;  %vm741_vm4 = vcmask 834560  }
   0xf   : > { %s6642_s26 = smov 104   ;;  %s6643_s27 = smov 103   ;;  %6425 = vset.pattern.permute.xlu1 %v10199_v37  ;;  %6424 = vset.pattern.permute.xlu0 %v10199_v37  ;;  %vm792_vm5 = vcmask 654336   ;;  %vm843_vm6 = vcmask 646144   ;;  %vm894_vm7 = vcmask 637952   ;;  %vm1509_vm8 = vcmask 261120  }
  0x10   : > { %s10375_s19 = smov (!%p399_p3, %s6137_s19), 3  ;;  %s6644_s28 = smov 102   ;;  %vm2377_vm9 = vcmask 203776   ;;  %vm2428_vm10 = vcmask 195584   ;;  %vm2479_vm11 = vcmask 187392   ;;  %vm2530_vm12 = vcmask 7168  }
  0x11   : > { %s6304_s20 = sshll.u32 %s10375_s19, 7  ;;  %s6645_s29 = smov 80   ;;  %vm2643_vm13 = vcmask 859136  }
  0x12   : > { %s6728_s23 = scalar_lea.vmem %s10187_s0, %s6304_s20  ;;  %s6646_s13 = smov 79  }
  0x13   : > { %v428_v0 = vld [vmem:[%s6728_s23 + $0x8] sm:$0xff]  ;;  %v427_v2 = vld [vmem:[%s6728_s23] sm:$0xff]  ;;  %v429_v5 = vld [vmem:[%s6728_s23 + $0x10] sm:$0xff]  ;;  %s6647_s14 = smov 78   ;;  %s6649_s30 = smov 25  }
  0x14   : > { %v432_v1 = vld [vmem:[%s6728_s23 + $0x28] sm:$0xff]  ;;  %v431_v4 = vld [vmem:[%s6728_s23 + $0x20] sm:$0xff]  ;;  %v433_v6 = vld [vmem:[%s6728_s23 + $0x30] sm:$0xff]  ;;  %s6651_s12 = smov 23  }
  0x15   : > { %v6733_v3 = vpack.c.bf16 %v432_v1, %v428_v0  ;;  %v6738_v7 = vpack.c.bf16 %v431_v4, %v427_v2  ;;  %v436_v8 = vld [vmem:[%s6728_s23 + $0x48] sm:$0xff]  ;;  %v6744_v10 = vpack.c.bf16 %v433_v6, %v429_v5  ;;  %v437_v12 = vld [vmem:[%s6728_s23 + $0x50] sm:$0xff]  ;;  %v435_v13 = vld [vmem:[%s6728_s23 + $0x40] sm:$0xff] }
  0x16   : > { %v440_v9 = vld [vmem:[%s6728_s23 + $0x68] sm:$0xff]  ;;  %v439_v14 = vld [vmem:[%s6728_s23 + $0x60] sm:$0xff]  ;;  %v441_v15 = vld [vmem:[%s6728_s23 + $0x70] sm:$0xff] }
  0x17   : > { %523 = vrot.lane.b32.xlu0 %v6733_v3, %s6640_s24  ;;  %v6746_v11 = vpack.c.bf16 %v440_v9, %v436_v8  ;;  %1522 = vmatprep.subr.bf16.mxu0 %v6733_v3  ;;  %v6146_v16 = vld [vmem:[%s6728_s23 + $0x80] sm:$0xff]  ;;  %v6761_v19 = vpack.c.bf16 %v439_v14, %v435_v13  ;;  %v6767_v22 = vpack.c.bf16 %v441_v15, %v437_v12  ;;  %v6147_v25 = vld [vmem:[%s6728_s23 + $0x88] sm:$0xff]  ;;  %v430_v28 = vld [vmem:[%s6728_s23 + $0x18] sm:$0xff] }
  0x18   : > { %521 = vrot.lane.b32.xlu1 %v6738_v7, %s6640_s24  ;;  %v6150_v17 = vld [vmem:[%s6728_s23 + $0xa0] sm:$0xff]  ;;  %1523 = vmatpush1.bf16.msra.mxu0 %v6738_v7  ;;  %v6151_v26 = vld [vmem:[%s6728_s23 + $0xa8] sm:$0xff]  ;;  %v434_v29 = vld [vmem:[%s6728_s23 + $0x38] sm:$0xff] }
  0x19   : > { %v6758_v18 = vpack.c.bf16 %v6150_v17, %v6146_v16  ;;  %1524 = vmatprep.subr.bf16.mxu0 %v6746_v11  ;;  %v6154_v20 = vld [vmem:[%s6728_s23 + $0xc0] sm:$0xff]  ;;  %v6863_v27 = vpack.c.bf16 %v6151_v26, %v6147_v25  ;;  %v6869_v30 = vpack.c.bf16 %v434_v29, %v430_v28  ;;  %v6155_v31 = vld [vmem:[%s6728_s23 + $0xc8] sm:$0xff]  ;;  %v438_v34 = vld [vmem:[%s6728_s23 + $0x58] sm:$0xff] }
  0x1a   : > { %v6158_v21 = vld [vmem:[%s6728_s23 + $0xe0] sm:$0xff]  ;;  %v6159_v32 = vld [vmem:[%s6728_s23 + $0xe8] sm:$0xff]  ;;  %v442_v35 = vld [vmem:[%s6728_s23 + $0x78] sm:$0xff] }
  0x1b   : > { %525 = vrot.lane.b32.xlu0 %v6744_v10, %s6640_s24  ;;  %1668 = vmatprep.subr.bf16.mxu1 %v6758_v18  ;;  %v6772_v23 = vpack.c.bf16 %v6158_v21, %v6154_v20  ;;  %v6883_v33 = vpack.c.bf16 %v6159_v32, %v6155_v31  ;;  %v6889_v36 = vpack.c.bf16 %v442_v35, %v438_v34  ;;  %v6148_v34 = vld [vmem:[%s6728_s23 + $0x90] sm:$0xff] }
  0x1c   : > { %531 = vrot.lane.b32.xlu1 %v6746_v11, %s6640_s24  ;;  %1525 = vmatpush1.bf16.msra.mxu0 %v6761_v19  ;;  %v6152_v35 = vld [vmem:[%s6728_s23 + $0xb0] sm:$0xff] }
  0x1d   : > { %1669 = vmatpush1.bf16.msra.mxu1 %v6744_v10 }
  0x1e   : > { %1670 = vmatprep.subr.bf16.mxu1 %v6772_v23 }
  0x1f   : > { %533 = vrot.lane.b32.xlu0 %v6767_v22, %s6640_s24 }
  0x20   : > { %529 = vrot.lane.b32.xlu1 %v6761_v19, %s6640_s24 }
  0x21   : > { %1671 = vmatpush1.bf16.msra.mxu1 %v6767_v22 }
  0x23   : > { %574 = vrot.lane.b32.xlu0 %v6733_v3, %s6641_s25 }
  0x24   : > { %576 = vrot.lane.b32.xlu1 %v6744_v10, %s6641_s25 }
  0x27   : > { %572 = vrot.lane.b32.xlu0 %v6738_v7, %s6641_s25 }
  0x28   : > { %582 = vrot.lane.b32.xlu1 %v6746_v11, %s6641_s25 }
  0x2b   : > { %584 = vrot.lane.b32.xlu0 %v6767_v22, %s6641_s25 }
  0x2c   : > { %580 = vrot.lane.b32.xlu1 %v6761_v19, %s6641_s25 }
  0x2f   : > { %625 = vrot.lane.b32.xlu0 %v6733_v3, %s6642_s26 }
  0x30   : > { %627 = vrot.lane.b32.xlu1 %v6744_v10, %s6642_s26 }
  0x33   : > { %623 = vrot.lane.b32.xlu0 %v6738_v7, %s6642_s26 }
  0x34   : > { %633 = vrot.lane.b32.xlu1 %v6746_v11, %s6642_s26 }
  0x37   : > { %635 = vrot.lane.b32.xlu0 %v6767_v22, %s6642_s26 }
  0x38   : > { %631 = vrot.lane.b32.xlu1 %v6761_v19, %s6642_s26 }
  0x3b   : > { %676 = vrot.lane.b32.xlu0 %v6733_v3, %s6643_s27 }
  0x3c   : > { %678 = vrot.lane.b32.xlu1 %v6744_v10, %s6643_s27 }
  0x3f   : > { %674 = vrot.lane.b32.xlu0 %v6738_v7, %s6643_s27 }
  0x40   : > { %684 = vrot.lane.b32.xlu1 %v6746_v11, %s6643_s27 }
  0x43   : > { %686 = vrot.lane.b32.xlu0 %v6767_v22, %s6643_s27 }
  0x44   : > { %682 = vrot.lane.b32.xlu1 %v6761_v19, %s6643_s27 }
  0x47   : > { %727 = vrot.lane.b32.xlu0 %v6733_v3, %s6644_s28 }
  0x48   : > { %729 = vrot.lane.b32.xlu1 %v6744_v10, %s6644_s28 }
  0x4b   : > { %725 = vrot.lane.b32.xlu0 %v6738_v7, %s6644_s28 }
  0x4c   : > { %735 = vrot.lane.b32.xlu1 %v6746_v11, %s6644_s28 }
  0x4f   : > { %737 = vrot.lane.b32.xlu0 %v6767_v22, %s6644_s28 }
  0x50   : > { %733 = vrot.lane.b32.xlu1 %v6761_v19, %s6644_s28 }
  0x53   : > { %778 = vrot.lane.b32.xlu0 %v6733_v3, %s6645_s29 }
  0x54   : > { %780 = vrot.lane.b32.xlu1 %v6744_v10, %s6645_s29 }
  0x57   : > { %776 = vrot.lane.b32.xlu0 %v6738_v7, %s6645_s29 }
  0x58   : > { %786 = vrot.lane.b32.xlu1 %v6746_v11, %s6645_s29 }
  0x5b   : > { %788 = vrot.lane.b32.xlu0 %v6767_v22, %s6645_s29 }
  0x5c   : > { %784 = vrot.lane.b32.xlu1 %v6761_v19, %s6645_s29 }
  0x5f   : > { %829 = vrot.lane.b32.xlu0 %v6733_v3, %s6646_s13 }
  0x60   : > { %831 = vrot.lane.b32.xlu1 %v6744_v10, %s6646_s13 }
  0x63   : > { %827 = vrot.lane.b32.xlu0 %v6738_v7, %s6646_s13 }
  0x64   : > { %837 = vrot.lane.b32.xlu1 %v6746_v11, %s6646_s13 }
  0x67   : > { %839 = vrot.lane.b32.xlu0 %v6767_v22, %s6646_s13 }
  0x68   : > { %835 = vrot.lane.b32.xlu1 %v6761_v19, %s6646_s13 }
  0x6b   : > { %941 = vrot.lane.b32.xlu0 %v6758_v18, %s6640_s24 }
  0x6c   : > { %943 = vrot.lane.b32.xlu1 %v6863_v27, %s6640_s24 }
  0x6f   : > { %527 = vrot.lane.b32.xlu0 %v6869_v30, %s6640_s24 }
  0x70   : > { %880 = vrot.lane.b32.xlu1 %v6733_v3, %s6647_s14 }
  0x73   : > { %882 = vrot.lane.b32.xlu0 %v6744_v10, %s6647_s14 }
  0x74   : > { %878 = vrot.lane.b32.xlu1 %v6738_v7, %s6647_s14 }
  0x77   : > { %949 = vrot.lane.b32.xlu0 %v6772_v23, %s6640_s24 }
  0x78   : > { %951 = vrot.lane.b32.xlu1 %v6883_v33, %s6640_s24 }
  0x7b   : > { %535 = vrot.lane.b32.xlu0 %v6889_v36, %s6640_s24 }
  0x7c   : > { %888 = vrot.lane.b32.xlu1 %v6746_v11, %s6647_s14 }
  0x7f   : > { %890 = vrot.lane.b32.xlu0 %v6767_v22, %s6647_s14 }
  0x80   : > { %886 = vrot.lane.b32.xlu1 %v6761_v19, %s6647_s14 }
  0x83   : > { %991 = vrot.lane.b32.xlu0 %v6758_v18, %s6641_s25 }
  0x84   : > { %993 = vrot.lane.b32.xlu1 %v6863_v27, %s6641_s25 }
  0x87   : > { %578 = vrot.lane.b32.xlu0 %v6869_v30, %s6641_s25 }
  0x88   : > { %999 = vrot.lane.b32.xlu1 %v6772_v23, %s6641_s25 }
  0x89   : > { %v524_v38 = vpop.permute.xlu0 %523 }
  0x8a   : > { %v522_v39 = vpop.permute.xlu1 %521 }
  0x8b   : > { %1001 = vrot.lane.b32.xlu0 %v6883_v33, %s6641_s25  ;;  %v538_v43 = vsel %vm537_vm0, %v522_v39, %v524_v38 }
  0x8c   : > { %586 = vrot.lane.b32.xlu1 %v6889_v36, %s6641_s25 }
  0x8d   : > { %v6915_v40 = vpop.permute.xlu0 %525 }
  0x8e   : > { %v532_v41 = vpop.permute.xlu1 %531  ;;  %v539_v42 = vsel %vm537_vm0, %v524_v38, %v6915_v40 }
  0x8f   : > { %1041 = vrot.lane.b32.xlu0 %v6758_v18, %s6642_s26  ;;  %1526 = vmatprep.subr.bf16.mxu0 %v539_v42  ;;  %v6149_v42 = vld [vmem:[%s6728_s23 + $0x98] sm:$0xff] }
  0x90   : > { %1043 = vrot.lane.b32.xlu1 %v6863_v27, %s6642_s26  ;;  %1527 = vmatpush1.bf16.msra.mxu0 %v538_v43  ;;  %v6153_v43 = vld [vmem:[%s6728_s23 + $0xb8] sm:$0xff] }
  0x91   : > { %v6924_v44 = vpop.permute.xlu0 %533 }
  0x92   : > { %v530_v45 = vpop.permute.xlu1 %529  ;;  %v542_v46 = vsel %vm537_vm0, %v532_v41, %v6924_v44 }
  0x93   : > { %629 = vrot.lane.b32.xlu0 %v6869_v30, %s6642_s26  ;;  %1528 = vmatprep.subr.bf16.mxu0 %v542_v46  ;;  %v541_v47 = vsel %vm537_vm0, %v530_v45, %v532_v41  ;;  %v7036_v41 = vpack.c.bf16 %v6152_v35, %v6148_v34 }
  0x94   : > { %1049 = vrot.lane.b32.xlu1 %v6772_v23, %s6642_s26  ;;  %1529 = vmatpush1.bf16.msra.mxu0 %v541_v47 }
  0x95   : > { %v575_v48 = vpop.permute.xlu0 %574 }
  0x96   : > { %v6933_v49 = vpop.permute.xlu1 %576 }
  0x97   : > { %1051 = vrot.lane.b32.xlu0 %v6883_v33, %s6642_s26  ;;  %v590_v50 = vsel %vm588_vm1, %v575_v48, %v6933_v49 }
  0x98   : > { %637 = vrot.lane.b32.xlu1 %v6889_v36, %s6642_s26  ;;  %1530 = vmatprep.subr.bf16.mxu0 %v590_v50 }
  0x99   : > { %v573_v51 = vpop.permute.xlu0 %572 }
  0x9a   : > { %v583_v52 = vpop.permute.xlu1 %582  ;;  %v589_v53 = vsel %vm588_vm1, %v573_v51, %v575_v48  ;;  %v7047_v48 = vpack.c.bf16 %v6153_v43, %v6149_v42 }
  0x9b   : > { %1091 = vrot.lane.b32.xlu0 %v6758_v18, %s6643_s27  ;;  %1531 = vmatpush1.bf16.msra.mxu0 %v589_v53  ;;  %v6160_v53 = vld [vmem:[%s6728_s23 + $0xf0] sm:$0xff] }
  0x9c   : > { %1093 = vrot.lane.b32.xlu1 %v6863_v27, %s6643_s27 }
  0x9d   : > { %v6946_v54 = vpop.permute.xlu0 %584 }
  0x9e   : > { %v581_v55 = vpop.permute.xlu1 %580  ;;  %v593_v56 = vsel %vm588_vm1, %v583_v52, %v6946_v54 }
  0x9f   : > { %680 = vrot.lane.b32.xlu0 %v6869_v30, %s6643_s27  ;;  %1532 = vmatprep.subr.bf16.mxu0 %v593_v56  ;;  %v592_v57 = vsel %vm588_vm1, %v581_v55, %v583_v52  ;;  %v6156_v52 = vld [vmem:[%s6728_s23 + $0xd0] sm:$0xff]  ;;  %v6157_v56 = vld [vmem:[%s6728_s23 + $0xd8] sm:$0xff] }
  0xa0   : > { %1099 = vrot.lane.b32.xlu1 %v6772_v23, %s6643_s27  ;;  %1533 = vmatpush1.bf16.msra.mxu0 %v592_v57  ;;  %v6161_v57 = vld [vmem:[%s6728_s23 + $0xf8] sm:$0xff] }
  0xa1   : > { %v626_v58 = vpop.permute.xlu0 %625 }
  0xa2   : > { %v6955_v59 = vpop.permute.xlu1 %627 }
  0xa3   : > { %1101 = vrot.lane.b32.xlu0 %v6883_v33, %s6643_s27  ;;  %v641_v60 = vsel %vm639_vm2, %v626_v58, %v6955_v59 }
  0xa4   : > { %688 = vrot.lane.b32.xlu1 %v6889_v36, %s6643_s27  ;;  %1534 = vmatprep.subr.bf16.mxu0 %v641_v60 }
  0xa5   : > { %v624_v61 = vpop.permute.xlu0 %623 }
  0xa6   : > { %v634_v62 = vpop.permute.xlu1 %633  ;;  %v640_v63 = vsel %vm639_vm2, %v624_v61, %v626_v58  ;;  %v7066_v61 = vpack.c.bf16 %v6160_v53, %v6156_v52 }
  0xa7   : > { %1141 = vrot.lane.b32.xlu0 %v6758_v18, %s6644_s28  ;;  %1535 = vmatpush1.bf16.msra.mxu0 %v640_v63 }
  0xa8   : > { %1143 = vrot.lane.b32.xlu1 %v6863_v27, %s6644_s28 }
  0xa9   : > { %v6968_v0 = vpop.permute.xlu0 %635 }
  0xaa   : > { %v632_v1 = vpop.permute.xlu1 %631  ;;  %v644_v2 = vsel %vm639_vm2, %v634_v62, %v6968_v0 }
  0xab   : > { %731 = vrot.lane.b32.xlu0 %v6869_v30, %s6644_s28  ;;  %1536 = vmatprep.subr.bf16.mxu0 %v644_v2  ;;  %v643_v3 = vsel %vm639_vm2, %v632_v1, %v634_v62  ;;  %v7070_v62 = vpack.c.bf16 %v6161_v57, %v6157_v56 }
  0xac   : > { %1291 = vrot.lane.b32.xlu1 %v6758_v18, %s6647_s14  ;;  %1537 = vmatpush1.bf16.msra.mxu0 %v643_v3  ;;  %v7082_v3 = vld [vmem:[%s10189_s2] ss:$12 sps:$4 sm:$0xff]  }
  0xad   : > { %v677_v4 = vpop.permute.xlu0 %676 }
  0xae   : > { %v6977_v5 = vpop.permute.xlu1 %678 }
  0xaf   : > { %1293 = vrot.lane.b32.xlu0 %v6863_v27, %s6647_s14  ;;  %v692_v6 = vsel %vm690_vm3, %v677_v4, %v6977_v5 }
  0xb0   : > { %884 = vrot.lane.b32.xlu1 %v6869_v30, %s6647_s14  ;;  %1538 = vmatprep.subr.bf16.mxu0 %v692_v6 }
  0xb1   : > { %v675_v7 = vpop.permute.xlu0 %674 }
  0xb2   : > { %v685_v8 = vpop.permute.xlu1 %684  ;;  %v691_v9 = vsel %vm690_vm3, %v675_v7, %v677_v4  ;;  %v7089_v4 = vld [vmem:[%s10189_s2 + $0x1c] ss:$12 sps:$4 sm:$0xff]  }
  0xb3   : > { %1149 = vrot.lane.b32.xlu0 %v6772_v23, %s6644_s28  ;;  %1539 = vmatpush1.bf16.msra.mxu0 %v691_v9 }
  0xb4   : > { %1151 = vrot.lane.b32.xlu1 %v6883_v33, %s6644_s28 }
  0xb5   : > { %v6990_v10 = vpop.permute.xlu0 %686 }
  0xb6   : > { %v683_v11 = vpop.permute.xlu1 %682  ;;  %v695_v12 = vsel %vm690_vm3, %v685_v8, %v6990_v10 }
  0xb7   : > { %739 = vrot.lane.b32.xlu0 %v6889_v36, %s6644_s28  ;;  %1540 = vmatprep.subr.bf16.mxu0 %v695_v12  ;;  %v694_v13 = vsel %vm690_vm3, %v683_v11, %v685_v8  ;;  %v7108_v12 = vld [vmem:[%s10189_s2 + $0x18] ss:$12 sps:$4 sm:$0xff]  }
  0xb8   : > { %1299 = vrot.lane.b32.xlu1 %v6772_v23, %s6647_s14  ;;  %1541 = vmatpush1.bf16.msra.mxu0 %v694_v13 }
  0xb9   : > { %v728_v14 = vpop.permute.xlu0 %727 }
  0xba   : > { %v6999_v15 = vpop.permute.xlu1 %729 }
  0xbb   : > { %1301 = vrot.lane.b32.xlu0 %v6883_v33, %s6647_s14  ;;  %v743_v16 = vsel %vm741_vm4, %v728_v14, %v6999_v15 }
  0xbc   : > { %892 = vrot.lane.b32.xlu1 %v6889_v36, %s6647_s14  ;;  %1542 = vmatprep.subr.bf16.mxu0 %v743_v16 }
  0xbd   : > { %v726_v17 = vpop.permute.xlu0 %725 }
  0xbe   : > { %v736_v19 = vpop.permute.xlu1 %735  ;;  %v742_v20 = vsel %vm741_vm4, %v726_v17, %v728_v14  ;;  %v7117_v14 = vld [vmem:[%s10189_s2 + $0x34] ss:$12 sps:$4 sm:$0xff]  }
  0xbf   : > { %1191 = vrot.lane.b32.xlu0 %v6758_v18, %s6645_s29  ;;  %1543 = vmatpush1.bf16.msra.mxu0 %v742_v20 }
  0xc0   : > { %1193 = vrot.lane.b32.xlu1 %v6863_v27, %s6645_s29 }
  0xc1   : > { %v7012_v21 = vpop.permute.xlu0 %737 }
  0xc2   : > { %v734_v22 = vpop.permute.xlu1 %733  ;;  %v746_v25 = vsel %vm741_vm4, %v736_v19, %v7012_v21 }
  0xc3   : > { %782 = vrot.lane.b32.xlu0 %v6869_v30, %s6645_s29  ;;  %1544 = vmatprep.subr.bf16.mxu0 %v746_v25  ;;  %v745_v26 = vsel %vm741_vm4, %v734_v22, %v736_v19  ;;  %v7137_v25 = vld [vmem:[%s10189_s2 + $0x30] ss:$12 sps:$4 sm:$0xff]  }
  0xc4   : > { %1199 = vrot.lane.b32.xlu1 %v6772_v23, %s6645_s29  ;;  %1545 = vmatpush1.bf16.msra.mxu0 %v745_v26 }
  0xc5   : > { %v779_v28 = vpop.permute.xlu0 %778 }
  0xc6   : > { %v7021_v29 = vpop.permute.xlu1 %780 }
  0xc7   : > { %1201 = vrot.lane.b32.xlu0 %v6883_v33, %s6645_s29  ;;  %v794_v31 = vsel %vm792_vm5, %v779_v28, %v7021_v29 }
  0xc8   : > { %790 = vrot.lane.b32.xlu1 %v6889_v36, %s6645_s29  ;;  %1546 = vmatprep.subr.bf16.mxu0 %v794_v31 }
  0xc9   : > { %v777_v32 = vpop.permute.xlu0 %776 }
  0xca   : > { %v787_v38 = vpop.permute.xlu1 %786  ;;  %v793_v39 = vsel %vm792_vm5, %v777_v32, %v779_v28  ;;  %v7144_v28 = vld [vmem:[%s10189_s2 + $0x4c] ss:$12 sps:$4 sm:$0xff]  }
  0xcb   : > { %1241 = vrot.lane.b32.xlu0 %v6758_v18, %s6646_s13  ;;  %1547 = vmatpush1.bf16.msra.mxu0 %v793_v39 }
  0xcc   : > { %1243 = vrot.lane.b32.xlu1 %v6863_v27, %s6646_s13 }
  0xcd   : > { %v7040_v45 = vpop.permute.xlu0 %788 }
  0xce   : > { %v785_v46 = vpop.permute.xlu1 %784  ;;  %v797_v47 = vsel %vm792_vm5, %v787_v38, %v7040_v45 }
  0xcf   : > { %833 = vrot.lane.b32.xlu0 %v6869_v30, %s6646_s13  ;;  %1548 = vmatprep.subr.bf16.mxu0 %v797_v47  ;;  %v796_v18 = vsel %vm792_vm5, %v785_v46, %v787_v38 }
  0xd0   : > { %945 = vrot.lane.b32.xlu1 %v7036_v41, %s6640_s24  ;;  %1549 = vmatpush1.bf16.msra.mxu0 %v796_v18 }
  0xd1   : > { %v830_v50 = vpop.permute.xlu0 %829 }
  0xd2   : > { %v7051_v51 = vpop.permute.xlu1 %831 }
  0xd3   : > { %947 = vrot.lane.b32.xlu0 %v7047_v48, %s6640_s24  ;;  %v845_v30 = vsel %vm843_vm6, %v830_v50, %v7051_v51 }
  0xd4   : > { %1249 = vrot.lane.b32.xlu1 %v6772_v23, %s6646_s13  ;;  %1550 = vmatprep.subr.bf16.mxu0 %v845_v30  ;;  %v7185_v30 = vld [vmem:[%s10189_s2 + $0x8] ss:$12 sps:$4 sm:$0xff]  }
  0xd5   : > { %v828_v55 = vpop.permute.xlu0 %827 }
  0xd6   : > { %v838_v58 = vpop.permute.xlu1 %837  ;;  %v844_v60 = vsel %vm843_vm6, %v828_v55, %v830_v50 }
  0xd7   : > { %1251 = vrot.lane.b32.xlu0 %v6883_v33, %s6646_s13  ;;  %1551 = vmatpush1.bf16.msra.mxu0 %v844_v60 }
  0xd8   : > { %841 = vrot.lane.b32.xlu1 %v6889_v36, %s6646_s13 }
  0xd9   : > { %v7072_v23 = vpop.permute.xlu0 %839 }
  0xda   : > { %v836_v63 = vpop.permute.xlu1 %835  ;;  %v848_v1 = vsel %vm843_vm6, %v838_v58, %v7072_v23 }
  0xdb   : > { %953 = vrot.lane.b32.xlu0 %v7066_v61, %s6640_s24  ;;  %1552 = vmatprep.subr.bf16.mxu0 %v848_v1  ;;  %v847_v2 = vsel %vm843_vm6, %v836_v63, %v838_v58 }
  0xdc   : > { %955 = vrot.lane.b32.xlu1 %v7070_v62, %s6640_s24  ;;  %1553 = vmatpush1.bf16.msra.mxu0 %v847_v2 }
  0xdd   : > { %v942_v36 = vpop.permute.xlu0 %941 }
  0xde   : > { %v7091_v6 = vpop.permute.xlu1 %943 }
  0xdf   : > { %995 = vrot.lane.b32.xlu0 %v7036_v41, %s6641_s25  ;;  %1555 = vmatmul.mubr.bf16.vlgmr.msra.gmra.mrb[0].mxu0 %v7082_v3  ;;  %v957_v7 = vsel %vm537_vm0, %v942_v36, %v7091_v6 }
  0xe0   : > { %997 = vrot.lane.b32.xlu1 %v7047_v48, %s6641_s25  ;;  %1672 = vmatprep.subr.bf16.mxu1 %v957_v7 }
  0xe1   : > { %v528_v8 = vpop.permute.xlu0 %527  ;;  %1564 = vmatprep.mubr.bf16.mxu0 %v7089_v4 }
  0xe2   : > { %v881_v9 = vpop.permute.xlu1 %880  ;;  %v540_v11 = vsel %vm537_vm0, %v6915_v40, %v528_v8  ;;  %v7235_v8 = vld [vmem:[%s10189_s2 + $0x38] ss:$12 sps:$4 sm:$0xff]  }
  0xe3   : > { %1003 = vrot.lane.b32.xlu0 %v7066_v61, %s6641_s25  ;;  %1673 = vmatpush1.bf16.msra.mxu1 %v540_v11 }
  0xe4   : > { %1005 = vrot.lane.b32.xlu1 %v7070_v62, %s6641_s25  ;;  %s6653_s25 = smov 105  }
  0xe5   : > { %v7112_v13 = vpop.permute.xlu0 %882 }
  0xe6   : > { %v879_v40 = vpop.permute.xlu1 %878  ;;  %v896_v16 = vsel %vm894_vm7, %v881_v9, %v7112_v13 }
  0xe7   : > { %v895_v17 = vsel %vm894_vm7, %v879_v40, %v881_v9  ;;  %1045 = vrot.lane.b32.xlu0 %v7036_v41, %s6642_s26  ;;  %1565 = vmatmul.mubr.bf16.gmra.mrb[4].mxu0 %v7108_v12 }
  0xe8   : > { %1047 = vrot.lane.b32.xlu1 %v7047_v48, %s6642_s26  ;;  %1595 = vmatprep.subr.bf16.mxu0 %v896_v16 }
  0xe9   : > { %1596 = vmatpush1.bf16.msra.mxu0 %v895_v17  ;;  %v950_v19 = vpop.permute.xlu0 %949  ;;  %1574 = vmatprep.mubr.bf16.mxu0 %v7117_v14 }
  0xea   : > { %v7128_v20 = vpop.permute.xlu1 %951 }
  0xeb   : > { %1053 = vrot.lane.b32.xlu0 %v7066_v61, %s6642_s26  ;;  %v960_v22 = vsel %vm537_vm0, %v950_v19, %v7128_v20  ;;  %v7257_v19 = vld [vmem:[%s10189_s2 + $0x50] ss:$12 sps:$4 sm:$0xff]  }
  0xec   : > { %1055 = vrot.lane.b32.xlu1 %v7070_v62, %s6642_s26  ;;  %1674 = vmatprep.subr.bf16.mxu1 %v960_v22  ;;  %v1960_v22 = vld [vmem:[%s10192_s5] sm:$0xff] }
  0xed   : > { %v536_v26 = vpop.permute.xlu0 %535 }
  0xee   : > { %v889_v31 = vpop.permute.xlu1 %888  ;;  %v543_v32 = vsel %vm537_vm0, %v6924_v44, %v536_v26  ;;  %v7164_v44 = vld [vmem:[%s10189_s2 + $0x48] ss:$12 sps:$4 sm:$0xff]  }
  0xef   : > { %1095 = vrot.lane.b32.xlu0 %v7036_v41, %s6643_s27  ;;  %1575 = vmatmul.mubr.bf16.gmra.mrb[8].mxu0 %v7137_v25 }
  0xf0   : > { %1097 = vrot.lane.b32.xlu1 %v7047_v48, %s6643_s27  ;;  %1675 = vmatpush1.bf16.msra.mxu1 %v543_v32 }
  0xf1   : > { %v7153_v34 = vpop.permute.xlu0 %890  ;;  %1584 = vmatprep.mubr.bf16.mxu0 %v7144_v28 }
  0xf2   : > { %v887_v35 = vpop.permute.xlu1 %886  ;;  %v899_v38 = vsel %vm894_vm7, %v889_v31, %v7153_v34 }
  0xf3   : > { %v898_v39 = vsel %vm894_vm7, %v887_v35, %v889_v31  ;;  %1103 = vrot.lane.b32.xlu0 %v7066_v61, %s6643_s27  ;;  %1597 = vmatprep.subr.bf16.mxu0 %v899_v38  ;;  %v1961_v31 = vld [vmem:[%s10192_s5 + $0x8] sm:$0xff]  ;;  %v1963_v35 = vld [vmem:[%s10192_s5 + $0x18] sm:$0xff] }
  0xf4   : > { %1105 = vrot.lane.b32.xlu1 %v7070_v62, %s6643_s27  ;;  %1598 = vmatpush1.bf16.msra.mxu0 %v898_v39  ;;  %v1962_v39 = vld [vmem:[%s10192_s5 + $0x10] sm:$0xff] }
  0xf5   : > { %v992_v42 = vpop.permute.xlu0 %991 }
  0xf6   : > { %v7168_v43 = vpop.permute.xlu1 %993 }
  0xf7   : > { %1145 = vrot.lane.b32.xlu0 %v7036_v41, %s6644_s28  ;;  %1585 = vmatmul.mubr.bf16.gmra.mrb[12].mxu0 %v7164_v44  ;;  %v1007_v46 = vsel %vm588_vm1, %v992_v42, %v7168_v43 }
  0xf8   : > { %1147 = vrot.lane.b32.xlu1 %v7047_v48, %s6644_s28  ;;  %1676 = vmatprep.subr.bf16.mxu1 %v1007_v46  ;;  %v1965_v46 = vld [vmem:[%s10192_s5 + $0x28] sm:$0xff] }
  0xf9   : > { %v579_v47 = vpop.permute.xlu0 %578  ;;  %1627 = vmatprep.mubr.bf16.mxu0 %v10199_v37 }
  0xfa   : > { %v1000_v18 = vpop.permute.xlu1 %999  ;;  %v591_v50 = vsel %vm588_vm1, %v6933_v49, %v579_v47 }
  0xfb   : > { %1153 = vrot.lane.b32.xlu0 %v7066_v61, %s6644_s28  ;;  %1677 = vmatpush1.bf16.msra.mxu1 %v591_v50  ;;  %v1964_v50 = vld [vmem:[%s10192_s5 + $0x20] sm:$0xff] }
  0xfc   : > { %1155 = vrot.lane.b32.xlu1 %v7070_v62, %s6644_s28  ;;  %s6650_s28 = smov 24  }
  0xfd   : > { %v7189_v52 = vpop.permute.xlu0 %1001 }
  0xfe   : > { %v587_v53 = vpop.permute.xlu1 %586  ;;  %v1010_v55 = vsel %vm588_vm1, %v1000_v18, %v7189_v52 }
  0xff   : > { %1195 = vrot.lane.b32.xlu0 %v7036_v41, %s6645_s29  ;;  %6174 = vmatmul.mubr.msk.bf16.vlgmr.msra.gmra.mrb[0].mxu0 %vm1509_vm8, %v7185_v30  ;;  %v594_v49 = vsel %vm588_vm1, %v6946_v54, %v587_v53  ;;  %v7211_v54 = vld [vmem:[%s10189_s2 + $0x20] ss:$12 sps:$4 sm:$0xff]  }
 0x100   : > { %1197 = vrot.lane.b32.xlu1 %v7047_v48, %s6645_s29  ;;  %1678 = vmatprep.subr.bf16.mxu1 %v1010_v55  ;;  %v1967_v55 = vld [vmem:[%s10192_s5 + $0x38] sm:$0xff] }
 0x101   : > { %1679 = vmatpush1.bf16.msra.mxu1 %v594_v49  ;;  %v1042_v56 = vpop.permute.xlu0 %1041  ;;  %1637 = vmatprep.mubr.bf16.mxu0 %v10199_v37 }
 0x102   : > { %v7202_v57 = vpop.permute.xlu1 %1043 }
 0x103   : > { %1203 = vrot.lane.b32.xlu0 %v7066_v61, %s6645_s29  ;;  %v1057_v58 = vsel %vm639_vm2, %v1042_v56, %v7202_v57 }
 0x104   : > { %1205 = vrot.lane.b32.xlu1 %v7070_v62, %s6645_s29  ;;  %1680 = vmatprep.subr.bf16.mxu1 %v1057_v58  ;;  %s6652_s29 = smov 1  }
 0x105   : > { %v630_v60 = vpop.permute.xlu0 %629 }
 0x106   : > { %v1050_v63 = vpop.permute.xlu1 %1049  ;;  %v642_v1 = vsel %vm639_vm2, %v6955_v59, %v630_v60 }
 0x107   : > { %1245 = vrot.lane.b32.xlu0 %v7036_v41, %s6646_s13  ;;  %6175 = vmatmul.mubr.msk.bf16.gmra.mrb[4].mxu0 %vm1509_vm8, %v7211_v54 }
 0x108   : > { %1247 = vrot.lane.b32.xlu1 %v7047_v48, %s6646_s13  ;;  %1681 = vmatpush1.bf16.msra.mxu1 %v642_v1 }
 0x109   : > { %v7223_v2 = vpop.permute.xlu0 %1051  ;;  %1647 = vmatprep.mubr.bf16.mxu0 %v10199_v37 }
 0x10a   : > { %v638_v36 = vpop.permute.xlu1 %637  ;;  %v1060_v7 = vsel %vm639_vm2, %v1050_v63, %v7223_v2  ;;  %v2057_v63 = vld [vmem:[%s10193_s6 + $0x8] sm:$0xff] }
 0x10b   : > { %1253 = vrot.lane.b32.xlu0 %v7066_v61, %s6646_s13  ;;  %1682 = vmatprep.subr.bf16.mxu1 %v1060_v7  ;;  %v645_v59 = vsel %vm639_vm2, %v6968_v0, %v638_v36  ;;  %v2056_v36 = vld [vmem:[%s10193_s6] sm:$0xff] }
 0x10c   : > { %1255 = vrot.lane.b32.xlu1 %v7070_v62, %s6646_s13  ;;  %1683 = vmatpush1.bf16.msra.mxu1 %v645_v59  ;;  %v2059_v59 = vld [vmem:[%s10193_s6 + $0x18] sm:$0xff] }
 0x10d   : > { %v1092_v9 = vpop.permute.xlu0 %1091 }
 0x10e   : > { %v7239_v11 = vpop.permute.xlu1 %1093 }
 0x10f   : > { %1295 = vrot.lane.b32.xlu0 %v7036_v41, %s6647_s14  ;;  %6176 = vmatmul.mubr.msk.bf16.gmra.mrb[8].mxu0 %vm1509_vm8, %v7235_v8  ;;  %v1107_v0 = vsel %vm690_vm3, %v1092_v9, %v7239_v11 }
 0x110   : > { %1297 = vrot.lane.b32.xlu1 %v7047_v48, %s6647_s14  ;;  %1684 = vmatprep.subr.bf16.mxu1 %v1107_v0 }
 0x111   : > { %v681_v40 = vpop.permute.xlu0 %680  ;;  %1657 = vmatprep.mubr.bf16.mxu0 %v10199_v37 }
 0x112   : > { %v1100_v16 = vpop.permute.xlu1 %1099  ;;  %v693_v17 = vsel %vm690_vm3, %v6977_v5, %v681_v40  ;;  %v2058_v40 = vld [vmem:[%s10193_s6 + $0x10] sm:$0xff] }
 0x113   : > { %1303 = vrot.lane.b32.xlu0 %v7066_v61, %s6647_s14  ;;  %1685 = vmatpush1.bf16.msra.mxu1 %v693_v17  ;;  %v2061_v17 = vld [vmem:[%s10193_s6 + $0x28] sm:$0xff] }
 0x114   : > { %1305 = vrot.lane.b32.xlu1 %v7070_v62, %s6647_s14 }
 0x115   : > { %v7261_v48 = vpop.permute.xlu0 %1101 }
 0x116   : > { %v689_v26 = vpop.permute.xlu1 %688  ;;  %v1110_v5 = vsel %vm690_vm3, %v1100_v16, %v7261_v48 }
 0x117   : > { %6177 = vmatmul.mubr.msk.bf16.gmra.mrb[12].mxu0 %vm1509_vm8, %v7257_v19  ;;  %1686 = vmatprep.subr.bf16.mxu1 %v1110_v5  ;;  %v696_v62 = vsel %vm690_vm3, %v6990_v10, %v689_v26 }
 0x118   : > { %1687 = vmatpush1.bf16.msra.mxu1 %v696_v62  ;;  %1970 = vperm.xlu0 %6424, %v1960_v22  }
 0x119   : > { %v1142_v32 = vpop.permute.xlu0 %1141  ;;  %1975 = vperm.xlu1 %6425, %v1961_v31   ;;  %1773 = vmatprep.mubr.bf16.mxu0 %v10199_v37 }
 0x11a   : > { %v7279_v38 = vpop.permute.xlu1 %1143 }
 0x11b   : > { %v1157_v42 = vsel %vm741_vm4, %v1142_v32, %v7279_v38  ;;  %v2063_v32 = vld [vmem:[%s10193_s6 + $0x38] sm:$0xff] }
 0x11c   : > { %1688 = vmatprep.subr.bf16.mxu1 %v1157_v42  ;;  %1985 = vperm.xlu0 %6424, %v1963_v35  }
 0x11d   : > { %v732_v10 = vpop.permute.xlu0 %731  ;;  %1980 = vperm.xlu1 %6425, %v1962_v39  }
 0x11e   : > { %v1292_v47 = vpop.permute.xlu1 %1291  ;;  %v744_v18 = vsel %vm741_vm4, %v6999_v15, %v732_v10  ;;  %v1966_v15 = vld [vmem:[%s10192_s5 + $0x30] sm:$0xff] }
 0x11f   : > { %1689 = vmatpush1.bf16.msra.mxu1 %v744_v18 }
 0x120   : > { %1995 = vperm.xlu0 %6424, %v1965_v46  }
 0x121   : > { %v7294_v53 = vpop.permute.xlu0 %1293  ;;  %1990 = vperm.xlu1 %6425, %v1964_v50  }
 0x122   : > { %v885_v49 = vpop.permute.xlu1 %884  ;;  %v1307_v56 = vsel %vm894_vm7, %v1292_v47, %v7294_v53 }
 0x123   : > { %v897_v58 = vsel %vm894_vm7, %v7112_v13, %v885_v49  ;;  %1741 = vmatprep.subr.bf16.mxu0 %v1307_v56 }
 0x124   : > { %1742 = vmatpush1.bf16.msra.mxu0 %v897_v58  ;;  %2005 = vperm.xlu0 %6424, %v1967_v55  }
 0x125   : > { %v1150_v60 = vpop.permute.xlu0 %1149  ;;  %2000 = vperm.xlu1 %6425, %v1966_v15  }
 0x126   : > { %v7309_v1 = vpop.permute.xlu1 %1151 }
 0x127   : > { %v1160_v7 = vsel %vm741_vm4, %v1150_v60, %v7309_v1 }
 0x128   : > { %1690 = vmatprep.subr.bf16.mxu1 %v1160_v7  ;;  %2071 = vperm.xlu0 %6424, %v2057_v63  }
 0x129   : > { %v740_v13 = vpop.permute.xlu0 %739  ;;  %2066 = vperm.xlu1 %6425, %v2056_v36  }
 0x12a   : > { %v1300_v9 = vpop.permute.xlu1 %1299  ;;  %v747_v0 = vsel %vm741_vm4, %v7012_v21, %v740_v13  ;;  %v2060_v21 = vld [vmem:[%s10193_s6 + $0x20] sm:$0xff] }
 0x12b   : > { %1691 = vmatpush1.bf16.msra.mxu1 %v747_v0 }
 0x12c   : > { %2081 = vperm.xlu0 %6424, %v2059_v59  }
 0x12d   : > { %v7324_v16 = vpop.permute.xlu0 %1301  ;;  %2076 = vperm.xlu1 %6425, %v2058_v40  }
 0x12e   : > { %v893_v22 = vpop.permute.xlu1 %892  ;;  %v1310_v26 = vsel %vm894_vm7, %v1300_v9, %v7324_v16 }
 0x12f   : > { %v900_v5 = vsel %vm894_vm7, %v7153_v34, %v893_v22  ;;  %1743 = vmatprep.subr.bf16.mxu0 %v1310_v26  ;;  %v2062_v34 = vld [vmem:[%s10193_s6 + $0x30] sm:$0xff] }
 0x130   : > { %1744 = vmatpush1.bf16.msra.mxu0 %v900_v5  ;;  %2091 = vperm.xlu0 %6424, %v2061_v17  }
 0x131   : > { %v1192_v31 = vpop.permute.xlu0 %1191  ;;  %1814 = vmatprep.subr.bf16.mxu0 %v7036_v41  ;;  %2086 = vperm.xlu1 %6425, %v2060_v21  }
 0x132   : > { %v7337_v62 = vpop.permute.xlu1 %1193 }
 0x133   : > { %v1207_v35 = vsel %vm792_vm5, %v1192_v31, %v7337_v62  ;;  %6178 = vmatmul.mubr.msk.bf16.vlgmr.msra.gmra.mrb[16].mxu0 %vm1509_vm8, %v7185_v30 }
 0x134   : > { %1692 = vmatprep.subr.bf16.mxu1 %v1207_v35  ;;  %1815 = vmatpush1.bf16.msra.mxu0 %v6863_v27 }
 0x135   : > { %v783_v41 = vpop.permute.xlu0 %782  ;;  %1816 = vmatprep.subr.bf16.mxu0 %v7066_v61  ;;  %2101 = vperm.xlu0 %6424, %v2063_v32  }
 0x136   : > { %v1200_v39 = vpop.permute.xlu1 %1199  ;;  %v795_v42 = vsel %vm792_vm5, %v7021_v29, %v783_v41  ;;  %2096 = vperm.xlu1 %6425, %v2062_v34   ;;  %1783 = vmatprep.mubr.bf16.mxu0 %v10199_v37 }
 0x137   : > { %1693 = vmatpush1.bf16.msra.mxu1 %v795_v42 }
 0x138   : > { %1817 = vmatpush1.bf16.msra.mxu0 %v6883_v33 }
 0x139   : > { %v7355_v10 = vpop.permute.xlu0 %1201  ;;  %6432 = vrot.lane.b32.xlu0 %v10199_v37, %s6650_s28 }
 0x13a   : > { %v791_v46 = vpop.permute.xlu1 %790  ;;  %v1210_v27 = vsel %vm792_vm5, %v1200_v39, %v7355_v10  ;;  %6427 = vrot.lane.b32.xlu1 %v10199_v37, %s6649_s30 }
 0x13b   : > { %1694 = vmatprep.subr.bf16.mxu1 %v1210_v27  ;;  %v798_v61 = vsel %vm792_vm5, %v7040_v45, %v791_v46  ;;  %6179 = vmatmul.mubr.msk.bf16.gmra.mrb[20].mxu0 %vm1509_vm8, %v7211_v54 }
 0x13c   : > { %1695 = vmatpush1.bf16.msra.mxu1 %v798_v61  ;;  %1793 = vmatprep.mubr.bf16.mxu0 %v10199_v37 }
 0x13d   : > { %v1242_v29 = vpop.permute.xlu0 %1241  ;;  %6442 = vrot.lane.b32.xlu0 %v10199_v37, %s6652_s29 }
 0x13e   : > { %v7364_v47 = vpop.permute.xlu1 %1243  ;;  %6437 = vrot.lane.b32.xlu1 %v10199_v37, %s6651_s12 }
 0x13f   : > { %v1257_v33 = vsel %vm843_vm6, %v1242_v29, %v7364_v47 }
 0x140   : > { %1696 = vmatprep.subr.bf16.mxu1 %v1257_v33 }
 0x141   : > { %v834_v45 = vpop.permute.xlu0 %833  ;;  %6447 = vrot.lane.b32.xlu0 %v10199_v37, %s6640_s24 }
 0x142   : > { %v946_v18 = vpop.permute.xlu1 %945  ;;  %v846_v50 = vsel %vm843_vm6, %v7051_v51, %v834_v45  ;;  %6452 = vrot.lane.b32.xlu1 %v10199_v37, %s6653_s25 }
 0x143   : > { %1697 = vmatpush1.bf16.msra.mxu1 %v846_v50  ;;  %6180 = vmatmul.mubr.msk.bf16.gmra.mrb[24].mxu0 %vm1509_vm8, %v7235_v8  ;;  %v958_v51 = vsel %vm537_vm0, %v7091_v6, %v946_v18 }
 0x144   : > { %1803 = vmatprep.mubr.bf16.mxu0 %v10199_v37 }
 0x145   : > { %v948_v55 = vpop.permute.xlu0 %947  ;;  %6457 = vrot.lane.b32.xlu0 %v10199_v37, %s6642_s26 }
 0x146   : > { %v1250_v49 = vpop.permute.xlu1 %1249  ;;  %v959_v56 = vsel %vm537_vm0, %v946_v18, %v948_v55  ;;  %6462 = vrot.lane.b32.xlu1 %v10199_v37, %s6643_s27 }
 0x147   : > { %1818 = vmatprep.subr.bf16.mxu0 %v959_v56 }
 0x148   : > { %1819 = vmatpush1.bf16.msra.mxu0 %v958_v51 }
 0x149   : > { %v7388_v15 = vpop.permute.xlu0 %1251  ;;  %6472 = vrot.lane.b32.xlu0 %v10199_v37, %s6650_s28 }
 0x14a   : > { %v842_v58 = vpop.permute.xlu1 %841  ;;  %v1260_v60 = vsel %vm843_vm6, %v1250_v49, %v7388_v15  ;;  %6467 = vrot.lane.b32.xlu1 %v10199_v37, %s6649_s30 }
 0x14b   : > { %1698 = vmatprep.subr.bf16.mxu1 %v1260_v60  ;;  %v849_v63 = vsel %vm843_vm6, %v7072_v23, %v842_v58  ;;  %6181 = vmatmul.mubr.msk.bf16.gmra.mrb[28].mxu0 %vm1509_vm8, %v7257_v19 }
 0x14c   : > { %1699 = vmatpush1.bf16.msra.mxu1 %v849_v63  ;;  %1846 = vmatprep.mubr.bf16.mxu0 %v6845_v24 }
 0x14d   : > { %v954_v6 = vpop.permute.xlu0 %953  ;;  %6477 = vrot.lane.b32.xlu0 %v10199_v37, %s6651_s12 }
 0x14e   : > { %v956_v36 = vpop.permute.xlu1 %955  ;;  %v961_v7 = vsel %vm537_vm0, %v7128_v20, %v954_v6  ;;  %6482 = vrot.lane.b32.xlu1 %v10199_v37, %s6652_s29 }
 0x14f   : > { %1701 = vmatmul.mubr.bf16.vlgmr.msra.gmra.mrb[0].mxu1 %v7082_v3  ;;  %v962_v13 = vsel %vm537_vm0, %v954_v6, %v956_v36 }
 0x150   : > { %1820 = vmatprep.subr.bf16.mxu0 %v962_v13  ;;  %1710 = vmatprep.mubr.bf16.mxu1 %v7089_v4 }
 0x151   : > { %1821 = vmatpush1.bf16.msra.mxu0 %v961_v7  ;;  %v996_v23 = vpop.permute.xlu0 %995  ;;  %6492 = vrot.lane.b32.xlu0 %v10199_v37, %s6650_s28 }
 0x152   : > { %v998_v59 = vpop.permute.xlu1 %997  ;;  %v1008_v24 = vsel %vm588_vm1, %v7168_v43, %v996_v23  ;;  %6487 = vrot.lane.b32.xlu1 %v10199_v37, %s6649_s30 }
 0x153   : > { %v1009_v9 = vsel %vm588_vm1, %v996_v23, %v998_v59 }
 0x154   : > { %1822 = vmatprep.subr.bf16.mxu0 %v1009_v9 }
 0x155   : > { %1823 = vmatpush1.bf16.msra.mxu0 %v1008_v24  ;;  %v1004_v20 = vpop.permute.xlu0 %1003 }
 0x156   : > { %v1006_v0 = vpop.permute.xlu1 %1005  ;;  %v1011_v40 = vsel %vm588_vm1, %v7189_v52, %v1004_v20  ;;  %6497 = vrot.lane.b32.xlu1 %v10199_v37, %s6651_s12 }
 0x157   : > { %1711 = vmatmul.mubr.bf16.gmra.mrb[4].mxu1 %v7108_v12  ;;  %v1012_v17 = vsel %vm588_vm1, %v1004_v20, %v1006_v0 }
 0x158   : > { %1824 = vmatprep.subr.bf16.mxu0 %v1012_v17  ;;  %1720 = vmatprep.mubr.bf16.mxu1 %v7117_v14 }
 0x159   : > { %1825 = vmatpush1.bf16.msra.mxu0 %v1011_v40  ;;  %v1046_v43 = vpop.permute.xlu0 %1045 }
 0x15a   : > { %v1048_v22 = vpop.permute.xlu1 %1047  ;;  %v1058_v26 = vsel %vm639_vm2, %v7202_v57, %v1046_v43 }
 0x15b   : > { %v1059_v52 = vsel %vm639_vm2, %v1046_v43, %v1048_v22  ;;  %v7511_v43 = vld [vmem:[%s10188_s1] sm:$0x3f] }
 0x15c   : > { %1826 = vmatprep.subr.bf16.mxu0 %v1059_v52 }
 0x15d   : > { %1827 = vmatpush1.bf16.msra.mxu0 %v1058_v26  ;;  %v1054_v21 = vpop.permute.xlu0 %1053 }
 0x15e   : > { %v1056_v5 = vpop.permute.xlu1 %1055  ;;  %v1061_v31 = vsel %vm639_vm2, %v7223_v2, %v1054_v21 }
 0x15f   : > { %1721 = vmatmul.mubr.bf16.gmra.mrb[8].mxu1 %v7137_v25  ;;  %v1062_v57 = vsel %vm639_vm2, %v1054_v21, %v1056_v5 }
 0x160   : > { %1828 = vmatprep.subr.bf16.mxu0 %v1062_v57  ;;  %1730 = vmatprep.mubr.bf16.mxu1 %v7144_v28 }
 0x161   : > { %1829 = vmatpush1.bf16.msra.mxu0 %v1061_v31  ;;  %v1096_v32 = vpop.permute.xlu0 %1095 }
 0x162   : > { %v1098_v35 = vpop.permute.xlu1 %1097  ;;  %v1108_v34 = vsel %vm690_vm3, %v7239_v11, %v1096_v32 }
 0x163   : > { %v1109_v41 = vsel %vm690_vm3, %v1096_v32, %v1098_v35 }
 0x164   : > { %1830 = vmatprep.subr.bf16.mxu0 %v1109_v41 }
 0x165   : > { %1831 = vmatpush1.bf16.msra.mxu0 %v1108_v34  ;;  %v1104_v2 = vpop.permute.xlu0 %1103 }
 0x166   : > { %v1106_v39 = vpop.permute.xlu1 %1105  ;;  %v1111_v42 = vsel %vm690_vm3, %v7261_v48, %v1104_v2 }
 0x167   : > { %1731 = vmatmul.mubr.bf16.gmra.mrb[12].mxu1 %v7164_v44  ;;  %v1112_v46 = vsel %vm690_vm3, %v1104_v2, %v1106_v39 }
 0x168   : > { %1832 = vmatprep.subr.bf16.mxu0 %v1112_v46 }
 0x169   : > { %1833 = vmatpush1.bf16.msra.mxu0 %v1111_v42  ;;  %v1146_v27 = vpop.permute.xlu0 %1145 }
 0x16a   : > { %v1148_v61 = vpop.permute.xlu1 %1147  ;;  %v1158_v11 = vsel %vm741_vm4, %v7279_v38, %v1146_v27 }
 0x16b   : > { %v1159_v29 = vsel %vm741_vm4, %v1146_v27, %v1148_v61 }
 0x16c   : > { %1834 = vmatprep.subr.bf16.mxu0 %v1159_v29 }
 0x16d   : > { %1835 = vmatpush1.bf16.msra.mxu0 %v1158_v11  ;;  %v1154_v33 = vpop.permute.xlu0 %1153 }
 0x16e   : > { %v1156_v45 = vpop.permute.xlu1 %1155  ;;  %v1161_v48 = vsel %vm741_vm4, %v7309_v1, %v1154_v33 }
 0x16f   : > { %v1162_v18 = vsel %vm741_vm4, %v1154_v33, %v1156_v45 }
 0x170   : > { %1836 = vmatprep.subr.bf16.mxu0 %v1162_v18 }
 0x171   : > { %1837 = vmatpush1.bf16.msra.mxu0 %v1161_v48  ;;  %v1196_v50 = vpop.permute.xlu0 %1195 }
 0x172   : > { %v1198_v55 = vpop.permute.xlu1 %1197  ;;  %v1208_v49 = vsel %vm792_vm5, %v7337_v62, %v1196_v50 }
 0x173   : > { %v1209_v38 = vsel %vm792_vm5, %v1196_v50, %v1198_v55 }
 0x174   : > { %1838 = vmatprep.subr.bf16.mxu0 %v1209_v38 }
 0x175   : > { %1839 = vmatpush1.bf16.msra.mxu0 %v1208_v49  ;;  %v1204_v56 = vpop.permute.xlu0 %1203 }
 0x176   : > { %v1206_v51 = vpop.permute.xlu1 %1205  ;;  %v1211_v58 = vsel %vm792_vm5, %v7355_v10, %v1204_v56 }
 0x177   : > { %v1212_v1 = vsel %vm792_vm5, %v1204_v56, %v1206_v51 }
 0x178   : > { %1840 = vmatprep.subr.bf16.mxu0 %v1212_v1 }
 0x179   : > { %1841 = vmatpush1.bf16.msra.mxu0 %v1211_v58  ;;  %v1246_v60 = vpop.permute.xlu0 %1245 }
 0x17a   : > { %v1248_v63 = vpop.permute.xlu1 %1247  ;;  %v1258_v6 = vsel %vm843_vm6, %v7364_v47, %v1246_v60 }
 0x17b   : > { %v1259_v62 = vsel %vm843_vm6, %v1246_v60, %v1248_v63 }
 0x17c   : > { %1842 = vmatprep.subr.bf16.mxu0 %v1259_v62 }
 0x17d   : > { %1843 = vmatpush1.bf16.msra.mxu0 %v1258_v6  ;;  %v1254_v36 = vpop.permute.xlu0 %1253 }
 0x17e   : > { %v1256_v7 = vpop.permute.xlu1 %1255  ;;  %v1261_v13 = vsel %vm843_vm6, %v7388_v15, %v1254_v36 }
 0x17f   : > { %v1262_v10 = vsel %vm843_vm6, %v1254_v36, %v1256_v7 }
 0x180   : > { %1844 = vmatprep.subr.bf16.mxu0 %v1262_v10 }
 0x181   : > { %1845 = vmatpush1.bf16.msra.mxu0 %v1261_v13  ;;  %v1296_v23 = vpop.permute.xlu0 %1295 }
 0x182   : > { %v1298_v59 = vpop.permute.xlu1 %1297  ;;  %v1308_v24 = vsel %vm894_vm7, %v7294_v53, %v1296_v23 }
 0x183   : > { %v1309_v47 = vsel %vm894_vm7, %v1296_v23, %v1298_v59 }
 0x184   : > { %1847 = vmatmul.mubr.bf16.vlgmr.msra.gmra.mrb[32].mxu0 %v7082_v3  ;;  %1887 = vmatprep.subr.bf16.mxu0 %v1309_v47 }
 0x185   : > { %1888 = vmatpush1.bf16.msra.mxu0 %v1308_v24  ;;  %v1304_v9 = vpop.permute.xlu0 %1303  ;;  %1856 = vmatprep.mubr.bf16.mxu0 %v7089_v4 }
 0x186   : > { %v1306_v20 = vpop.permute.xlu1 %1305  ;;  %v1311_v15 = vsel %vm894_vm7, %v7324_v16, %v1304_v9 }
 0x187   : > { %v1312_v0 = vsel %vm894_vm7, %v1304_v9, %v1306_v20 }
 0x188   : > { %1889 = vmatprep.subr.bf16.mxu0 %v1312_v0 }
 0x189   : > { %1890 = vmatpush1.bf16.msra.mxu0 %v1311_v15 }
 0x18c   : > { %1857 = vmatmul.mubr.bf16.gmra.mrb[36].mxu0 %v7108_v12 }
 0x18d   : > { %1866 = vmatprep.mubr.bf16.mxu0 %v7117_v14 }
 0x194   : > { %1867 = vmatmul.mubr.bf16.gmra.mrb[40].mxu0 %v7137_v25 }
 0x195   : > { %1876 = vmatprep.mubr.bf16.mxu0 %v7144_v28 }
 0x197   : > { %v7488_v4 = vpop.permute.xlu0 %1970 }
 0x198   : > { %v7484_v3 = vpop.permute.xlu1 %1975 }
 0x19b   : > { %v7492_v14 = vpop.permute.xlu0 %1985 }
 0x19c   : > { %1877 = vmatmul.mubr.bf16.gmra.mrb[44].mxu0 %v7164_v44  ;;  %v7490_v12 = vpop.permute.xlu1 %1980  ;;  %v2202_v44 = vlaneseq }
 0x19d   : > { %1919 = vmatprep.mubr.bf16.mxu0 %v10199_v37 }
 0x19f   : > { %v7496_v28 = vpop.permute.xlu0 %1995 }
 0x1a0   : > { %v7494_v25 = vpop.permute.xlu1 %1990 }
 0x1a4   : > { %6182 = vmatmul.mubr.msk.bf16.vlgmr.msra.gmra.mrb[32].mxu0 %vm1509_vm8, %v7185_v30  ;;  %v7498_v30 = vpop.permute.xlu1 %2000 }
 0x1a5   : > { %1929 = vmatprep.mubr.bf16.mxu0 %v10199_v37 }
 0x1a8   : > { %v7506_v17 = vpop.permute.xlu1 %2066 }
 0x1ac   : > { %6183 = vmatmul.mubr.msk.bf16.gmra.mrb[36].mxu0 %vm1509_vm8, %v7211_v54  ;;  %v7500_v54 = vshrl.u32 %v2202_v44, 7  ;;  %v7532_v18 = vpop.permute.xlu1 %2076 }
 0x1ad   : > { %1939 = vmatprep.mubr.bf16.mxu0 %v10199_v37 }
 0x1ae   : > { %v2204_v16 = vsub.s32 0, %v7500_v54  ;;  %v2208_v26 = vsub.s32 1, %v7500_v54 }
 0x1b0   : > { %v7522_v41 = vrot.slane %v7511_v43, %v2204_v16  ;;  %v7526_v42 = vrot.slane %v7511_v43, %v2208_v26  ;;  %v7560_v0 = vpop.permute.xlu1 %2086 }
 0x1b4   : > { %6184 = vmatmul.mubr.msk.bf16.gmra.mrb[40].mxu0 %vm1509_vm8, %v7235_v8  ;;  %v7502_v8 = vpop.permute.xlu0 %2005 }
 0x1b5   : > { %1949 = vmatprep.mubr.bf16.mxu0 %v10199_v37 }
 0x1b8   : > { %v7517_v57 = vpop.permute.xlu0 %2071 }
 0x1bc   : > { %6185 = vmatmul.mubr.msk.bf16.gmra.mrb[44].mxu0 %vm1509_vm8, %v7257_v19  ;;  %v7541_v60 = vpop.permute.xlu0 %2081 }
 0x1d2   : > { %v1629_v53 = vpop.f32.mrb[0].mxu0 }
 0x1d3   : > { %v2008_v19 = vmul.f32 %v7488_v4, %v1629_v53  ;;  %v1631_v40 = vpop.f32.mrb[1].mxu0 }
 0x1d4   : > { %v2009_v22 = vmul.f32 %v7488_v4, %v1631_v40  ;;  %v1633_v52 = vpop.f32.mrb[2].mxu0 }
 0x1d5   : > { %v2104_v21 = vadd.f32 %v7506_v17, %v2008_v19  ;;  %v2014_v5 = vmul.f32 %v7484_v3, %v1633_v52  ;;  %v1635_v31 = vpop.f32.mrb[3].mxu0 }
 0x1d6   : > { %v2105_v32 = vadd.f32 %v7506_v17, %v2009_v22  ;;  %v2015_v35 = vmul.f32 %v7484_v3, %v1635_v31 }
 0x1d7   : > { %v2152_v34 = vmax.f32 %v2104_v21, 0.0  ;;  %v2110_v2 = vadd.f32 %v7517_v57, %v2014_v5  ;;  %v7569_v21 = vpop.permute.xlu0 %2091 }
 0x1d8   : > { %v2153_v39 = vmax.f32 %v2105_v32, 0.0  ;;  %v2111_v46 = vadd.f32 %v7517_v57, %v2015_v35 }
 0x1d9   : > { %v2158_v27 = vmax.f32 %v2110_v2, 0.0  ;;  %v2232_v29 = vmul.f32 %v7522_v41, %v2152_v34 }
 0x1da   : > { %v2159_v61 = vmax.f32 %v2111_v46, 0.0  ;;  %v1639_v11 = vpop.f32.mrb[4].mxu0  ;;  %v2233_v50 = vmul.f32 %v7526_v42, %v2153_v39 }
 0x1db   : > { %v2238_v33 = vmul.f32 %v7522_v41, %v2158_v27  ;;  %v2020_v45 = vmul.f32 %v7490_v12, %v1639_v11  ;;  %v1641_v48 = vpop.f32.mrb[5].mxu0 }
 0x1dc   : > { %v2239_v55 = vmul.f32 %v7526_v42, %v2159_v61  ;;  %v2021_v49 = vmul.f32 %v7490_v12, %v1641_v48  ;;  %v1643_v38 = vpop.f32.mrb[6].mxu0  ;;  %v7588_v48 = vpop.permute.xlu1 %2096 }
 0x1dd   : > { %v7537_v56 = vpack.c.bf16 %v2238_v33, %v2232_v29  ;;  %v2116_v51 = vadd.f32 %v7532_v18, %v2020_v45  ;;  %v2026_v58 = vmul.f32 %v7492_v14, %v1643_v38  ;;  %v1645_v1 = vpop.f32.mrb[7].mxu0 }
 0x1de   : > { %v7543_v63 = vpack.c.bf16 %v2239_v55, %v2233_v50  ;;  %v2117_v6 = vadd.f32 %v7532_v18, %v2021_v49  ;;  %v2027_v62 = vmul.f32 %v7492_v14, %v1645_v1 }
 0x1df   : > { %v2164_v36 = vmax.f32 %v2116_v51, 0.0  ;;  %v2122_v7 = vadd.f32 %v7541_v60, %v2026_v58  ;;  %2414 = vrot.lane.b32.xlu1 %v7537_v56, %s6650_s28  ;;  %2363 = vrot.lane.b32.xlu0 %v7537_v56, %s6649_s30 }
 0x1e0   : > { %v2165_v13 = vmax.f32 %v2117_v6, 0.0  ;;  %v2123_v10 = vadd.f32 %v7541_v60, %v2027_v62  ;;  %v7597_v62 = vpop.permute.xlu0 %2101 }
 0x1e1   : > { %v2170_v23 = vmax.f32 %v2122_v7, 0.0  ;;  %v2244_v47 = vmul.f32 %v7522_v41, %v2164_v36 }
 0x1e2   : > { %v2171_v59 = vmax.f32 %v2123_v10, 0.0  ;;  %v1649_v24 = vpop.f32.mrb[8].mxu0  ;;  %v2245_v44 = vmul.f32 %v7526_v42, %v2165_v13 }
 0x1e3   : > { %v2250_v9 = vmul.f32 %v7522_v41, %v2170_v23  ;;  %v2032_v20 = vmul.f32 %v7494_v25, %v1649_v24  ;;  %2516 = vrot.lane.b32.xlu1 %v7537_v56, %s6652_s29  ;;  %2465 = vrot.lane.b32.xlu0 %v7537_v56, %s6651_s12  ;;  %v1651_v15 = vpop.f32.mrb[9].mxu0 }
 0x1e4   : > { %v2251_v53 = vmul.f32 %v7526_v42, %v2171_v59  ;;  %v2033_v19 = vmul.f32 %v7494_v25, %v1651_v15  ;;  %v1653_v16 = vpop.f32.mrb[10].mxu0 }
 0x1e5   : > { %v7565_v40 = vpack.c.bf16 %v2250_v9, %v2244_v47  ;;  %v2128_v22 = vadd.f32 %v7560_v0, %v2032_v20  ;;  %v2038_v26 = vmul.f32 %v7496_v28, %v1653_v16  ;;  %v1655_v52 = vpop.f32.mrb[11].mxu0 }
 0x1e6   : > { %v7571_v5 = vpack.c.bf16 %v2251_v53, %v2245_v44  ;;  %v2129_v31 = vadd.f32 %v7560_v0, %v2033_v19  ;;  %v2039_v32 = vmul.f32 %v7496_v28, %v1655_v52 }
 0x1e7   : > { %v2176_v35 = vmax.f32 %v2128_v22, 0.0  ;;  %v2134_v34 = vadd.f32 %v7569_v21, %v2038_v26  ;;  %2577 = vrot.lane.b32.xlu1 %v7537_v56, %s6640_s24  ;;  %2627 = vrot.lane.b32.xlu0 %v7537_v56, %s6653_s25 }
 0x1e8   : > { %v2177_v2 = vmax.f32 %v2129_v31, 0.0  ;;  %v2135_v39 = vadd.f32 %v7569_v21, %v2039_v32 }
 0x1e9   : > { %v2256_v46 = vmul.f32 %v7522_v41, %v2176_v35  ;;  %v2182_v27 = vmax.f32 %v2134_v34, 0.0 }
 0x1ea   : > { %v2183_v61 = vmax.f32 %v2135_v39, 0.0  ;;  %v1659_v11 = vpop.f32.mrb[12].mxu0  ;;  %v2257_v50 = vmul.f32 %v7526_v42, %v2177_v2 }
 0x1eb   : > { %v2262_v29 = vmul.f32 %v7522_v41, %v2182_v27  ;;  %v2044_v33 = vmul.f32 %v7498_v30, %v1659_v11  ;;  %2678 = vrot.lane.b32.xlu1 %v7537_v56, %s6642_s26  ;;  %2728 = vrot.lane.b32.xlu0 %v7537_v56, %s6643_s27  ;;  %v1661_v45 = vpop.f32.mrb[13].mxu0 }
 0x1ec   : > { %v2263_v55 = vmul.f32 %v7526_v42, %v2183_v61  ;;  %v2045_v49 = vmul.f32 %v7498_v30, %v1661_v45  ;;  %v1663_v38 = vpop.f32.mrb[14].mxu0 }
 0x1ed   : > { %v7593_v51 = vpack.c.bf16 %v2262_v29, %v2256_v46  ;;  %v2140_v58 = vadd.f32 %v7588_v48, %v2044_v33  ;;  %v2050_v1 = vmul.f32 %v7502_v8, %v1663_v38  ;;  %v1665_v6 = vpop.f32.mrb[15].mxu0  ;;  %v7681_v29 = vpop.permute.xlu1 %6427 }
 0x1ee   : > { %v7599_v36 = vpack.c.bf16 %v2263_v55, %v2257_v50  ;;  %v2141_v7 = vadd.f32 %v7588_v48, %v2045_v49  ;;  %v2051_v13 = vmul.f32 %v7502_v8, %v1665_v6 }
 0x1ef   : > { %v2188_v10 = vmax.f32 %v2140_v58, 0.0  ;;  %v2146_v23 = vadd.f32 %v7597_v62, %v2050_v1  ;;  %2416 = vrot.lane.b32.xlu0 %v7543_v63, %s6650_s28  ;;  %2365 = vrot.lane.b32.xlu1 %v7543_v63, %s6649_s30  ;;  %v2212_v1 = vsub.s32 2, %v7500_v54 }
 0x1f0   : > { %10254 = vst [vmem:[#allocation5_spill] sm:$0xff] %v7599_v36  ;;  %v2189_v59 = vmax.f32 %v2141_v7, 0.0  ;;  %v2147_v24 = vadd.f32 %v7597_v62, %v2051_v13 }
 0x1f1   : > { %v2268_v47 = vmul.f32 %v7522_v41, %v2188_v10  ;;  %v2194_v9 = vmax.f32 %v2146_v23, 0.0  ;;  %v2216_v10 = vsub.s32 3, %v7500_v54 }
 0x1f2   : > { %v2269_v20 = vmul.f32 %v7526_v42, %v2189_v59  ;;  %v2195_v15 = vmax.f32 %v2147_v24, 0.0  ;;  %v7693_v59 = vpop.permute.xlu0 %6432 }
 0x1f3   : > { %v2274_v44 = vmul.f32 %v7522_v41, %v2194_v9  ;;  %2518 = vrot.lane.b32.xlu0 %v7543_v63, %s6652_s29  ;;  %2467 = vrot.lane.b32.xlu1 %v7543_v63, %s6651_s12  ;;  %v7701_v9 = vpop.permute.xlu1 %6437 }
 0x1f4   : > { %v2275_v53 = vmul.f32 %v7526_v42, %v2195_v15 }
 0x1f5   : > { %v7617_v19 = vpack.c.bf16 %v2274_v44, %v2268_v47 }
 0x1f6   : > { %v7619_v16 = vpack.c.bf16 %v2275_v53, %v2269_v20  ;;  %v7706_v53 = vrot.slane %v7511_v43, %v2212_v1 }
 0x1f7   : > { %2579 = vrot.lane.b32.xlu0 %v7543_v63, %s6640_s24  ;;  %2629 = vrot.lane.b32.xlu1 %v7543_v63, %s6653_s25 }
 0x1fb   : > { %2680 = vrot.lane.b32.xlu0 %v7543_v63, %s6642_s26  ;;  %2730 = vrot.lane.b32.xlu1 %v7543_v63, %s6643_s27 }
 0x1ff   : > { %2422 = vrot.lane.b32.xlu0 %v7565_v40, %s6650_s28  ;;  %2371 = vrot.lane.b32.xlu1 %v7565_v40, %s6649_s30 }
 0x203   : > { %2524 = vrot.lane.b32.xlu0 %v7565_v40, %s6652_s29  ;;  %2473 = vrot.lane.b32.xlu1 %v7565_v40, %s6651_s12 }
 0x206   : > { %v1775_v41 = vpop.f32.mrb[16].mxu0 }
 0x207   : > { %2635 = vrot.lane.b32.xlu0 %v7565_v40, %s6653_s25  ;;  %2585 = vrot.lane.b32.xlu1 %v7565_v40, %s6640_s24  ;;  %v1777_v42 = vpop.f32.mrb[17].mxu0 }
 0x208   : > { %v1779_v22 = vpop.f32.mrb[18].mxu0 }
 0x209   : > { %v1781_v26 = vpop.f32.mrb[19].mxu0 }
 0x20b   : > { %2736 = vrot.lane.b32.xlu0 %v7565_v40, %s6643_s27  ;;  %2686 = vrot.lane.b32.xlu1 %v7565_v40, %s6642_s26 }
 0x20e   : > { %v1785_v52 = vpop.f32.mrb[20].mxu0 }
 0x20f   : > { %2424 = vrot.lane.b32.xlu1 %v7571_v5, %s6650_s28  ;;  %2373 = vrot.lane.b32.xlu0 %v7571_v5, %s6649_s30  ;;  %v1787_v31 = vpop.f32.mrb[21].mxu0 }
 0x210   : > { %v1789_v32 = vpop.f32.mrb[22].mxu0 }
 0x211   : > { %v7649_v35 = vpop.f32.mrb[23].mxu0 }
 0x213   : > { %2526 = vrot.lane.b32.xlu1 %v7571_v5, %s6652_s29  ;;  %2475 = vrot.lane.b32.xlu0 %v7571_v5, %s6651_s12 }
 0x216   : > { %v7655_v34 = vpop.f32.mrb[24].mxu0 }
 0x217   : > { %2637 = vrot.lane.b32.xlu1 %v7571_v5, %s6653_s25  ;;  %2587 = vrot.lane.b32.xlu0 %v7571_v5, %s6640_s24  ;;  %v7661_v2 = vpop.f32.mrb[25].mxu0 }
 0x218   : > { %v7663_v39 = vpop.f32.mrb[26].mxu0 }
 0x219   : > { %v7665_v46 = vpop.f32.mrb[27].mxu0 }
 0x21b   : > { %2738 = vrot.lane.b32.xlu1 %v7571_v5, %s6643_s27  ;;  %2688 = vrot.lane.b32.xlu0 %v7571_v5, %s6642_s26 }
 0x21e   : > { %v7671_v27 = vpop.f32.mrb[28].mxu0 }
 0x21f   : > { %4221 = vrot.lane.b32.xlu0 %v7593_v51, %s6650_s28  ;;  %4171 = vrot.lane.b32.xlu1 %v7593_v51, %s6649_s30  ;;  %v7677_v61 = vpop.f32.mrb[29].mxu0 }
 0x220   : > { %v7679_v11 = vpop.f32.mrb[30].mxu0 }
 0x221   : > { %v7683_v33 = vpop.f32.mrb[31].mxu0 }
 0x222   : > { %v1702_v45 = vpop.f32.mrb[0].mxu1 }
 0x223   : > { %v1776_v50 = vadd.f32 %v1775_v41, %v1702_v45  ;;  %v1704_v55 = vpop.f32.mrb[1].mxu1  ;;  %4321 = vrot.lane.b32.xlu0 %v7593_v51, %s6652_s29  ;;  %4271 = vrot.lane.b32.xlu1 %v7593_v51, %s6651_s12 }
 0x224   : > { %v1778_v49 = vadd.f32 %v1777_v42, %v1704_v55  ;;  %v1706_v38 = vpop.f32.mrb[2].mxu1 }
 0x225   : > { %v2010_v58 = vmul.f32 %v7488_v4, %v1776_v50  ;;  %v1780_v6 = vadd.f32 %v1779_v22, %v1706_v38  ;;  %v1708_v7 = vpop.f32.mrb[3].mxu1  ;;  %v7710_v22 = vrot.slane %v7511_v43, %v2216_v10 }
 0x226   : > { %v2011_v13 = vmul.f32 %v7488_v4, %v1778_v49  ;;  %v1782_v23 = vadd.f32 %v1781_v26, %v1708_v7 }
 0x227   : > { %v2106_v24 = vadd.f32 %v7506_v17, %v2010_v58  ;;  %v2016_v47 = vmul.f32 %v7484_v3, %v1780_v6  ;;  %4223 = vrot.lane.b32.xlu1 %v7599_v36, %s6650_s28  ;;  %4173 = vrot.lane.b32.xlu0 %v7599_v36, %s6649_s30  ;;  %v7717_v6 = vpop.permute.xlu0 %6442 }
 0x228   : > { %v2107_v20 = vadd.f32 %v7506_v17, %v2011_v13  ;;  %v2017_v15 = vmul.f32 %v7484_v3, %v1782_v23 }
 0x229   : > { %v2154_v44 = vmax.f32 %v2106_v24, 0.0  ;;  %v2112_v41 = vadd.f32 %v7517_v57, %v2016_v47  ;;  %v7722_v24 = vpop.permute.xlu1 %6452 }
 0x22a   : > { %v2155_v42 = vmax.f32 %v2107_v20, 0.0  ;;  %v2113_v26 = vadd.f32 %v7517_v57, %v2017_v15  ;;  %v1712_v45 = vpop.f32.mrb[4].mxu1  ;;  %10255 = vst [vmem:[#allocation6_spill] sm:$0xff] %v7722_v24 }
 0x22b   : > { %v2160_v50 = vmax.f32 %v2112_v41, 0.0  ;;  %v1786_v55 = vadd.f32 %v1785_v52, %v1712_v45  ;;  %v1714_v49 = vpop.f32.mrb[5].mxu1  ;;  %4323 = vrot.lane.b32.xlu1 %v7599_v36, %s6652_s29  ;;  %4273 = vrot.lane.b32.xlu0 %v7599_v36, %s6651_s12  ;;  %v2234_v7 = vmul.f32 %v7706_v53, %v2154_v44 }
 0x22c   : > { %v2161_v38 = vmax.f32 %v2113_v26, 0.0  ;;  %v1788_v58 = vadd.f32 %v1787_v31, %v1714_v49  ;;  %v1716_v1 = vpop.f32.mrb[6].mxu1  ;;  %v2235_v47 = vmul.f32 %v7710_v22, %v2155_v42 }
 0x22d   : > { %v2240_v13 = vmul.f32 %v7706_v53, %v2160_v50  ;;  %v2022_v10 = vmul.f32 %v7490_v12, %v1786_v55  ;;  %v1790_v23 = vadd.f32 %v1789_v32, %v1716_v1  ;;  %v1718_v52 = vpop.f32.mrb[7].mxu1 }
 0x22e   : > { %v2241_v20 = vmul.f32 %v7710_v22, %v2161_v38  ;;  %v2023_v15 = vmul.f32 %v7490_v12, %v1788_v58  ;;  %v1792_v31 = vadd.f32 %v7649_v35, %v1718_v52  ;;  %v7742_v58 = vpop.permute.xlu0 %6447 }
 0x22f   : > { %v7728_v41 = vpack.c.bf16 %v2240_v13, %v2234_v7  ;;  %v2118_v44 = vadd.f32 %v7532_v18, %v2022_v10  ;;  %v2028_v26 = vmul.f32 %v7492_v14, %v1790_v23  ;;  %4229 = vrot.lane.b32.xlu1 %v7617_v19, %s6650_s28  ;;  %4179 = vrot.lane.b32.xlu0 %v7617_v19, %s6649_s30  ;;  %v7749_v10 = vpop.permute.xlu1 %6462 }
 0x230   : > { %v7736_v32 = vpack.c.bf16 %v2241_v20, %v2235_v47  ;;  %v2119_v42 = vadd.f32 %v7532_v18, %v2023_v15  ;;  %v2029_v45 = vmul.f32 %v7492_v14, %v1792_v31  ;;  %10258 = vst [vmem:[#allocation9_spill] sm:$0xff] %v7742_v58  ;;  %10259 = vst [vmem:[#allocation10_spill] sm:$0xff] %v7749_v10  ;;  %v10278_v10 = vmov 0  }
 0x231   : > { %10256 = vst [vmem:[#allocation7_spill] sm:$0xff] %v7728_v41  ;;  %v2166_v50 = vmax.f32 %v2118_v44, 0.0  ;;  %v2124_v35 = vadd.f32 %v7541_v60, %v2028_v26 }
 0x232   : > { %10257 = vst [vmem:[#allocation8_spill] sm:$0xff] %v7736_v32  ;;  %v2167_v55 = vmax.f32 %v2119_v42, 0.0  ;;  %v2125_v49 = vadd.f32 %v7541_v60, %v2029_v45  ;;  %v1722_v38 = vpop.f32.mrb[8].mxu1 }
 0x233   : > { %v2172_v1 = vmax.f32 %v2124_v35, 0.0  ;;  %v1796_v7 = vadd.f32 %v7655_v34, %v1722_v38  ;;  %v1724_v13 = vpop.f32.mrb[9].mxu1  ;;  %4279 = vrot.lane.b32.xlu0 %v7617_v19, %s6651_s12  ;;  %4181 = vrot.lane.b32.xlu1 %v7619_v16, %s6649_s30  ;;  %v2246_v20 = vmul.f32 %v7706_v53, %v2166_v50 }
 0x234   : > { %v2173_v23 = vmax.f32 %v2125_v49, 0.0  ;;  %v1798_v52 = vadd.f32 %v7661_v2, %v1724_v13  ;;  %v1726_v47 = vpop.f32.mrb[10].mxu1  ;;  %v2247_v26 = vmul.f32 %v7710_v22, %v2167_v55  ;;  %v7775_v13 = vpop.permute.xlu1 %6467 }
 0x235   : > { %v2252_v15 = vmul.f32 %v7706_v53, %v2172_v1  ;;  %v2034_v31 = vmul.f32 %v7494_v25, %v1796_v7  ;;  %v1800_v34 = vadd.f32 %v7663_v39, %v1726_v47  ;;  %v1728_v44 = vpop.f32.mrb[11].mxu1  ;;  %v7773_v7 = vpop.permute.xlu0 %6457  ;;  %10263 = vst [vmem:[#allocation14_spill] sm:$0xff] %v7775_v13 }
 0x236   : > { %v2253_v42 = vmul.f32 %v7710_v22, %v2173_v23  ;;  %v2035_v45 = vmul.f32 %v7494_v25, %v1798_v52  ;;  %v1802_v35 = vadd.f32 %v7665_v46, %v1728_v44  ;;  %10262 = vst [vmem:[#allocation13_spill] sm:$0xff] %v7773_v7 }
 0x237   : > { %v7760_v49 = vpack.c.bf16 %v2252_v15, %v2246_v20  ;;  %v2130_v2 = vadd.f32 %v7560_v0, %v2034_v31  ;;  %v2040_v50 = vmul.f32 %v7496_v28, %v1800_v34  ;;  %4231 = vrot.lane.b32.xlu0 %v7619_v16, %s6650_s28  ;;  %4281 = vrot.lane.b32.xlu1 %v7619_v16, %s6651_s12 }
 0x238   : > { %v7768_v39 = vpack.c.bf16 %v2253_v42, %v2247_v26  ;;  %v2131_v55 = vadd.f32 %v7560_v0, %v2035_v45  ;;  %v2041_v38 = vmul.f32 %v7496_v28, %v1802_v35 }
 0x239   : > { %10260 = vst [vmem:[#allocation11_spill] sm:$0xff] %v7760_v49  ;;  %v2178_v1 = vmax.f32 %v2130_v2, 0.0  ;;  %v2136_v46 = vadd.f32 %v7569_v21, %v2040_v50 }
 0x23a   : > { %10261 = vst [vmem:[#allocation12_spill] sm:$0xff] %v7768_v39  ;;  %v2179_v23 = vmax.f32 %v2131_v55, 0.0  ;;  %v2137_v52 = vadd.f32 %v7569_v21, %v2041_v38  ;;  %v1732_v47 = vpop.f32.mrb[12].mxu1 }
 0x23b   : > { %v2258_v20 = vmul.f32 %v7706_v53, %v2178_v1  ;;  %v2184_v15 = vmax.f32 %v2136_v46, 0.0  ;;  %v1806_v31 = vadd.f32 %v7671_v27, %v1732_v47  ;;  %v1734_v34 = vpop.f32.mrb[13].mxu1  ;;  %2418 = vrot.lane.b32.xlu1 %v7728_v41, %s6650_s28  ;;  %2367 = vrot.lane.b32.xlu0 %v7728_v41, %s6649_s30 }
 0x23c   : > { %v2259_v44 = vmul.f32 %v7710_v22, %v2179_v23  ;;  %v2185_v26 = vmax.f32 %v2137_v52, 0.0  ;;  %v1808_v42 = vadd.f32 %v7677_v61, %v1734_v34  ;;  %v1736_v45 = vpop.f32.mrb[14].mxu1  ;;  %v7802_v52 = vpop.permute.xlu1 %6482 }
 0x23d   : > { %v2264_v35 = vmul.f32 %v7706_v53, %v2184_v15  ;;  %v2046_v2 = vmul.f32 %v7498_v30, %v1806_v31  ;;  %v1810_v50 = vadd.f32 %v7679_v11, %v1736_v45  ;;  %v1738_v27 = vpop.f32.mrb[15].mxu1  ;;  %v7800_v11 = vpop.permute.xlu0 %6472  ;;  %10266 = vst [vmem:[#allocation17_spill] sm:$0xff] %v7802_v52 }
 0x23e   : > { %v2265_v55 = vmul.f32 %v7710_v22, %v2185_v26  ;;  %v2047_v38 = vmul.f32 %v7498_v30, %v1808_v42  ;;  %v1812_v1 = vadd.f32 %v7683_v33, %v1738_v27  ;;  %10265 = vst [vmem:[#allocation16_spill] sm:$0xff] %v7800_v11 }
 0x23f   : > { %v7792_v46 = vpack.c.bf16 %v2264_v35, %v2258_v20  ;;  %v2142_v23 = vadd.f32 %v7588_v48, %v2046_v2  ;;  %v2052_v61 = vmul.f32 %v7502_v8, %v1810_v50  ;;  %2520 = vrot.lane.b32.xlu1 %v7728_v41, %s6652_s29  ;;  %2469 = vrot.lane.b32.xlu0 %v7728_v41, %s6651_s12 }
 0x240   : > { %v7804_v47 = vpack.c.bf16 %v2265_v55, %v2259_v44  ;;  %v2143_v33 = vadd.f32 %v7588_v48, %v2047_v38  ;;  %v2053_v20 = vmul.f32 %v7502_v8, %v1812_v1  ;;  %v7819_v27 = vpop.permute.xlu1 %6487 }
 0x241   : > { %10264 = vst [vmem:[#allocation15_spill] sm:$0xff] %v7792_v46  ;;  %v2190_v15 = vmax.f32 %v2142_v23, 0.0  ;;  %v2148_v31 = vadd.f32 %v7597_v62, %v2052_v61  ;;  %v7817_v50 = vpop.permute.xlu0 %6477  ;;  %10269 = vst [vmem:[#allocation20_spill] sm:$0xff] %v7819_v27 }
 0x242   : > { %10267 = vst [vmem:[#allocation18_spill] sm:$0xff] %v7804_v47  ;;  %v2191_v34 = vmax.f32 %v2143_v33, 0.0  ;;  %v2149_v26 = vadd.f32 %v7597_v62, %v2053_v20  ;;  %10268 = vst [vmem:[#allocation19_spill] sm:$0xff] %v7817_v50  ;;  %v2224_v50 = vsub.s32 5, %v7500_v54 }
 0x243   : > { %v2270_v42 = vmul.f32 %v7706_v53, %v2190_v15  ;;  %v2196_v45 = vmax.f32 %v2148_v31, 0.0  ;;  %2581 = vrot.lane.b32.xlu1 %v7728_v41, %s6640_s24  ;;  %2631 = vrot.lane.b32.xlu0 %v7728_v41, %s6653_s25 }
 0x244   : > { %v2271_v44 = vmul.f32 %v7710_v22, %v2191_v34  ;;  %v2197_v35 = vmax.f32 %v2149_v26, 0.0  ;;  %v7836_v23 = vpop.permute.xlu1 %6497 }
 0x245   : > { %v2276_v2 = vmul.f32 %v7706_v53, %v2196_v45  ;;  %v7834_v53 = vpop.permute.xlu0 %6492  ;;  %10273 = vst [vmem:[#allocation24_spill] sm:$0xff] %v7836_v23  ;;  %v7891_v23 = vld [vmem:[%s10190_s3 + $0x4] ss:$12 sps:$4 sm:$0xff]  }
 0x246   : > { %v2277_v55 = vmul.f32 %v7710_v22, %v2197_v35  ;;  %10272 = vst [vmem:[#allocation23_spill] sm:$0xff] %v7834_v53  ;;  %10276 = vst [vmem:[#allocation27_spill] sm:$0xff] %v7891_v23  ;;  %3358 = vmatprep.mubr.bf16.mxu1 %v7891_v23  ;;  %3570 = vmatprep.mubr.bf16.mxu0 %v7891_v23 }
 0x247   : > { %v7822_v38 = vpack.c.bf16 %v2276_v2, %v2270_v42  ;;  %2682 = vrot.lane.b32.xlu1 %v7728_v41, %s6642_s26  ;;  %2732 = vrot.lane.b32.xlu0 %v7728_v41, %s6643_s27  ;;  %v6429_v42 = vunpack.i.l.bf16 %v7681_v29  ;;  %v2220_v41 = vsub.s32 4, %v7500_v54 }
 0x248   : > { %v7828_v1 = vpack.c.bf16 %v2277_v55, %v2271_v44 }
 0x249   : > { %10270 = vst [vmem:[#allocation21_spill] sm:$0xff] %v7822_v38  ;;  %v7944_v54 = vrot.slane %v7511_v43, %v2220_v41 }
 0x24a   : > { %10271 = vst [vmem:[#allocation22_spill] sm:$0xff] %v7828_v1 }
 0x24b   : > { %2830 = vrot.lane.b32.xlu1 %v7736_v32, %s6650_s28  ;;  %2780 = vrot.lane.b32.xlu0 %v7736_v32, %s6649_s30 }
 0x24f   : > { %2880 = vrot.lane.b32.xlu1 %v7736_v32, %s6651_s12  ;;  %2930 = vrot.lane.b32.xlu0 %v7736_v32, %s6652_s29 }
 0x251   : > { %v7842_v22 = vpop.permute.xlu1 %2414  ;;  %v2364_v61 = vpop.permute.xlu0 %2363 }
 0x252   : > { %v2378_v2 = vsel %vm2377_vm9, %v6429_v42, %v2364_v61 }
 0x253   : > { %3140 = vrot.lane.b32.xlu1 %v7736_v32, %s6643_s27  ;;  %2990 = vrot.lane.b32.xlu0 %v7736_v32, %s6640_s24 }
 0x255   : > { %v7848_v33 = vpop.permute.xlu1 %2516  ;;  %v7850_v20 = vpop.permute.xlu0 %2465 }
 0x257   : > { %2375 = vrot.lane.b32.xlu1 %v7760_v49, %s6649_s30  ;;  %3040 = vrot.lane.b32.xlu0 %v7736_v32, %s6653_s25 }
 0x259   : > { %v7856_v15 = vpop.permute.xlu1 %2577  ;;  %v7858_v31 = vpop.permute.xlu0 %2627 }
 0x25b   : > { %2477 = vrot.lane.b32.xlu1 %v7760_v49, %s6651_s12  ;;  %3090 = vrot.lane.b32.xlu0 %v7736_v32, %s6642_s26 }
 0x25d   : > { %v7864_v34 = vpop.permute.xlu1 %2678  ;;  %v7866_v26 = vpop.permute.xlu0 %2728 }
 0x25e   : > { %10274 = vst [vmem:[#allocation25_spill] sm:$0xff] %v7866_v26 }
 0x25f   : > { %2589 = vrot.lane.b32.xlu1 %v7760_v49, %s6640_s24  ;;  %2426 = vrot.lane.b32.xlu0 %v7760_v49, %s6650_s28 }
 0x261   : > { %v7873_v45 = vpop.permute.xlu0 %2416  ;;  %v7875_v44 = vpop.permute.xlu1 %2365 }
 0x262   : > { %10275 = vst [vmem:[#allocation26_spill] sm:$0xff] %v7875_v44  ;;  %v2379_v35 = vsel %vm2377_vm9, %v2364_v61, %v7875_v44 }
 0x263   : > { %3326 = vmatprep.subr.bf16.mxu1 %v2379_v35  ;;  %2690 = vrot.lane.b32.xlu1 %v7760_v49, %s6642_s26 }
 0x264   : > { %2528 = vrot.lane.b32.xlu0 %v7760_v49, %s6652_s29  ;;  %3327 = vmatpush1.bf16.msra.mxu1 %v2378_v2 }
 0x265   : > { %v7884_v55 = vpop.permute.xlu0 %2518  ;;  %v7886_v37 = vpop.permute.xlu1 %2467 }
 0x267   : > { %2788 = vrot.lane.b32.xlu1 %v7768_v39, %s6649_s30 }
 0x268   : > { %2639 = vrot.lane.b32.xlu0 %v7760_v49, %s6653_s25 }
 0x269   : > { %v7898_v61 = vpop.permute.xlu0 %2579  ;;  %v7900_v42 = vpop.permute.xlu1 %2629 }
 0x26b   : > { %2938 = vrot.lane.b32.xlu1 %v7768_v39, %s6652_s29 }
 0x26c   : > { %2740 = vrot.lane.b32.xlu0 %v7760_v49, %s6643_s27 }
 0x26d   : > { %v7907_v35 = vpop.permute.xlu0 %2680  ;;  %v7909_v2 = vpop.permute.xlu1 %2730 }
 0x26e   : > { %10277 = vst [vmem:[#allocation28_spill] sm:$0xff] %v7909_v2 }
 0x26f   : > { %4329 = vrot.lane.b32.xlu1 %v7617_v19, %s6652_s29 }
 0x270   : > { %2838 = vrot.lane.b32.xlu0 %v7768_v39, %s6650_s28 }
 0x271   : > { %v7915_v53 = vpop.permute.xlu0 %2422  ;;  %v2372_v27 = vpop.permute.xlu1 %2371 }
 0x273   : > { %6512 = vrot.lane.b32.xlu1 %v10278_v10, %s6653_s25 }
 0x274   : > { %2888 = vrot.lane.b32.xlu0 %v7768_v39, %s6651_s12 }
 0x275   : > { %v7921_v7 = vpop.permute.xlu0 %2524  ;;  %v7923_v24 = vpop.permute.xlu1 %2473 }
 0x277   : > { %v1921_v58 = vpop.f32.mrb[32].mxu0  ;;  %4433 = vrot.lane.b32.xlu1 %v7599_v36, %s6653_s25 }
 0x278   : > { %v2012_v49 = vmul.f32 %v7488_v4, %v1921_v58  ;;  %v1923_v32 = vpop.f32.mrb[33].mxu0  ;;  %2998 = vrot.lane.b32.xlu0 %v7768_v39, %s6640_s24 }
 0x279   : > { %v2013_v52 = vmul.f32 %v7488_v4, %v1923_v32  ;;  %v1925_v23 = vpop.f32.mrb[34].mxu0  ;;  %v7933_v11 = vpop.permute.xlu0 %2635 }
 0x27a   : > { %v2108_v44 = vadd.f32 %v7506_v17, %v2012_v49  ;;  %v2018_v1 = vmul.f32 %v7484_v3, %v1925_v23  ;;  %v7937_v47 = vpop.permute.xlu1 %2585  ;;  %v1927_v58 = vpop.f32.mrb[35].mxu0  ;;  %v7950_v23 = vrot.slane %v7511_v43, %v2224_v50 }
 0x27b   : > { %v2109_v13 = vadd.f32 %v7506_v17, %v2013_v52  ;;  %v2019_v26 = vmul.f32 %v7484_v3, %v1927_v58  ;;  %3148 = vrot.lane.b32.xlu1 %v7768_v39, %s6643_s27 }
 0x27c   : > { %v2156_v4 = vmax.f32 %v2108_v44, 0.0  ;;  %v2114_v32 = vadd.f32 %v7517_v57, %v2018_v1  ;;  %3048 = vrot.lane.b32.xlu0 %v7768_v39, %s6653_s25  ;;  %v6430_v44 = vunpack.i.h.bf16 %v7681_v29 }
 0x27d   : > { %v2157_v49 = vmax.f32 %v2109_v13, 0.0  ;;  %v2115_v17 = vadd.f32 %v7517_v57, %v2019_v26  ;;  %v7953_v52 = vpop.permute.xlu0 %2736 }
 0x27e   : > { %10279 = vst [vmem:[#allocation29_spill] sm:$0xff] %v7953_v52  ;;  %v2162_v3 = vmax.f32 %v2114_v32, 0.0  ;;  %v7955_v58 = vpop.permute.xlu1 %2686  ;;  %v2236_v1 = vmul.f32 %v7944_v54, %v2156_v4  ;;  %v2381_v52 = vsel %vm2377_vm9, %v6430_v44, %v2372_v27 }
 0x27f   : > { %10280 = vst [vmem:[#allocation30_spill] sm:$0xff] %v7955_v58  ;;  %v2163_v41 = vmax.f32 %v2115_v17, 0.0  ;;  %v1931_v2 = vpop.f32.mrb[36].mxu0  ;;  %4385 = vrot.lane.b32.xlu1 %v7792_v46, %s6640_s24  ;;  %v2237_v57 = vmul.f32 %v7950_v23, %v2157_v49 }
 0x280   : > { %v2242_v13 = vmul.f32 %v7944_v54, %v2162_v3  ;;  %v2024_v43 = vmul.f32 %v7490_v12, %v1931_v2  ;;  %v1933_v50 = vpop.f32.mrb[37].mxu0  ;;  %3098 = vrot.lane.b32.xlu0 %v7768_v39, %s6642_s26 }
 0x281   : > { %v2243_v26 = vmul.f32 %v7950_v23, %v2163_v41  ;;  %v2025_v29 = vmul.f32 %v7490_v12, %v1933_v50  ;;  %v1935_v32 = vpop.f32.mrb[38].mxu0  ;;  %v7968_v17 = vpop.permute.xlu0 %2373 }
 0x282   : > { %v7971_v4 = vpack.c.bf16 %v2242_v13, %v2236_v1  ;;  %v2120_v3 = vadd.f32 %v7532_v18, %v2024_v43  ;;  %v2030_v2 = vmul.f32 %v7492_v14, %v1935_v32  ;;  %v7975_v58 = vpop.permute.xlu1 %2424  ;;  %v1937_v39 = vpop.f32.mrb[39].mxu0  ;;  %v2382_v49 = vsel %vm2377_vm9, %v2372_v27, %v7968_v17 }
 0x283   : > { %v7979_v41 = vpack.c.bf16 %v2243_v26, %v2237_v57  ;;  %v2121_v12 = vadd.f32 %v7532_v18, %v2025_v29  ;;  %v2031_v50 = vmul.f32 %v7492_v14, %v1937_v39  ;;  %3328 = vmatprep.subr.bf16.mxu1 %v2382_v49  ;;  %4431 = vrot.lane.b32.xlu1 %v7593_v51, %s6653_s25  ;;  %v6434_v18 = vunpack.i.l.bf16 %v7693_v59 }
 0x284   : > { %10281 = vst [vmem:[#allocation31_spill] sm:$0xff] %v7971_v4  ;;  %v2168_v44 = vmax.f32 %v2120_v3, 0.0  ;;  %v2126_v1 = vadd.f32 %v7541_v60, %v2030_v2  ;;  %6502 = vrot.lane.b32.xlu0 %v10278_v10, %s6652_s29  ;;  %3329 = vmatpush1.bf16.msra.mxu1 %v2381_v52  ;;  %v2430_v27 = vsel %vm2428_vm10, %v7842_v22, %v7873_v45 }
 0x285   : > { %10282 = vst [vmem:[#allocation32_spill] sm:$0xff] %v7979_v41  ;;  %v2169_v13 = vmax.f32 %v2121_v12, 0.0  ;;  %v2127_v14 = vadd.f32 %v7541_v60, %v2031_v50  ;;  %3330 = vmatprep.subr.bf16.mxu1 %v2430_v27  ;;  %v7993_v39 = vpop.permute.xlu0 %2475  ;;  %v2429_v52 = vsel %vm2428_vm10, %v6434_v18, %v7842_v22  ;;  %v2433_v32 = vsel %vm2428_vm10, %v7915_v53, %v7975_v58 }
 0x286   : > { %v2174_v43 = vmax.f32 %v2126_v1, 0.0  ;;  %v7995_v57 = vpop.permute.xlu1 %2526  ;;  %v2248_v60 = vmul.f32 %v7944_v54, %v2168_v44  ;;  %v6435_v12 = vunpack.i.h.bf16 %v7693_v59 }
 0x287   : > { %v2175_v26 = vmax.f32 %v2127_v14, 0.0  ;;  %v1941_v29 = vpop.f32.mrb[40].mxu0  ;;  %4441 = vrot.lane.b32.xlu1 %v7619_v16, %s6653_s25  ;;  %v2249_v50 = vmul.f32 %v7950_v23, %v2169_v13 }
 0x288   : > { %v2254_v3 = vmul.f32 %v7944_v54, %v2174_v43  ;;  %v2036_v2 = vmul.f32 %v7494_v25, %v1941_v29  ;;  %v1943_v49 = vpop.f32.mrb[41].mxu0  ;;  %4331 = vrot.lane.b32.xlu0 %v7619_v16, %s6652_s29  ;;  %3331 = vmatpush1.bf16.msra.mxu1 %v2429_v52 }
 0x289   : > { %v2255_v22 = vmul.f32 %v7950_v23, %v2175_v26  ;;  %v2037_v1 = vmul.f32 %v7494_v25, %v1943_v49  ;;  %v1945_v27 = vpop.f32.mrb[42].mxu0  ;;  %3332 = vmatprep.subr.bf16.mxu1 %v2433_v32  ;;  %v8013_v44 = vpop.permute.xlu0 %2587  ;;  %v2432_v26 = vsel %vm2428_vm10, %v6435_v12, %v7915_v53 }
 0x28a   : > { %v8015_v18 = vpack.c.bf16 %v2254_v3, %v2248_v60  ;;  %v2132_v14 = vadd.f32 %v7560_v0, %v2036_v2  ;;  %v2042_v43 = vmul.f32 %v7496_v28, %v1945_v27  ;;  %v8019_v29 = vpop.permute.xlu1 %2637  ;;  %v1947_v52 = vpop.f32.mrb[43].mxu0  ;;  %v2481_v3 = vsel %vm2479_vm11, %v7850_v20, %v7886_v37 }
 0x28b   : > { %v8021_v59 = vpack.c.bf16 %v2255_v22, %v2249_v50  ;;  %v2133_v13 = vadd.f32 %v7560_v0, %v2037_v1  ;;  %v2043_v25 = vmul.f32 %v7496_v28, %v1947_v52  ;;  %4393 = vrot.lane.b32.xlu1 %v7822_v38, %s6640_s24  ;;  %v6439_v0 = vunpack.i.l.bf16 %v7701_v9 }
 0x28c   : > { %10283 = vst [vmem:[#allocation33_spill] sm:$0xff] %v8015_v18  ;;  %v2180_v32 = vmax.f32 %v2132_v14, 0.0  ;;  %v2138_v60 = vadd.f32 %v7569_v21, %v2042_v43  ;;  %6507 = vrot.lane.b32.xlu0 %v10278_v10, %s6640_s24  ;;  %3333 = vmatpush1.bf16.msra.mxu1 %v2432_v26 }
 0x28d   : > { %10284 = vst [vmem:[#allocation34_spill] sm:$0xff] %v8021_v59  ;;  %v2181_v28 = vmax.f32 %v2133_v13, 0.0  ;;  %v2139_v2 = vadd.f32 %v7569_v21, %v2043_v25  ;;  %3334 = vmatprep.subr.bf16.mxu1 %v2481_v3  ;;  %v8037_v49 = vpop.permute.xlu0 %2688  ;;  %v2480_v14 = vsel %vm2479_vm11, %v6439_v0, %v7850_v20  ;;  %v2484_v13 = vsel %vm2479_vm11, %v7923_v24, %v7993_v39 }
 0x28e   : > { %v2260_v53 = vmul.f32 %v7944_v54, %v2180_v32  ;;  %v2186_v12 = vmax.f32 %v2138_v60, 0.0  ;;  %v8040_v50 = vpop.permute.xlu1 %2738  ;;  %v6440_v25 = vunpack.i.h.bf16 %v7701_v9 }
 0x28f   : > { %v2261_v22 = vmul.f32 %v7950_v23, %v2181_v28  ;;  %v2187_v1 = vmax.f32 %v2139_v2, 0.0  ;;  %v1951_v27 = vpop.f32.mrb[44].mxu0  ;;  %4439 = vrot.lane.b32.xlu1 %v7617_v19, %s6653_s25 }
 0x290   : > { %v2266_v21 = vmul.f32 %v7944_v54, %v2186_v12  ;;  %v2048_v43 = vmul.f32 %v7498_v30, %v1951_v27  ;;  %v1953_v52 = vpop.f32.mrb[45].mxu0  ;;  %4383 = vrot.lane.b32.xlu0 %v7599_v36, %s6640_s24  ;;  %3335 = vmatpush1.bf16.msra.mxu1 %v2480_v14 }
 0x291   : > { %v2267_v26 = vmul.f32 %v7950_v23, %v2187_v1  ;;  %v2049_v32 = vmul.f32 %v7498_v30, %v1953_v52  ;;  %v1955_v20 = vpop.f32.mrb[46].mxu0  ;;  %3336 = vmatprep.subr.bf16.mxu1 %v2484_v13  ;;  %v8057_v60 = vpop.permute.xlu0 %4221 }
 0x292   : > { %10285 = vst [vmem:[#allocation35_spill] sm:$0xff] %v8057_v60  ;;  %v8059_v3 = vpack.c.bf16 %v2266_v21, %v2260_v53  ;;  %v2144_v0 = vadd.f32 %v7588_v48, %v2048_v43  ;;  %v2054_v28 = vmul.f32 %v7502_v8, %v1955_v20  ;;  %v8063_v2 = vpop.permute.xlu1 %4171  ;;  %v1957_v12 = vpop.f32.mrb[47].mxu0  ;;  %v2483_v53 = vsel %vm2479_vm11, %v6440_v25, %v7923_v24 }
 0x293   : > { %v8065_v27 = vpack.c.bf16 %v2267_v26, %v2261_v22  ;;  %v2145_v9 = vadd.f32 %v7588_v48, %v2049_v32  ;;  %v2055_v30 = vmul.f32 %v7502_v8, %v1957_v12  ;;  %2782 = vrot.lane.b32.xlu1 %v7971_v4, %s6649_s30  ;;  %v2532_v22 = vsel %vm2530_vm12, %v7848_v33, %v7884_v55 }
 0x294   : > { %v2192_v1 = vmax.f32 %v2144_v0, 0.0  ;;  %v2150_v14 = vadd.f32 %v7597_v62, %v2054_v28  ;;  %4381 = vrot.lane.b32.xlu0 %v7593_v51, %s6640_s24  ;;  %3337 = vmatpush1.bf16.msra.mxu1 %v2483_v53  ;;  %v6444_v48 = vunpack.i.l.bf16 %v7717_v6  ;;  %v6445_v0 = vunpack.i.h.bf16 %v7717_v6 }
 0x295   : > { %v2193_v8 = vmax.f32 %v2145_v9, 0.0  ;;  %v2151_v21 = vadd.f32 %v7597_v62, %v2055_v30  ;;  %3338 = vmatprep.subr.bf16.mxu1 %v2532_v22  ;;  %v8081_v43 = vpop.permute.xlu0 %4321  ;;  %v2535_v62 = vsel %vm2530_vm12, %v7921_v7, %v7995_v57 }
 0x296   : > { %10286 = vst [vmem:[#allocation36_spill] sm:$0xff] %v8081_v43  ;;  %v2272_v24 = vmul.f32 %v7944_v54, %v2192_v1  ;;  %v2198_v52 = vmax.f32 %v2150_v14, 0.0  ;;  %v8084_v13 = vpop.permute.xlu1 %4271  ;;  %v2531_v32 = vsel %vm2530_vm12, %v6444_v48, %v7848_v33  ;;  %v2534_v30 = vsel %vm2530_vm12, %v6445_v0, %v7921_v7 }
 0x297   : > { %10287 = vst [vmem:[#allocation37_spill] sm:$0xff] %v8084_v13  ;;  %v2273_v25 = vmul.f32 %v7950_v23, %v2193_v8  ;;  %v2199_v26 = vmax.f32 %v2151_v21, 0.0  ;;  %2882 = vrot.lane.b32.xlu1 %v7971_v4, %s6651_s12 }
 0x298   : > { %v2278_v20 = vmul.f32 %v7944_v54, %v2198_v52  ;;  %4391 = vrot.lane.b32.xlu0 %v7619_v16, %s6640_s24  ;;  %3339 = vmatpush1.bf16.msra.mxu1 %v2531_v32  ;;  %v2593_v52 = vsel %vm537_vm0, %v7856_v15, %v7898_v61 }
 0x299   : > { %v2279_v28 = vmul.f32 %v7950_v23, %v2199_v26  ;;  %3340 = vmatprep.subr.bf16.mxu1 %v2535_v62  ;;  %v8099_v12 = vpop.permute.xlu0 %4173 }
 0x29a   : > { %v8101_v9 = vpack.c.bf16 %v2278_v20, %v2272_v24  ;;  %v8103_v33 = vpop.permute.xlu1 %4223 }
 0x29b   : > { %10288 = vst [vmem:[#allocation38_spill] sm:$0xff] %v8103_v33  ;;  %v8105_v54 = vpack.c.bf16 %v2279_v28, %v2273_v25  ;;  %2992 = vrot.lane.b32.xlu1 %v7971_v4, %s6640_s24 }
 0x29c   : > { %4389 = vrot.lane.b32.xlu0 %v7617_v19, %s6640_s24  ;;  %3341 = vmatpush1.bf16.msra.mxu1 %v2534_v30 }
 0x29d   : > { %3342 = vmatprep.subr.bf16.mxu1 %v7543_v63  ;;  %v8114_v6 = vpop.permute.xlu0 %4273 }
 0x29e   : > { %10289 = vst [vmem:[#allocation39_spill] sm:$0xff] %v8114_v6  ;;  %v8116_v23 = vpop.permute.xlu1 %4323 }
 0x29f   : > { %10290 = vst [vmem:[#allocation40_spill] sm:$0xff] %v8116_v23  ;;  %3042 = vrot.lane.b32.xlu1 %v7971_v4, %s6653_s25 }
 0x2a0   : > { %6517 = vrot.lane.b32.xlu0 %v10278_v10, %s6642_s26  ;;  %3343 = vmatpush1.bf16.msra.mxu1 %v7537_v56 }
 0x2a1   : > { %3344 = vmatprep.subr.bf16.mxu1 %v7571_v5  ;;  %v8124_v7 = vpop.permute.xlu0 %4179 }
 0x2a2   : > { %10291 = vst [vmem:[#allocation41_spill] sm:$0xff] %v8124_v7  ;;  %v8126_v53 = vpop.permute.xlu1 %4229  ;;  %v10311_v7 = vld [vmem:[#allocation26_spill] sm:$0xff] }
 0x2a3   : > { %10292 = vst [vmem:[#allocation42_spill] sm:$0xff] %v8126_v53  ;;  %3092 = vrot.lane.b32.xlu1 %v7971_v4, %s6642_s26 }
 0x2a4   : > { %4435 = vrot.lane.b32.xlu0 %v7792_v46, %s6653_s25  ;;  %3345 = vmatpush1.bf16.msra.mxu1 %v7565_v40 }
 0x2a5   : > { %v8133_v63 = vpop.permute.xlu0 %4279 }
 0x2a6   : > { %10293 = vst [vmem:[#allocation43_spill] sm:$0xff] %v8133_v63  ;;  %v8135_v1 = vpop.permute.xlu1 %4181 }
 0x2a7   : > { %10294 = vst [vmem:[#allocation44_spill] sm:$0xff] %v8135_v1  ;;  %2932 = vrot.lane.b32.xlu1 %v7971_v4, %s6652_s29 }
 0x2a8   : > { %4443 = vrot.lane.b32.xlu0 %v7822_v38, %s6653_s25 }
 0x2a9   : > { %v8141_v56 = vpop.permute.xlu0 %4231 }
 0x2aa   : > { %10295 = vst [vmem:[#allocation45_spill] sm:$0xff] %v8141_v56  ;;  %v8143_v5 = vpop.permute.xlu1 %4281 }
 0x2ab   : > { %10296 = vst [vmem:[#allocation46_spill] sm:$0xff] %v8143_v5  ;;  %2834 = vrot.lane.b32.xlu1 %v7979_v41, %s6650_s28  ;;  %v2596_v5 = vsel %vm537_vm0, %v7937_v47, %v8013_v44  ;;  %v2644_v47 = vsel %vm2643_vm13, %v7858_v31, %v7900_v42  ;;  %v2647_v31 = vsel %vm2643_vm13, %v7933_v11, %v8019_v29 }
 0x2ac   : > { %4483 = vrot.lane.b32.xlu0 %v7599_v36, %s6642_s26  ;;  %v2694_v11 = vsel %vm639_vm2, %v7864_v34, %v7907_v35 }
 0x2ad   : > { %v8149_v40 = vpop.permute.xlu0 %2367 }
 0x2ae   : > { %v8151_v14 = vpop.permute.xlu1 %2418  ;;  %v2380_v1 = vsel %vm2377_vm9, %v10311_v7, %v8149_v40 }
 0x2af   : > { %2994 = vrot.lane.b32.xlu1 %v7979_v41, %s6640_s24 }
 0x2b0   : > { %2832 = vrot.lane.b32.xlu0 %v7971_v4, %s6650_s28 }
 0x2b1   : > { %v8157_v22 = vpop.permute.xlu0 %2469 }
 0x2b2   : > { %v8159_v48 = vpop.permute.xlu1 %2520 }
 0x2b3   : > { %3094 = vrot.lane.b32.xlu1 %v7979_v41, %s6642_s26 }
 0x2b4   : > { %3142 = vrot.lane.b32.xlu0 %v7971_v4, %s6643_s27  ;;  %v10303_v4 = vld [vmem:[#allocation14_spill] sm:$0xff] }
 0x2b5   : > { %v8165_v8 = vpop.permute.xlu0 %2631  ;;  %v6470_v33 = vunpack.i.h.bf16 %v10303_v4 }
 0x2b6   : > { %v8167_v21 = vpop.permute.xlu1 %2581  ;;  %v2645_v13 = vsel %vm2643_vm13, %v7900_v42, %v8165_v8 }
 0x2b7   : > { %2840 = vrot.lane.b32.xlu1 %v8015_v18, %s6650_s28  ;;  %v2594_v24 = vsel %vm537_vm0, %v7898_v61, %v8167_v21 }
 0x2b8   : > { %3346 = vmatprep.subr.bf16.mxu1 %v2594_v24  ;;  %2784 = vrot.lane.b32.xlu0 %v7979_v41, %s6649_s30 }
 0x2b9   : > { %3347 = vmatpush1.bf16.msra.mxu1 %v2593_v52  ;;  %v8179_v25 = vpop.permute.xlu0 %2732 }
 0x2ba   : > { %v8181_v26 = vpop.permute.xlu1 %2682 }
 0x2bb   : > { %2890 = vrot.lane.b32.xlu1 %v8015_v18, %s6651_s12  ;;  %v2695_v42 = vsel %vm639_vm2, %v7907_v35, %v8181_v26  ;;  %v8300_v35 = vld [vmem:[%s10190_s3] ss:$12 sps:$4 sm:$0xff]  }
 0x2bc   : > { %2884 = vrot.lane.b32.xlu0 %v7979_v41, %s6651_s12 }
 0x2bd   : > { %v8187_v32 = vpop.permute.xlu0 %2780 }
 0x2be   : > { %v8189_v20 = vpop.permute.xlu1 %2830 }
 0x2bf   : > { %3000 = vrot.lane.b32.xlu1 %v8015_v18, %s6640_s24 }
 0x2c0   : > { %2934 = vrot.lane.b32.xlu0 %v7979_v41, %s6652_s29 }
 0x2c1   : > { %v8195_v15 = vpop.permute.xlu0 %2930 }
 0x2c2   : > { %v8197_v61 = vpop.permute.xlu1 %2880 }
 0x2c3   : > { %4485 = vrot.lane.b32.xlu1 %v7792_v46, %s6642_s26 }
 0x2c4   : > { %3044 = vrot.lane.b32.xlu0 %v7979_v41, %s6653_s25 }
 0x2c5   : > { %v8203_v62 = vpop.permute.xlu0 %2990 }
 0x2c6   : > { %v8205_v0 = vpop.permute.xlu1 %3140 }
 0x2c7   : > { %3050 = vrot.lane.b32.xlu1 %v8015_v18, %s6653_s25 }
 0x2c8   : > { %2790 = vrot.lane.b32.xlu0 %v8015_v18, %s6649_s30 }
 0x2c9   : > { %v8211_v28 = vpop.permute.xlu0 %3040 }
 0x2ca   : > { %v8213_v30 = vpop.permute.xlu1 %2375 }
 0x2cb   : > { %3100 = vrot.lane.b32.xlu1 %v8015_v18, %s6642_s26  ;;  %v2383_v7 = vsel %vm2377_vm9, %v7968_v17, %v8213_v30  ;;  %v2431_v17 = vsel %vm2428_vm10, %v7873_v45, %v8151_v14 }
 0x2cc   : > { %3150 = vrot.lane.b32.xlu0 %v8015_v18, %s6643_s27 }
 0x2cd   : > { %v8219_v24 = vpop.permute.xlu0 %3090 }
 0x2ce   : > { %v8221_v52 = vpop.permute.xlu1 %2477 }
 0x2cf   : > { %2792 = vrot.lane.b32.xlu1 %v8021_v59, %s6649_s30 }
 0x2d0   : > { %2940 = vrot.lane.b32.xlu0 %v8015_v18, %s6652_s29 }
 0x2d1   : > { %v8227_v43 = vpop.permute.xlu0 %2426 }
 0x2d2   : > { %v8229_v23 = vpop.permute.xlu1 %2589  ;;  %v2434_v45 = vsel %vm2428_vm10, %v7975_v58, %v8227_v43  ;;  %v2482_v58 = vsel %vm2479_vm11, %v7886_v37, %v8157_v22  ;;  %v2485_v37 = vsel %vm2479_vm11, %v7993_v39, %v8221_v52  ;;  %v2533_v39 = vsel %vm2530_vm12, %v7884_v55, %v8159_v48  ;;  %v10323_v55 = vld [vmem:[#allocation8_spill] sm:$0xff] }
 0x2d3   : > { %2942 = vrot.lane.b32.xlu1 %v8021_v59, %s6652_s29  ;;  %v2597_v63 = vsel %vm537_vm0, %v8013_v44, %v8229_v23 }
 0x2d4   : > { %3348 = vmatprep.subr.bf16.mxu1 %v2597_v63  ;;  %2842 = vrot.lane.b32.xlu0 %v8021_v59, %s6650_s28 }
 0x2d5   : > { %3349 = vmatpush1.bf16.msra.mxu1 %v2596_v5 }
 0x2d6   : > { %v8244_v6 = vpop.permute.xlu1 %2690  ;;  %3350 = vmatprep.subr.bf16.mxu1 %v2645_v13  ;;  %v8246_v18 = vpop.permute.xlu0 %2528 }
 0x2d7   : > { %3002 = vrot.lane.b32.xlu1 %v8021_v59, %s6640_s24 }
 0x2d8   : > { %2892 = vrot.lane.b32.xlu0 %v8021_v59, %s6651_s12 }
 0x2d9   : > { %3351 = vmatpush1.bf16.msra.mxu1 %v2644_v47 }
 0x2da   : > { %v8255_v44 = vpop.permute.xlu1 %2788  ;;  %v8257_v63 = vpop.permute.xlu0 %2639 }
 0x2db   : > { %3052 = vrot.lane.b32.xlu1 %v8021_v59, %s6653_s25  ;;  %v2648_v13 = vsel %vm2643_vm13, %v8019_v29, %v8257_v63  ;;  %v2698_v29 = vsel %vm639_vm2, %v8037_v49, %v8244_v6 }
 0x2dc   : > { %3102 = vrot.lane.b32.xlu0 %v8021_v59, %s6642_s26  ;;  %3352 = vmatprep.subr.bf16.mxu1 %v2648_v13 }
 0x2dd   : > { %3353 = vmatpush1.bf16.msra.mxu1 %v2647_v31 }
 0x2de   : > { %v8272_v5 = vpop.permute.xlu1 %2938  ;;  %3354 = vmatprep.subr.bf16.mxu1 %v2695_v42  ;;  %v8274_v47 = vpop.permute.xlu0 %2740  ;;  %v10298_v42 = vld [vmem:[#allocation30_spill] sm:$0xff] }
 0x2df   : > { %4491 = vrot.lane.b32.xlu1 %v7619_v16, %s6642_s26  ;;  %v2697_v34 = vsel %vm639_vm2, %v10298_v42, %v8037_v49  ;;  %v10301_v49 = vld [vmem:[#allocation25_spill] sm:$0xff] }
 0x2e0   : > { %4481 = vrot.lane.b32.xlu0 %v7593_v51, %s6642_s26 }
 0x2e1   : > { %3355 = vmatpush1.bf16.msra.mxu1 %v2694_v11  ;;  %v10299_v11 = vld [vmem:[#allocation28_spill] sm:$0xff] }
 0x2e2   : > { %v8286_v13 = vpop.permute.xlu1 %4329  ;;  %3356 = vmatprep.subr.bf16.mxu1 %v2698_v29  ;;  %v8288_v31 = vpop.permute.xlu0 %2838  ;;  %v2745_v29 = vsel %vm690_vm3, %v10299_v11, %v8179_v25  ;;  %v2744_v42 = vsel %vm690_vm3, %v10301_v49, %v10299_v11  ;;  %v10304_v11 = vld [vmem:[#allocation29_spill] sm:$0xff] }
 0x2e3   : > { %10297 = vst [vmem:[#allocation47_spill] sm:$0xff] %v8286_v13  ;;  %4489 = vrot.lane.b32.xlu1 %v7617_v19, %s6642_s26  ;;  %v8308_v13 = vld [vmem:[%s10190_s3 + $0x1c] ss:$12 sps:$4 sm:$0xff]   ;;  %v2747_v49 = vsel %vm690_vm3, %v10304_v11, %v8040_v50 }
 0x2e4   : > { %4493 = vrot.lane.b32.xlu0 %v7822_v38, %s6642_s26 }
 0x2e5   : > { %3357 = vmatpush1.bf16.msra.mxu1 %v2697_v34  ;;  %v2748_v34 = vsel %vm690_vm3, %v8040_v50, %v8274_v47 }
 0x2e6   : > { %v8310_v53 = vpop.permute.xlu1 %6512  ;;  %3379 = vmatprep.subr.bf16.mxu1 %v2745_v29  ;;  %v8312_v56 = vpop.permute.xlu0 %2888 }
 0x2e7   : > { %10300 = vst [vmem:[#allocation30_spill] sm:$0xff] %v8310_v53  ;;  %6522 = vrot.lane.b32.xlu1 %v10278_v10, %s6643_s27 }
 0x2e8   : > { %3144 = vrot.lane.b32.xlu0 %v7979_v41, %s6643_s27  ;;  %3359 = vmatmul.mubr.bf16.vlgmr.msra.gmra.mrb[16].mxu1 %v8300_v35  ;;  %v6469_v41 = vunpack.i.l.bf16 %v10303_v4 }
 0x2e9   : > { %3380 = vmatpush1.bf16.msra.mxu1 %v2744_v42  ;;  %3368 = vmatprep.mubr.bf16.mxu1 %v8308_v13  ;;  %v8341_v42 = vld [vmem:[%s10190_s3 + $0x18] ss:$12 sps:$4 sm:$0xff]  }
 0x2ea   : > { %v8326_v29 = vpop.permute.xlu1 %4433  ;;  %3381 = vmatprep.subr.bf16.mxu1 %v2748_v34  ;;  %v8328_v53 = vpop.permute.xlu0 %2998  ;;  %10305 = vst [vmem:[#allocation25_spill] sm:$0xff] %v8341_v42  ;;  %v2794_v34 = vsel %vm2377_vm9, %v6469_v41, %v8187_v32  ;;  %v8366_v41 = vld [vmem:[%s10190_s3 + $0x8] ss:$12 sps:$4 sm:$0xff]  }
 0x2eb   : > { %10302 = vst [vmem:[#allocation28_spill] sm:$0xff] %v8326_v29  ;;  %6527 = vrot.lane.b32.xlu1 %v10278_v10, %s6649_s30 }
 0x2ec   : > { %3152 = vrot.lane.b32.xlu0 %v8021_v59, %s6643_s27  ;;  %v10306_v59 = vld [vmem:[#allocation18_spill] sm:$0xff] }
 0x2ed   : > { %3382 = vmatpush1.bf16.msra.mxu1 %v2747_v49 }
 0x2ee   : > { %v8345_v29 = vpop.permute.xlu1 %3148  ;;  %3432 = vmatprep.subr.bf16.mxu1 %v2794_v34  ;;  %v8347_v60 = vpop.permute.xlu0 %3048 }
 0x2ef   : > { %4175 = vrot.lane.b32.xlu1 %v7792_v46, %s6649_s30 }
 0x2f0   : > { %4583 = vrot.lane.b32.xlu0 %v10306_v59, %s6649_s30  ;;  %3369 = vmatmul.mubr.bf16.gmra.mrb[20].mxu1 %v8341_v42 }
 0x2f1   : > { %3411 = vmatprep.mubr.bf16.mxu1 %v10278_v10 }
 0x2f2   : > { %v8355_v50 = vpop.permute.xlu1 %4385  ;;  %v8357_v11 = vpop.permute.xlu0 %3098 }
 0x2f3   : > { %10307 = vst [vmem:[#allocation14_spill] sm:$0xff] %v8355_v50  ;;  %4535 = vrot.lane.b32.xlu1 %v7792_v46, %s6643_s27  ;;  %v10310_v50 = vld [vmem:[#allocation22_spill] sm:$0xff] }
 0x2f4   : > { %4533 = vrot.lane.b32.xlu0 %v7599_v36, %s6643_s27 }
 0x2f6   : > { %v8368_v49 = vpop.permute.xlu1 %4431  ;;  %v8370_v34 = vpop.permute.xlu0 %6502 }
 0x2f7   : > { %10308 = vst [vmem:[#allocation29_spill] sm:$0xff] %v8368_v49  ;;  %10309 = vst [vmem:[#allocation18_spill] sm:$0xff] %v8370_v34  ;;  %4591 = vrot.lane.b32.xlu1 %v10310_v50, %s6649_s30  ;;  %v2797_v49 = vsel %vm2377_vm9, %v6470_v33, %v8255_v44  ;;  %v10313_v34 = vld [vmem:[#allocation16_spill] sm:$0xff]  ;;  %v8400_v33 = vld [vmem:[%s10190_s3 + $0x20] ss:$12 sps:$4 sm:$0xff]  }
 0x2f8   : > { %4531 = vrot.lane.b32.xlu0 %v7593_v51, %s6643_s27  ;;  %6192 = vmatmul.mubr.msk.bf16.vlgmr.msra.gmra.mrb[16].mxu1 %vm1509_vm8, %v8366_v41  ;;  %v6474_v42 = vunpack.i.l.bf16 %v10313_v34 }
 0x2f9   : > { %3433 = vmatpush1.bf16.msra.mxu1 %v2380_v1  ;;  %3421 = vmatprep.mubr.bf16.mxu1 %v10278_v10 }
 0x2fa   : > { %3434 = vmatprep.subr.bf16.mxu1 %v2797_v49  ;;  %v8385_v4 = vpop.permute.xlu1 %4441  ;;  %v8387_v36 = vpop.permute.xlu0 %4331  ;;  %v2844_v1 = vsel %vm2428_vm10, %v6474_v42, %v8189_v20  ;;  %v10315_v42 = vld [vmem:[#allocation27_spill] sm:$0xff] }
 0x2fb   : > { %10312 = vst [vmem:[#allocation22_spill] sm:$0xff] %v8385_v4  ;;  %4541 = vrot.lane.b32.xlu1 %v7619_v16, %s6643_s27  ;;  %v6475_v4 = vunpack.i.h.bf16 %v10313_v34 }
 0x2fc   : > { %4183 = vrot.lane.b32.xlu0 %v7822_v38, %s6649_s30 }
 0x2fd   : > { %3435 = vmatpush1.bf16.msra.mxu1 %v2383_v7  ;;  %v2847_v30 = vsel %vm2428_vm10, %v6475_v4, %v8288_v31 }
 0x2fe   : > { %3436 = vmatprep.subr.bf16.mxu1 %v2844_v1  ;;  %v8404_v40 = vpop.permute.xlu1 %4393  ;;  %v8406_v49 = vpop.permute.xlu0 %6507  ;;  %v10318_v1 = vld [vmem:[#allocation19_spill] sm:$0xff] }
 0x2ff   : > { %10314 = vst [vmem:[#allocation26_spill] sm:$0xff] %v8404_v40  ;;  %4539 = vrot.lane.b32.xlu1 %v7617_v19, %s6643_s27  ;;  %v6479_v40 = vunpack.i.l.bf16 %v10318_v1 }
 0x300   : > { %4543 = vrot.lane.b32.xlu0 %v7822_v38, %s6643_s27  ;;  %6193 = vmatmul.mubr.msk.bf16.gmra.mrb[20].mxu1 %vm1509_vm8, %v8400_v33 }
 0x301   : > { %3437 = vmatpush1.bf16.msra.mxu1 %v2431_v17  ;;  %3464 = vmatprep.mubr.bf16.mxu1 %v10315_v42  ;;  %v2894_v14 = vsel %vm2479_vm11, %v6479_v40, %v8197_v61 }
 0x302   : > { %3438 = vmatprep.subr.bf16.mxu1 %v2847_v30  ;;  %v8421_v34 = vpop.permute.xlu1 %4439  ;;  %v8423_v7 = vpop.permute.xlu0 %4383  ;;  %v6480_v30 = vunpack.i.h.bf16 %v10318_v1  ;;  %v10321_v1 = vld [vmem:[#allocation17_spill] sm:$0xff] }
 0x303   : > { %10316 = vst [vmem:[#allocation16_spill] sm:$0xff] %v8421_v34  ;;  %10317 = vst [vmem:[#allocation27_spill] sm:$0xff] %v8423_v7  ;;  %4633 = vrot.lane.b32.xlu1 %v10306_v59, %s6650_s28 }
 0x304   : > { %6532 = vrot.lane.b32.xlu0 %v10278_v10, %s6650_s28  ;;  %v2897_v43 = vsel %vm2479_vm11, %v6480_v30, %v8312_v56 }
 0x305   : > { %3439 = vmatpush1.bf16.msra.mxu1 %v2434_v45  ;;  %v6484_v45 = vunpack.i.l.bf16 %v10321_v1 }
 0x306   : > { %3440 = vmatprep.subr.bf16.mxu1 %v2894_v14  ;;  %v8435_v4 = vpop.permute.xlu1 %2782  ;;  %v8437_v17 = vpop.permute.xlu0 %4381 }
 0x307   : > { %10319 = vst [vmem:[#allocation19_spill] sm:$0xff] %v8437_v17  ;;  %4585 = vrot.lane.b32.xlu1 %v8059_v3, %s6649_s30  ;;  %v2944_v22 = vsel %vm2530_vm12, %v6484_v45, %v8195_v15 }
 0x308   : > { %4225 = vrot.lane.b32.xlu0 %v7792_v46, %s6650_s28 }
 0x309   : > { %3441 = vmatpush1.bf16.msra.mxu1 %v2482_v58  ;;  %v6485_v58 = vunpack.i.h.bf16 %v10321_v1  ;;  %v2536_v1 = vsel %vm2530_vm12, %v7995_v57, %v8246_v18 }
 0x30a   : > { %3442 = vmatprep.subr.bf16.mxu1 %v2897_v43  ;;  %v8449_v40 = vpop.permute.xlu1 %2882  ;;  %v8451_v42 = vpop.permute.xlu0 %4391 }
 0x30b   : > { %10320 = vst [vmem:[#allocation48_spill] sm:$0xff] %v8451_v42  ;;  %4641 = vrot.lane.b32.xlu1 %v10310_v50, %s6650_s28  ;;  %v2947_v52 = vsel %vm2530_vm12, %v6485_v58, %v8272_v5  ;;  %v10326_v58 = vld [vmem:[#allocation12_spill] sm:$0xff] }
 0x30c   : > { %4587 = vrot.lane.b32.xlu0 %v8065_v27, %s6649_s30 }
 0x30d   : > { %3443 = vmatpush1.bf16.msra.mxu1 %v2485_v37 }
 0x30e   : > { %3444 = vmatprep.subr.bf16.mxu1 %v2944_v22  ;;  %v8463_v14 = vpop.permute.xlu1 %2992  ;;  %v8465_v30 = vpop.permute.xlu0 %4389  ;;  %v10325_v22 = vld [vmem:[#allocation7_spill] sm:$0xff] }
 0x30f   : > { %10322 = vst [vmem:[#allocation17_spill] sm:$0xff] %v8465_v30  ;;  %4593 = vrot.lane.b32.xlu1 %v8101_v9, %s6649_s30 }
 0x310   : > { %4233 = vrot.lane.b32.xlu0 %v7822_v38, %s6650_s28 }
 0x311   : > { %3445 = vmatpush1.bf16.msra.mxu1 %v2533_v39  ;;  %v10328_v39 = vld [vmem:[#allocation11_spill] sm:$0xff] }
 0x312   : > { %3446 = vmatprep.subr.bf16.mxu1 %v2947_v52  ;;  %v8477_v43 = vpop.permute.xlu1 %3042  ;;  %v8479_v45 = vpop.permute.xlu0 %6517  ;;  %v3006_v52 = vsel %vm537_vm0, %v8203_v62, %v8463_v14 }
 0x313   : > { %6537 = vrot.lane.b32.xlu1 %v10278_v10, %s6651_s12 }
 0x314   : > { %4595 = vrot.lane.b32.xlu0 %v8105_v54, %s6649_s30 }
 0x315   : > { %3447 = vmatpush1.bf16.msra.mxu1 %v2536_v1  ;;  %v10329_v1 = vld [vmem:[#allocation9_spill] sm:$0xff] }
 0x316   : > { %3448 = vmatprep.subr.bf16.mxu1 %v10323_v55  ;;  %v8489_v48 = vpop.permute.xlu1 %3092  ;;  %v8491_v37 = vpop.permute.xlu0 %4435  ;;  %v6449_v55 = vunpack.i.l.bf16 %v10329_v1 }
 0x317   : > { %10324 = vst [vmem:[#allocation8_spill] sm:$0xff] %v8491_v37  ;;  %4275 = vrot.lane.b32.xlu1 %v7792_v46, %s6651_s12 }
 0x318   : > { %4683 = vrot.lane.b32.xlu0 %v10306_v59, %s6651_s12 }
 0x319   : > { %3449 = vmatpush1.bf16.msra.mxu1 %v10325_v22 }
 0x31a   : > { %3450 = vmatprep.subr.bf16.mxu1 %v10326_v58  ;;  %v8499_v57 = vpop.permute.xlu1 %2932  ;;  %v8501_v18 = vpop.permute.xlu0 %4443 }
 0x31b   : > { %10327 = vst [vmem:[#allocation7_spill] sm:$0xff] %v8501_v18  ;;  %4637 = vrot.lane.b32.xlu1 %v8065_v27, %s6650_s28  ;;  %v2795_v18 = vsel %vm2377_vm9, %v8187_v32, %v8435_v4 }
 0x31c   : > { %4635 = vrot.lane.b32.xlu0 %v8059_v3, %s6650_s28 }
 0x31d   : > { %3451 = vmatpush1.bf16.msra.mxu1 %v10328_v39  ;;  %v2595_v39 = vsel %vm537_vm0, %v8167_v21, %v6449_v55 }
 0x31e   : > { %3452 = vmatprep.subr.bf16.mxu1 %v3006_v52  ;;  %v8512_v22 = vpop.permute.xlu1 %2834  ;;  %v8514_v58 = vpop.permute.xlu0 %4483 }
 0x31f   : > { %10330 = vst [vmem:[#allocation12_spill] sm:$0xff] %v8514_v58  ;;  %4283 = vrot.lane.b32.xlu1 %v7822_v38, %s6651_s12 }
 0x320   : > { %4691 = vrot.lane.b32.xlu0 %v10310_v50, %s6651_s12 }
 0x321   : > { %3453 = vmatpush1.bf16.msra.mxu1 %v2595_v39 }
 0x322   : > { %v8522_v34 = vpop.permute.xlu1 %2994  ;;  %v8524_v62 = vpop.permute.xlu0 %2832 }
 0x323   : > { %4645 = vrot.lane.b32.xlu1 %v8105_v54, %s6650_s28 }
 0x324   : > { %4643 = vrot.lane.b32.xlu0 %v8101_v9, %s6650_s28 }
 0x326   : > { %v8530_v52 = vpop.permute.xlu1 %3094  ;;  %v8532_v58 = vpop.permute.xlu0 %3142 }
 0x327   : > { %4733 = vrot.lane.b32.xlu1 %v10306_v59, %s6652_s29 }
 0x328   : > { %6542 = vrot.lane.b32.xlu0 %v10278_v10, %s6652_s29 }
 0x32a   : > { %v8538_v21 = vpop.permute.xlu1 %2840  ;;  %v2785_v55 = vpop.permute.xlu0 %2784 }
 0x32b   : > { %4685 = vrot.lane.b32.xlu1 %v8059_v3, %s6651_s12  ;;  %v2796_v39 = vsel %vm2377_vm9, %v8435_v4, %v2785_v55  ;;  %v6450_v55 = vunpack.i.h.bf16 %v10329_v1  ;;  %v10331_v1 = vld [vmem:[#allocation6_spill] sm:$0xff] }
 0x32c   : > { %4325 = vrot.lane.b32.xlu0 %v7792_v46, %s6652_s29  ;;  %3538 = vmatprep.subr.bf16.mxu0 %v2796_v39  ;;  %v6454_v46 = vunpack.i.l.bf16 %v10331_v1 }
 0x32d   : > { %3539 = vmatpush1.bf16.msra.mxu0 %v2795_v18  ;;  %v2598_v4 = vsel %vm537_vm0, %v8229_v23, %v6450_v55  ;;  %v3056_v18 = vsel %vm2643_vm13, %v8211_v28, %v8477_v43 }
 0x32e   : > { %v8549_v37 = vpop.permute.xlu1 %2890  ;;  %v8551_v30 = vpop.permute.xlu0 %2884  ;;  %v2646_v23 = vsel %vm2643_vm13, %v8165_v8, %v6454_v46  ;;  %v3106_v8 = vsel %vm639_vm2, %v8219_v24, %v8489_v48 }
 0x32f   : > { %4741 = vrot.lane.b32.xlu1 %v10310_v50, %s6652_s29 }
 0x330   : > { %4687 = vrot.lane.b32.xlu0 %v8065_v27, %s6651_s12 }
 0x332   : > { %v8558_v42 = vpop.permute.xlu1 %3000  ;;  %v8560_v39 = vpop.permute.xlu0 %2934 }
 0x333   : > { %4693 = vrot.lane.b32.xlu1 %v8101_v9, %s6651_s12  ;;  %v3009_v32 = vsel %vm537_vm0, %v8328_v53, %v8558_v42  ;;  %v6455_v53 = vunpack.i.h.bf16 %v10331_v1 }
 0x334   : > { %4333 = vrot.lane.b32.xlu0 %v7822_v38, %s6652_s29  ;;  %3454 = vmatprep.subr.bf16.mxu1 %v3009_v32 }
 0x335   : > { %3455 = vmatpush1.bf16.msra.mxu1 %v2598_v4  ;;  %v2649_v46 = vsel %vm2643_vm13, %v8257_v63, %v6455_v53  ;;  %v10332_v4 = vld [vmem:[#allocation13_spill] sm:$0xff] }
 0x336   : > { %v8575_v17 = vpop.permute.xlu1 %4485  ;;  %3456 = vmatprep.subr.bf16.mxu1 %v3056_v18  ;;  %v8577_v7 = vpop.permute.xlu0 %3044  ;;  %v6459_v18 = vunpack.i.l.bf16 %v10332_v4  ;;  %v6460_v63 = vunpack.i.h.bf16 %v10332_v4  ;;  %v2846_v4 = vsel %vm2428_vm10, %v8524_v62, %v8512_v22 }
 0x337   : > { %4735 = vrot.lane.b32.xlu1 %v8059_v3, %s6652_s29 }
 0x338   : > { %4695 = vrot.lane.b32.xlu0 %v8105_v54, %s6651_s12 }
 0x339   : > { %3457 = vmatpush1.bf16.msra.mxu1 %v2646_v23 }
 0x33a   : > { %v8586_v28 = vpop.permute.xlu1 %3050  ;;  %v2791_v55 = vpop.permute.xlu0 %2790 }
 0x33b   : > { %4743 = vrot.lane.b32.xlu1 %v8101_v9, %s6652_s29  ;;  %v3059_v32 = vsel %vm2643_vm13, %v8347_v60, %v8586_v28  ;;  %v2696_v60 = vsel %vm639_vm2, %v8181_v26, %v6459_v18  ;;  %v2699_v26 = vsel %vm639_vm2, %v8244_v6, %v6460_v63  ;;  %v10333_v18 = vld [vmem:[#allocation10_spill] sm:$0xff] }
 0x33c   : > { %4737 = vrot.lane.b32.xlu0 %v8065_v27, %s6652_s29  ;;  %3458 = vmatprep.subr.bf16.mxu1 %v3059_v32 }
 0x33d   : > { %3459 = vmatpush1.bf16.msra.mxu1 %v2649_v46 }
 0x33e   : > { %v8601_v1 = vpop.permute.xlu1 %3100  ;;  %3460 = vmatprep.subr.bf16.mxu1 %v3106_v8  ;;  %v8603_v23 = vpop.permute.xlu0 %3150  ;;  %v3156_v8 = vsel %vm690_vm3, %v8205_v0, %v8532_v58  ;;  %v2845_v0 = vsel %vm2428_vm10, %v8189_v20, %v8524_v62  ;;  %v2896_v62 = vsel %vm2479_vm11, %v8449_v40, %v8551_v30 }
 0x33f   : > { %4793 = vrot.lane.b32.xlu1 %v10306_v59, %s6640_s24  ;;  %v3109_v24 = vsel %vm639_vm2, %v8357_v11, %v8601_v1  ;;  %v2798_v11 = vsel %vm2377_vm9, %v8255_v44, %v2791_v55  ;;  %v3159_v44 = vsel %vm690_vm3, %v8345_v29, %v8603_v23  ;;  %v2848_v29 = vsel %vm2428_vm10, %v8288_v31, %v8538_v21 }
 0x340   : > { %4745 = vrot.lane.b32.xlu0 %v8105_v54, %s6652_s29  ;;  %v2895_v31 = vsel %vm2479_vm11, %v8197_v61, %v8449_v40  ;;  %v2898_v61 = vsel %vm2479_vm11, %v8312_v56, %v8549_v37  ;;  %v2946_v40 = vsel %vm2530_vm12, %v8499_v57, %v8560_v39  ;;  %v10336_v39 = vld [vmem:[#allocation44_spill] sm:$0xff] }
 0x341   : > { %3461 = vmatpush1.bf16.msra.mxu1 %v2696_v60  ;;  %v6464_v60 = vunpack.i.l.bf16 %v10333_v18 }
 0x342   : > { %v2793_v53 = vpop.permute.xlu1 %2792  ;;  %3462 = vmatprep.subr.bf16.mxu1 %v3109_v24  ;;  %v8615_v32 = vpop.permute.xlu0 %2940 }
 0x343   : > { %6547 = vrot.lane.b32.xlu1 %v10278_v10, %s6640_s24  ;;  %v2799_v46 = vsel %vm2377_vm9, %v2791_v55, %v2793_v53  ;;  %v2746_v6 = vsel %vm690_vm3, %v8179_v25, %v6464_v60  ;;  %v6465_v55 = vunpack.i.h.bf16 %v10333_v18 }
 0x344   : > { %4795 = vrot.lane.b32.xlu0 %v8059_v3, %s6640_s24  ;;  %3540 = vmatprep.subr.bf16.mxu0 %v2799_v46  ;;  %v4186_v46 = vsel %vm2377_vm9, %v8063_v2, %v8099_v12 }
 0x345   : > { %3463 = vmatpush1.bf16.msra.mxu1 %v2699_v26  ;;  %3541 = vmatpush1.bf16.msra.mxu0 %v2798_v11  ;;  %v2749_v20 = vsel %vm690_vm3, %v8274_v47, %v6465_v55  ;;  %v10334_v47 = vld [vmem:[#allocation25_spill] sm:$0xff] }
 0x346   : > { %v2943_v24 = vpop.permute.xlu1 %2942  ;;  %3485 = vmatprep.subr.bf16.mxu1 %v3156_v8  ;;  %3542 = vmatprep.subr.bf16.mxu0 %v2846_v4  ;;  %v2843_v53 = vpop.permute.xlu0 %2842  ;;  %v10335_v4 = vld [vmem:[#allocation20_spill] sm:$0xff] }
 0x347   : > { %4803 = vrot.lane.b32.xlu1 %v8101_v9, %s6640_s24  ;;  %v2849_v22 = vsel %vm2428_vm10, %v8538_v21, %v2843_v53  ;;  %v6489_v18 = vunpack.i.l.bf16 %v10335_v4 }
 0x348   : > { %3465 = vmatmul.mubr.bf16.vlgmr.msra.gmra.mrb[24].mxu1 %v8300_v35  ;;  %4801 = vrot.lane.b32.xlu0 %v10310_v50, %s6640_s24 }
 0x349   : > { %3486 = vmatpush1.bf16.msra.mxu1 %v2746_v6  ;;  %3543 = vmatpush1.bf16.msra.mxu0 %v2845_v0  ;;  %v4185_v56 = vsel %vm2377_vm9, %v6489_v18, %v8063_v2  ;;  %v10337_v6 = vld [vmem:[#allocation41_spill] sm:$0xff] }
 0x34a   : > { %v8649_v63 = vpop.permute.xlu1 %3002  ;;  %3487 = vmatprep.subr.bf16.mxu1 %v3159_v44  ;;  %3544 = vmatprep.subr.bf16.mxu0 %v2849_v22  ;;  %v2893_v25 = vpop.permute.xlu0 %2892  ;;  %v4189_v0 = vsel %vm2377_vm9, %v10337_v6, %v10336_v39  ;;  %v2949_v44 = vsel %vm2530_vm12, %v8615_v32, %v2943_v24  ;;  %v6490_v22 = vunpack.i.h.bf16 %v10335_v4  ;;  %v10338_v24 = vld [vmem:[#allocation38_spill] sm:$0xff] }
 0x34b   : > { %4845 = vrot.lane.b32.xlu1 %v8059_v3, %s6653_s25  ;;  %3474 = vmatprep.mubr.bf16.mxu1 %v8308_v13  ;;  %v2899_v30 = vsel %vm2479_vm11, %v8549_v37, %v2893_v25  ;;  %v2945_v37 = vsel %vm2530_vm12, %v8195_v15, %v8499_v57  ;;  %v2948_v57 = vsel %vm2530_vm12, %v8272_v5, %v8615_v32  ;;  %v10339_v25 = vld [vmem:[#allocation35_spill] sm:$0xff]  ;;  %v10344_v4 = vld [vmem:[#allocation42_spill] sm:$0xff] }
 0x34c   : > { %4843 = vrot.lane.b32.xlu0 %v10306_v59, %s6653_s25  ;;  %v4188_v15 = vsel %vm2377_vm9, %v6490_v22, %v10337_v6  ;;  %v8746_v5 = vld [vmem:[%s10191_s4 + $0x4] ss:$12 sps:$4 sm:$0xff]   ;;  %v10345_v6 = vld [vmem:[#allocation34_spill] sm:$0xff] }
 0x34d   : > { %3488 = vmatpush1.bf16.msra.mxu1 %v2749_v20  ;;  %3545 = vmatpush1.bf16.msra.mxu0 %v2848_v29  ;;  %v4236_v20 = vsel %vm2428_vm10, %v10339_v25, %v10338_v24  ;;  %v10340_v29 = vld [vmem:[#allocation23_spill] sm:$0xff] }
 0x34e   : > { %v8667_v26 = vpop.permute.xlu1 %3052  ;;  %3546 = vmatprep.subr.bf16.mxu0 %v2896_v62  ;;  %5129 = vmatprep.subr.bf16.mxu1 %v4186_v46  ;;  %v8669_v11 = vpop.permute.xlu0 %3102  ;;  %v6494_v62 = vunpack.i.l.bf16 %v10340_v29 }
 0x34f   : > { %4797 = vrot.lane.b32.xlu1 %v8065_v27, %s6640_s24 }
 0x350   : > { %3475 = vmatmul.mubr.bf16.gmra.mrb[28].mxu1 %v10334_v47  ;;  %6552 = vrot.lane.b32.xlu0 %v10278_v10, %s6653_s25  ;;  %v4235_v32 = vsel %vm2428_vm10, %v6494_v62, %v10339_v25  ;;  %v10348_v25 = vld [vmem:[#allocation37_spill] sm:$0xff]  ;;  %v10349_v62 = vld [vmem:[#allocation24_spill] sm:$0xff] }
 0x351   : > { %3547 = vmatpush1.bf16.msra.mxu0 %v2895_v31  ;;  %3517 = vmatprep.mubr.bf16.mxu1 %v10278_v10  ;;  %v10341_v31 = vld [vmem:[#allocation32_spill] sm:$0xff] }
 0x352   : > { %v8682_v21 = vpop.permute.xlu1 %4491  ;;  %3548 = vmatprep.subr.bf16.mxu0 %v2899_v30  ;;  %v8684_v8 = vpop.permute.xlu0 %4481 }
 0x353   : > { %4851 = vrot.lane.b32.xlu1 %v10310_v50, %s6653_s25 }
 0x354   : > { %6557 = vrot.lane.b32.xlu0 %v10278_v10, %s6640_s24 }
 0x355   : > { %3549 = vmatpush1.bf16.msra.mxu0 %v2898_v61  ;;  %v10342_v61 = vld [vmem:[#allocation31_spill] sm:$0xff] }
 0x356   : > { %v8697_v60 = vpop.permute.xlu1 %4489  ;;  %3550 = vmatprep.subr.bf16.mxu0 %v2946_v40  ;;  %v8699_v53 = vpop.permute.xlu0 %4493  ;;  %v10343_v40 = vld [vmem:[#allocation45_spill] sm:$0xff] }
 0x357   : > { %4805 = vrot.lane.b32.xlu1 %v8105_v54, %s6640_s24  ;;  %v4239_v18 = vsel %vm2428_vm10, %v10344_v4, %v10343_v40 }
 0x358   : > { %4853 = vrot.lane.b32.xlu0 %v8101_v9, %s6653_s25  ;;  %6194 = vmatmul.mubr.msk.bf16.vlgmr.msra.gmra.mrb[24].mxu1 %vm1509_vm8, %v8366_v41 }
 0x359   : > { %5130 = vmatpush1.bf16.msra.mxu1 %v4185_v56  ;;  %3551 = vmatpush1.bf16.msra.mxu0 %v2945_v37  ;;  %v6495_v56 = vunpack.i.h.bf16 %v10340_v29 }
 0x35a   : > { %5131 = vmatprep.subr.bf16.mxu1 %v4189_v0  ;;  %v8718_v55 = vpop.permute.xlu1 %6522  ;;  %3552 = vmatprep.subr.bf16.mxu0 %v2949_v44  ;;  %v8720_v2 = vpop.permute.xlu0 %3144  ;;  %v6509_v44 = vunpack.i.l.bf16 %v8406_v49 }
 0x35b   : > { %4895 = vrot.lane.b32.xlu1 %v8059_v3, %s6642_s26  ;;  %3527 = vmatprep.mubr.bf16.mxu1 %v10278_v10  ;;  %v4238_v22 = vsel %vm2428_vm10, %v6495_v56, %v10344_v4  ;;  %v6510_v4 = vunpack.i.h.bf16 %v8406_v49  ;;  %v3007_v56 = vsel %vm537_vm0, %v8463_v14, %v8522_v34 }
 0x35c   : > { %4893 = vrot.lane.b32.xlu0 %v10306_v59, %s6642_s26  ;;  %v3008_v29 = vsel %vm537_vm0, %v8522_v34, %v6509_v44  ;;  %v10351_v44 = vld [vmem:[#allocation43_spill] sm:$0xff]  ;;  %v10353_v34 = vld [vmem:[#allocation18_spill] sm:$0xff] }
 0x35d   : > { %5132 = vmatpush1.bf16.msra.mxu1 %v4188_v15  ;;  %3553 = vmatpush1.bf16.msra.mxu0 %v2948_v57  ;;  %v10346_v15 = vld [vmem:[#allocation33_spill] sm:$0xff]  ;;  %v10347_v57 = vld [vmem:[#allocation39_spill] sm:$0xff]  ;;  %v3011_v49 = vsel %vm537_vm0, %v8649_v63, %v6510_v4  ;;  %v6504_v14 = vunpack.i.l.bf16 %v10353_v34 }
 0x35e   : > { %5133 = vmatprep.subr.bf16.mxu1 %v4236_v20  ;;  %v8736_v46 = vpop.permute.xlu1 %6527  ;;  %3554 = vmatprep.subr.bf16.mxu0 %v10341_v31  ;;  %v8739_v30 = vpop.permute.xlu0 %3152  ;;  %v4286_v20 = vsel %vm2479_vm11, %v10348_v25, %v10347_v57  ;;  %v6499_v31 = vunpack.i.l.bf16 %v10349_v62 }
 0x35f   : > { %4847 = vrot.lane.b32.xlu1 %v8065_v27, %s6653_s25 }
 0x360   : > { %6562 = vrot.lane.b32.xlu0 %v10278_v10, %s6642_s26  ;;  %6195 = vmatmul.mubr.msk.bf16.gmra.mrb[28].mxu1 %vm1509_vm8, %v8400_v33 }
 0x361   : > { %5134 = vmatpush1.bf16.msra.mxu1 %v4235_v32  ;;  %3555 = vmatpush1.bf16.msra.mxu0 %v10342_v61 }
 0x362   : > { %5135 = vmatprep.subr.bf16.mxu1 %v4239_v18  ;;  %v8759_v37 = vpop.permute.xlu1 %4175  ;;  %3556 = vmatprep.subr.bf16.mxu0 %v10345_v6  ;;  %v8762_v0 = vpop.permute.xlu0 %4583  ;;  %v4285_v18 = vsel %vm2479_vm11, %v6499_v31, %v10348_v25  ;;  %v10350_v6 = vld [vmem:[#allocation46_spill] sm:$0xff] }
 0x363   : > { %4901 = vrot.lane.b32.xlu1 %v10310_v50, %s6642_s26  ;;  %5161 = vmatprep.mubr.bf16.mxu1 %v8746_v5  ;;  %v10352_v25 = vld [vmem:[#allocation30_spill] sm:$0xff] }
 0x364   : > { %6567 = vrot.lane.b32.xlu0 %v10278_v10, %s6653_s25  ;;  %v6514_v31 = vunpack.i.l.bf16 %v10352_v25 }
 0x365   : > { %5136 = vmatpush1.bf16.msra.mxu1 %v4238_v22  ;;  %3557 = vmatpush1.bf16.msra.mxu0 %v10346_v15  ;;  %v4289_v22 = vsel %vm2479_vm11, %v10351_v44, %v10350_v6  ;;  %v6500_v15 = vunpack.i.h.bf16 %v10349_v62  ;;  %v3010_v62 = vsel %vm537_vm0, %v8558_v42, %v8649_v63  ;;  %v6505_v42 = vunpack.i.h.bf16 %v10353_v34 }
 0x366   : > { %5137 = vmatprep.subr.bf16.mxu1 %v4286_v20  ;;  %v8779_v32 = vpop.permute.xlu1 %4535  ;;  %v8781_v61 = vpop.permute.xlu0 %4533  ;;  %3558 = vmatprep.subr.bf16.mxu0 %v3008_v29 }
 0x367   : > { %4855 = vrot.lane.b32.xlu1 %v8105_v54, %s6653_s25  ;;  %v4288_v4 = vsel %vm2479_vm11, %v6500_v15, %v10351_v44  ;;  %v6515_v44 = vunpack.i.h.bf16 %v10352_v25  ;;  %v3057_v15 = vsel %vm2643_vm13, %v8477_v43, %v8577_v7  ;;  %v3060_v43 = vsel %vm2643_vm13, %v8586_v28, %v8667_v26 }
 0x368   : > { %4903 = vrot.lane.b32.xlu0 %v8101_v9, %s6642_s26  ;;  %v3107_v28 = vsel %vm639_vm2, %v8489_v48, %v8530_v52  ;;  %v6525_v48 = vunpack.i.h.bf16 %v8718_v55 }
 0x369   : > { %5138 = vmatpush1.bf16.msra.mxu1 %v4285_v18  ;;  %3559 = vmatpush1.bf16.msra.mxu0 %v3007_v56  ;;  %v10354_v18 = vld [vmem:[#allocation40_spill] sm:$0xff] }
 0x36a   : > { %5139 = vmatprep.subr.bf16.mxu1 %v4289_v22  ;;  %v8799_v20 = vpop.permute.xlu1 %4591  ;;  %v8801_v29 = vpop.permute.xlu0 %4531  ;;  %3560 = vmatprep.subr.bf16.mxu0 %v3011_v49  ;;  %v10355_v56 = vld [vmem:[#allocation36_spill] sm:$0xff]  ;;  %v3058_v49 = vsel %vm2643_vm13, %v8577_v7, %v6514_v31  ;;  %v10356_v31 = vld [vmem:[#allocation47_spill] sm:$0xff] }
 0x36b   : > { %6572 = vrot.lane.b32.xlu1 %v10278_v10, %s6642_s26  ;;  %v4336_v22 = vsel %vm2530_vm12, %v10355_v56, %v10354_v18  ;;  %v4335_v63 = vsel %vm2530_vm12, %v6504_v14, %v10355_v56  ;;  %v4339_v25 = vsel %vm2530_vm12, %v10356_v31, %v8387_v36  ;;  %v6519_v14 = vunpack.i.l.bf16 %v8479_v45 }
 0x36c   : > { %4897 = vrot.lane.b32.xlu0 %v8065_v27, %s6642_s26  ;;  %v4338_v7 = vsel %vm2530_vm12, %v6505_v42, %v10356_v31 }
 0x36d   : > { %5140 = vmatpush1.bf16.msra.mxu1 %v4288_v4  ;;  %3561 = vmatpush1.bf16.msra.mxu0 %v3010_v62  ;;  %v3061_v4 = vsel %vm2643_vm13, %v8667_v26, %v6515_v44  ;;  %v3108_v56 = vsel %vm639_vm2, %v8530_v52, %v6519_v14  ;;  %v6524_v26 = vunpack.i.l.bf16 %v8718_v55  ;;  %v10359_v52 = vld [vmem:[#allocation27_spill] sm:$0xff]  ;;  %v3644_v55 = vld [vmem:[%s10194_s7] sm:$0xff] }
 0x36e   : > { %5141 = vmatprep.subr.bf16.mxu1 %v4336_v22  ;;  %v8819_v38 = vpop.permute.xlu1 %4541  ;;  %v8821_v6 = vpop.permute.xlu0 %4183  ;;  %3562 = vmatprep.subr.bf16.mxu0 %v3058_v49  ;;  %v10357_v22 = vld [vmem:[#allocation5_spill] sm:$0xff] }
 0x36f   : > { %4943 = vrot.lane.b32.xlu1 %v10306_v59, %s6643_s27 }
 0x370   : > { %4905 = vrot.lane.b32.xlu0 %v8105_v54, %s6642_s26 }
 0x371   : > { %5142 = vmatpush1.bf16.msra.mxu1 %v4335_v63  ;;  %3563 = vmatpush1.bf16.msra.mxu0 %v3057_v15  ;;  %v6520_v63 = vunpack.i.h.bf16 %v8479_v45 }
 0x372   : > { %5143 = vmatprep.subr.bf16.mxu1 %v4339_v25  ;;  %v8839_v34 = vpop.permute.xlu1 %4539  ;;  %v8841_v62 = vpop.permute.xlu0 %4543  ;;  %3564 = vmatprep.subr.bf16.mxu0 %v3061_v4  ;;  %v3158_v25 = vsel %vm690_vm3, %v8720_v2, %v6524_v26  ;;  %v3160_v26 = vsel %vm690_vm3, %v8603_v23, %v8739_v30 }
 0x373   : > { %4537 = vrot.lane.b32.xlu1 %v10278_v10, %s6643_s27  ;;  %v3111_v42 = vsel %vm639_vm2, %v8669_v11, %v6520_v63  ;;  %v3161_v63 = vsel %vm690_vm3, %v8739_v30, %v6525_v48  ;;  %v10365_v48 = vld [vmem:[#allocation28_spill] sm:$0xff]  ;;  %v10366_v30 = vld [vmem:[#allocation29_spill] sm:$0xff] }
 0x374   : > { %4945 = vrot.lane.b32.xlu0 %v8059_v3, %s6643_s27 }
 0x375   : > { %5144 = vmatpush1.bf16.msra.mxu1 %v4338_v7  ;;  %3565 = vmatpush1.bf16.msra.mxu0 %v3060_v43  ;;  %v6529_v7 = vunpack.i.l.bf16 %v8736_v46  ;;  %v10361_v43 = vld [vmem:[#allocation26_spill] sm:$0xff] }
 0x376   : > { %5145 = vmatprep.subr.bf16.mxu1 %v10357_v22  ;;  %v8856_v49 = vpop.permute.xlu1 %4633  ;;  %v8858_v44 = vpop.permute.xlu0 %6532  ;;  %3566 = vmatprep.subr.bf16.mxu0 %v3108_v56  ;;  %v10362_v56 = vld [vmem:[#allocation48_spill] sm:$0xff] }
 0x377   : > { %4953 = vrot.lane.b32.xlu1 %v8101_v9, %s6643_s27  ;;  %v4401_v22 = vsel %vm537_vm0, %v10362_v56, %v10361_v43 }
 0x378   : > { %4951 = vrot.lane.b32.xlu0 %v10310_v50, %s6643_s27 }
 0x379   : > { %5146 = vmatpush1.bf16.msra.mxu1 %v7593_v51  ;;  %3567 = vmatpush1.bf16.msra.mxu0 %v3107_v28  ;;  %v3110_v51 = vsel %vm639_vm2, %v8601_v1, %v8669_v11  ;;  %v10360_v1 = vld [vmem:[#allocation19_spill] sm:$0xff]  ;;  %v3157_v11 = vsel %vm690_vm3, %v8532_v58, %v8720_v2  ;;  %v10363_v58 = vld [vmem:[#allocation17_spill] sm:$0xff] }
 0x37a   : > { %5147 = vmatprep.subr.bf16.mxu1 %v7619_v16  ;;  %v8873_v45 = vpop.permute.xlu1 %4585  ;;  %v8875_v15 = vpop.permute.xlu0 %4225  ;;  %3568 = vmatprep.subr.bf16.mxu0 %v3111_v42  ;;  %v10358_v16 = vld [vmem:[#allocation14_spill] sm:$0xff]  ;;  %v4400_v2 = vsel %vm537_vm0, %v10363_v58, %v10362_v56  ;;  %v3646_v42 = vld [vmem:[%s10194_s7 + $0x10] sm:$0xff]  ;;  %v3647_v56 = vld [vmem:[%s10194_s7 + $0x18] sm:$0xff] }
 0x37b   : > { %4947 = vrot.lane.b32.xlu1 %v8065_v27, %s6643_s27  ;;  %v4398_v31 = vsel %vm537_vm0, %v10359_v52, %v10358_v16 }
 0x37c   : > { %4545 = vrot.lane.b32.xlu0 %v10278_v10, %s6643_s27 }
 0x37d   : > { %5148 = vmatpush1.bf16.msra.mxu1 %v7617_v19  ;;  %3569 = vmatpush1.bf16.msra.mxu0 %v3110_v51  ;;  %v4397_v19 = vsel %vm537_vm0, %v10360_v1, %v10359_v52  ;;  %v10364_v51 = vld [vmem:[#allocation8_spill] sm:$0xff]  ;;  %v4597_v52 = vsel %vm2377_vm9, %v6529_v7, %v8762_v0  ;;  %v4447_v1 = vsel %vm2643_vm13, %v10366_v30, %v10365_v48 }
 0x37e   : > { %5149 = vmatprep.subr.bf16.mxu1 %v4398_v31  ;;  %v8891_v4 = vpop.permute.xlu1 %4641  ;;  %v8893_v14 = vpop.permute.xlu0 %4587  ;;  %3591 = vmatprep.subr.bf16.mxu0 %v3158_v25  ;;  %v3645_v31 = vld [vmem:[%s10194_s7 + $0x8] sm:$0xff] }
 0x37f   : > { %4955 = vrot.lane.b32.xlu1 %v8105_v54, %s6643_s27 }
 0x380   : > { %4949 = vrot.lane.b32.xlu0 %v10278_v10, %s6643_s27  ;;  %3571 = vmatmul.mubr.bf16.vlgmr.msra.gmra.mrb[48].mxu0 %v8300_v35 }
 0x381   : > { %5150 = vmatpush1.bf16.msra.mxu1 %v4397_v19  ;;  %3592 = vmatpush1.bf16.msra.mxu0 %v3157_v11  ;;  %v3692_v19 = vld [vmem:[%s10195_s8] sm:$0xff]  ;;  %v10367_v11 = vld [vmem:[#allocation7_spill] sm:$0xff] }
 0x382   : > { %5151 = vmatprep.subr.bf16.mxu1 %v4401_v22  ;;  %v8915_v35 = vpop.permute.xlu1 %4593  ;;  %v8917_v28 = vpop.permute.xlu0 %4233  ;;  %3593 = vmatprep.subr.bf16.mxu0 %v3161_v63 }
 0x383   : > { %3650 = vperm.xlu1 %6425, %v3644_v55   ;;  %3580 = vmatprep.mubr.bf16.mxu0 %v8308_v13  ;;  %v4448_v13 = vsel %vm2643_vm13, %v10365_v48, %v10364_v51  ;;  %v10368_v55 = vld [vmem:[#allocation22_spill] sm:$0xff] }
 0x384   : > { %4957 = vrot.lane.b32.xlu0 %v10278_v10, %s6643_s27  ;;  %v4451_v7 = vsel %vm2643_vm13, %v10368_v55, %v10367_v11  ;;  %v3693_v48 = vld [vmem:[%s10195_s8 + $0x8] sm:$0xff] }
 0x385   : > { %5152 = vmatpush1.bf16.msra.mxu1 %v4400_v2  ;;  %3594 = vmatpush1.bf16.msra.mxu0 %v3160_v26  ;;  %v3694_v2 = vld [vmem:[%s10195_s8 + $0x10] sm:$0xff]  ;;  %v10370_v26 = vld [vmem:[#allocation12_spill] sm:$0xff] }
 0x386   : > { %5153 = vmatprep.subr.bf16.mxu1 %v4448_v13  ;;  %v8939_v25 = vpop.permute.xlu1 %6537  ;;  %v8941_v23 = vpop.permute.xlu0 %4595  ;;  %5235 = vmatprep.subr.bf16.mxu0 %v4597_v52  ;;  %v4497_v30 = vsel %vm639_vm2, %v8684_v8, %v10370_v26 }
 0x387   : > { %3660 = vperm.xlu1 %6425, %v3646_v42   ;;  %v4498_v42 = vsel %vm639_vm2, %v10370_v26, %v8575_v17  ;;  %v4547_v26 = vsel %vm690_vm3, %v8801_v29, %v8781_v61  ;;  %v9057_v29 = vld [vmem:[%s6728_s23 + $0x18] sm:$0xff] }
 0x388   : > { %3655 = vperm.xlu0 %6424, %v3645_v31   ;;  %3581 = vmatmul.mubr.bf16.gmra.mrb[52].mxu0 %v10334_v47  ;;  %v10369_v47 = vld [vmem:[#allocation16_spill] sm:$0xff]  ;;  %v6530_v31 = vunpack.i.h.bf16 %v8736_v46  ;;  %v4501_v46 = vsel %vm639_vm2, %v8682_v21, %v8699_v53 }
 0x389   : > { %5154 = vmatpush1.bf16.msra.mxu1 %v4447_v1  ;;  %3623 = vmatprep.mubr.bf16.mxu0 %v10278_v10  ;;  %v4450_v58 = vsel %vm2643_vm13, %v10369_v47, %v10368_v55  ;;  %v4187_v1 = vsel %vm2377_vm9, %v8099_v12, %v8759_v37  ;;  %v6534_v55 = vunpack.i.l.bf16 %v8858_v44  ;;  %v3695_v12 = vld [vmem:[%s10195_s8 + $0x18] sm:$0xff]  ;;  %v9014_v47 = vld [vmem:[%s10191_s4] ss:$12 sps:$4 sm:$0xff]  }
 0x38a   : > { %5155 = vmatprep.subr.bf16.mxu1 %v4451_v7  ;;  %v8957_v22 = vpop.permute.xlu1 %4275  ;;  %v8959_v63 = vpop.permute.xlu0 %4683  ;;  %v4600_v8 = vsel %vm2377_vm9, %v6530_v31, %v8799_v20  ;;  %v4500_v7 = vsel %vm639_vm2, %v8697_v60, %v8682_v21  ;;  %v9025_v60 = vld [vmem:[%s6728_s23 + $0x8] sm:$0xff] }
 0x38b   : > { %3698 = vperm.xlu1 %6425, %v3692_v19   ;;  %v8987_v19 = vld [vmem:[%s6728_s23] sm:$0xff]  ;;  %v4647_v21 = vsel %vm2428_vm10, %v6534_v55, %v8856_v49  ;;  %v9046_v31 = vld [vmem:[%s10191_s4 + $0x1c] ss:$12 sps:$4 sm:$0xff]  }
 0x38c   : > { %3665 = vperm.xlu0 %6424, %v3647_v56   ;;  %v4190_v56 = vsel %vm2377_vm9, %v10336_v39, %v8821_v6  ;;  %v9075_v55 = vld [vmem:[%s10191_s4 + $0x18] ss:$12 sps:$4 sm:$0xff]  }
 0x38d   : > { %5156 = vmatpush1.bf16.msra.mxu1 %v4450_v58  ;;  %v9017_v58 = vld [vmem:[%s6728_s23 + $0x10] sm:$0xff] }
 0x38e   : > { %5157 = vmatprep.subr.bf16.mxu1 %v4498_v42  ;;  %v8973_v13 = vpop.permute.xlu1 %4637  ;;  %v8975_v52 = vpop.permute.xlu0 %4635  ;;  %v6535_v42 = vunpack.i.h.bf16 %v8858_v44  ;;  %v6539_v44 = vunpack.i.l.bf16 %v8939_v25 }
 0x38f   : > { %3708 = vperm.xlu1 %6425, %v3694_v2   ;;  %v4548_v2 = vsel %vm690_vm3, %v8781_v61, %v8779_v32  ;;  %v4551_v61 = vsel %vm690_vm3, %v8819_v38, %v8841_v62 }
 0x390   : > { %3703 = vperm.xlu0 %6424, %v3693_v48   ;;  %6196 = vmatmul.mubr.msk.bf16.vlgmr.msra.gmra.mrb[48].mxu0 %vm1509_vm8, %v8366_v41  ;;  %v9041_v48 = vld [vmem:[%s6728_s23 + $0x20] sm:$0xff] }
 0x391   : > { %5158 = vmatpush1.bf16.msra.mxu1 %v4497_v30  ;;  %5236 = vmatpush1.bf16.msra.mxu0 %v4187_v1  ;;  %v4237_v30 = vsel %vm2428_vm10, %v10338_v24, %v8875_v15  ;;  %v4650_v1 = vsel %vm2428_vm10, %v6535_v42, %v8891_v4 }
 0x392   : > { %5159 = vmatprep.subr.bf16.mxu1 %v4501_v46  ;;  %5237 = vmatprep.subr.bf16.mxu0 %v4600_v8  ;;  %v8998_v41 = vpop.permute.xlu1 %4283  ;;  %v9000_v37 = vpop.permute.xlu0 %4691  ;;  %v9078_v46 = vld [vmem:[%s6728_s23 + $0x30] sm:$0xff]  ;;  %v4240_v8 = vsel %vm2428_vm10, %v10343_v40, %v8917_v28  ;;  %v6540_v40 = vunpack.i.h.bf16 %v8939_v25  ;;  %v4287_v28 = vsel %vm2479_vm11, %v10347_v57, %v8957_v22 }
 0x393   : > { %3772 = vrot.lane.b32.xlu1 %v8987_v19, %s6643_s27  ;;  %3633 = vmatprep.mubr.bf16.mxu0 %v10278_v10  ;;  %v9123_v57 = vld [vmem:[%s10191_s4 + $0x8] ss:$12 sps:$4 sm:$0xff]  }
 0x394   : > { %3713 = vperm.xlu0 %6424, %v3695_v12   ;;  %v4697_v12 = vsel %vm2479_vm11, %v6539_v44, %v8959_v63  ;;  %v4700_v25 = vsel %vm2479_vm11, %v6540_v40, %v9000_v37  ;;  %v9126_v22 = vld [vmem:[%s6728_s23 + $0x50] sm:$0xff]  ;;  %v9132_v44 = vld [vmem:[%s6728_s23 + $0x48] sm:$0xff] }
 0x395   : > { %5160 = vmatpush1.bf16.msra.mxu1 %v4500_v7  ;;  %5238 = vmatpush1.bf16.msra.mxu0 %v4190_v56 }
 0x396   : > { %5182 = vmatprep.subr.bf16.mxu1 %v4548_v2  ;;  %5239 = vmatprep.subr.bf16.mxu0 %v4647_v21  ;;  %v9027_v39 = vpop.permute.xlu1 %4645  ;;  %v9029_v6 = vpop.permute.xlu0 %4643  ;;  %v9107_v2 = vld [vmem:[%s6728_s23 + $0x38] sm:$0xff] }
 0x397   : > { %3776 = vrot.lane.b32.xlu1 %v9017_v58, %s6643_s27 }
 0x398   : > { %5162 = vmatmul.mubr.bf16.vlgmr.msra.gmra.mrb[32].mxu1 %v9014_v47  ;;  %3774 = vrot.lane.b32.xlu0 %v9025_v60, %s6643_s27 }
 0x399   : > { %6197 = vmatmul.mubr.msk.bf16.gmra.mrb[52].mxu0 %vm1509_vm8, %v8400_v33  ;;  %5183 = vmatpush1.bf16.msra.mxu1 %v4547_v26  ;;  %v4550_v33 = vsel %vm690_vm3, %v8839_v34, %v8819_v38  ;;  %v4599_v38 = vsel %vm2377_vm9, %v8873_v45, %v8893_v14  ;;  %v9087_v34 = vld [vmem:[%s6728_s23 + $0x28] sm:$0xff]  ;;  %v9101_v14 = vld [vmem:[%s6728_s23 + $0x40] sm:$0xff] }
 0x39a   : > { %5240 = vmatpush1.bf16.msra.mxu0 %v4237_v30  ;;  %5184 = vmatprep.subr.bf16.mxu1 %v4551_v61  ;;  %v9062_v24 = vpop.permute.xlu1 %4733  ;;  %v6543_v15 = vpop.permute.xlu0 %6542  ;;  %v10371_v30 = vld [vmem:[#allocation46_spill] sm:$0xff] }
 0x39b   : > { %5241 = vmatprep.subr.bf16.mxu0 %v4650_v1  ;;  %3780 = vrot.lane.b32.xlu1 %v9041_v48, %s6643_s27  ;;  %v6544_v21 = vunpack.i.l.bf16 %v6543_v15  ;;  %v4290_v61 = vsel %vm2479_vm11, %v10371_v30, %v8998_v41  ;;  %v4598_v41 = vsel %vm2377_vm9, %v8762_v0, %v8873_v45 }
 0x39c   : > { %3778 = vrot.lane.b32.xlu0 %v9057_v29, %s6643_s27  ;;  %5171 = vmatprep.mubr.bf16.mxu1 %v9046_v31 }
 0x39d   : > { %5185 = vmatpush1.bf16.msra.mxu1 %v4550_v33  ;;  %5267 = vmatprep.mubr.bf16.mxu0 %v8746_v5  ;;  %v4747_v1 = vsel %vm2530_vm12, %v6544_v21, %v9062_v24 }
 0x39e   : > { %5242 = vmatpush1.bf16.msra.mxu0 %v4240_v8  ;;  %5341 = vmatprep.subr.bf16.mxu1 %v4599_v38  ;;  %v9092_v7 = vpop.permute.xlu1 %4685  ;;  %v4326_v56 = vpop.permute.xlu0 %4325  ;;  %v6545_v38 = vunpack.i.h.bf16 %v6543_v15  ;;  %v4602_v15 = vsel %vm2377_vm9, %v8915_v35, %v8941_v23  ;;  %v9173_v23 = vld [vmem:[%s10191_s4 + $0x20] ss:$12 sps:$4 sm:$0xff]  }
 0x39f   : > { %5243 = vmatprep.subr.bf16.mxu0 %v4697_v12  ;;  %3784 = vrot.lane.b32.xlu1 %v9078_v46, %s6643_s27  ;;  %v9148_v12 = vld [vmem:[%s6728_s23 + $0x60] sm:$0xff]  ;;  %v4337_v40 = vsel %vm2530_vm12, %v10354_v18, %v4326_v56  ;;  %v4601_v18 = vsel %vm2377_vm9, %v8799_v20, %v8915_v35  ;;  %v9176_v56 = vld [vmem:[%s6728_s23 + $0x70] sm:$0xff]  ;;  %v4649_v20 = vsel %vm2428_vm10, %v8975_v52, %v8973_v13  ;;  %v9184_v35 = vld [vmem:[%s6728_s23 + $0x68] sm:$0xff] }
 0x3a0   : > { %5172 = vmatmul.mubr.bf16.gmra.mrb[36].mxu1 %v9075_v55  ;;  %3782 = vrot.lane.b32.xlu0 %v9087_v34, %s6643_s27  ;;  %v9199_v13 = vld [vmem:[%s6728_s23 + $0x80] sm:$0xff] }
 0x3a1   : > { %5214 = vmatprep.mubr.bf16.mxu1 %v10278_v10 }
 0x3a2   : > { %5244 = vmatpush1.bf16.msra.mxu0 %v4287_v28  ;;  %v9112_v26 = vpop.permute.xlu1 %4741  ;;  %v9114_v42 = vpop.permute.xlu0 %4687  ;;  %v9156_v28 = vld [vmem:[%s6728_s23 + $0x58] sm:$0xff] }
 0x3a3   : > { %5245 = vmatprep.subr.bf16.mxu0 %v4700_v25  ;;  %3788 = vrot.lane.b32.xlu1 %v9101_v14, %s6643_s27  ;;  %v4750_v0 = vsel %vm2530_vm12, %v6545_v38, %v9112_v26 }
 0x3a4   : > { %3786 = vrot.lane.b32.xlu0 %v9107_v2, %s6643_s27 }
 0x3a6   : > { %5246 = vmatpush1.bf16.msra.mxu0 %v4290_v61  ;;  %v9136_v33 = vpop.permute.xlu1 %4693  ;;  %v4334_v8 = vpop.permute.xlu0 %4333 }
 0x3a7   : > { %5247 = vmatprep.subr.bf16.mxu0 %v4747_v1  ;;  %3792 = vrot.lane.b32.xlu1 %v9126_v22, %s6643_s27  ;;  %v4340_v25 = vsel %vm2530_vm12, %v8387_v36, %v4334_v8  ;;  %v4648_v36 = vsel %vm2428_vm10, %v8856_v49, %v8975_v52  ;;  %v9205_v1 = vld [vmem:[%s6728_s23 + $0x78] sm:$0xff]  ;;  %v10372_v8 = vld [vmem:[#allocation15_spill] sm:$0xff]  ;;  %v4651_v52 = vsel %vm2428_vm10, %v8891_v4, %v9029_v6 }
 0x3a8   : > { %6244 = vmatmul.mubr.msk.bf16.vlgmr.msra.gmra.mrb[32].mxu1 %vm1509_vm8, %v9123_v57  ;;  %3790 = vrot.lane.b32.xlu0 %v9132_v44, %s6643_s27 }
 0x3a9   : > { %5342 = vmatpush1.bf16.msra.mxu1 %v4598_v41  ;;  %5224 = vmatprep.mubr.bf16.mxu1 %v10278_v10  ;;  %v9224_v41 = vld [vmem:[%s6728_s23 + $0x88] sm:$0xff] }
 0x3aa   : > { %5248 = vmatpush1.bf16.msra.mxu0 %v4337_v40  ;;  %5343 = vmatprep.subr.bf16.mxu1 %v4602_v15  ;;  %v9161_v45 = vpop.permute.xlu1 %4735  ;;  %v4696_v21 = vpop.permute.xlu0 %4695 }
 0x3ab   : > { %5249 = vmatprep.subr.bf16.mxu0 %v4750_v0  ;;  %3796 = vrot.lane.b32.xlu1 %v9148_v12, %s6643_s27 }
 0x3ac   : > { %3794 = vrot.lane.b32.xlu0 %v9156_v28, %s6643_s27 }
 0x3ad   : > { %5344 = vmatpush1.bf16.msra.mxu1 %v4601_v18 }
 0x3ae   : > { %5250 = vmatpush1.bf16.msra.mxu0 %v4340_v25  ;;  %5345 = vmatprep.subr.bf16.mxu1 %v4649_v20  ;;  %v9186_v30 = vpop.permute.xlu1 %4743  ;;  %v4738_v61 = vpop.permute.xlu0 %4737  ;;  %v4702_v25 = vsel %vm2479_vm11, %v9136_v33, %v4696_v21  ;;  %v4701_v21 = vsel %vm2479_vm11, %v9000_v37, %v9136_v33  ;;  %v4748_v33 = vsel %vm2530_vm12, %v9062_v24, %v9161_v45 }
 0x3af   : > { %5251 = vmatprep.subr.bf16.mxu0 %v10306_v59  ;;  %3800 = vrot.lane.b32.xlu1 %v9176_v56, %s6643_s27  ;;  %v4652_v59 = vsel %vm2428_vm10, %v9029_v6, %v9027_v39  ;;  %v9218_v39 = vld [vmem:[%s6728_s23 + $0x90] sm:$0xff]  ;;  %v4698_v6 = vsel %vm2479_vm11, %v8959_v63, %v9092_v7  ;;  %v5447_v63 = vld [vmem:[%s10194_s7 + $0x20] sm:$0xff]  ;;  %v4751_v24 = vsel %vm2530_vm12, %v9112_v26, %v9186_v30 }
 0x3b0   : > { %6245 = vmatmul.mubr.msk.bf16.gmra.mrb[36].mxu1 %vm1509_vm8, %v9173_v23  ;;  %3798 = vrot.lane.b32.xlu0 %v9184_v35, %s6643_s27 }
 0x3b1   : > { %5346 = vmatpush1.bf16.msra.mxu1 %v4648_v36  ;;  %5373 = vmatprep.mubr.bf16.mxu1 %v8746_v5  ;;  %v4699_v5 = vsel %vm2479_vm11, %v9092_v7, %v9114_v42  ;;  %v5448_v42 = vld [vmem:[%s10194_s7 + $0x28] sm:$0xff] }
 0x3b2   : > { %5252 = vmatpush1.bf16.msra.mxu0 %v10372_v8  ;;  %5347 = vmatprep.subr.bf16.mxu1 %v4652_v59  ;;  %v4794_v38 = vpop.permute.xlu1 %4793  ;;  %v4746_v49 = vpop.permute.xlu0 %4745  ;;  %v4749_v8 = vsel %vm2530_vm12, %v9161_v45, %v4738_v61  ;;  %v5449_v45 = vld [vmem:[%s10194_s7 + $0x30] sm:$0xff] }
 0x3b3   : > { %5253 = vmatprep.subr.bf16.mxu0 %v10310_v50  ;;  %3978 = vrot.lane.b32.xlu1 %v9199_v13, %s6643_s27  ;;  %v10373_v50 = vld [vmem:[#allocation21_spill] sm:$0xff]  ;;  %v4752_v61 = vsel %vm2530_vm12, %v9186_v30, %v4746_v49  ;;  %v5496_v30 = vld [vmem:[%s10195_s8 + $0x28] sm:$0xff] }
 0x3b4   : > { %3802 = vrot.lane.b32.xlu0 %v9205_v1, %s6643_s27 }
 0x3b5   : > { %5348 = vmatpush1.bf16.msra.mxu1 %v4651_v52  ;;  %v9263_v52 = vld [vmem:[%s6728_s23 + $0x98] sm:$0xff] }
 0x3b6   : > { %5254 = vmatpush1.bf16.msra.mxu0 %v10373_v50  ;;  %5349 = vmatprep.subr.bf16.mxu1 %v4699_v5  ;;  %v6548_v40 = vpop.permute.xlu1 %6547  ;;  %v9227_v15 = vpop.permute.xlu0 %4795 }
 0x3b7   : > { %v6549_v0 = vunpack.i.l.bf16 %v6548_v40  ;;  %3982 = vrot.lane.b32.xlu1 %v9218_v39, %s6643_s27  ;;  %v4809_v4 = vsel %vm537_vm0, %v4794_v38, %v9227_v15  ;;  %v6550_v18 = vunpack.i.h.bf16 %v6548_v40  ;;  %v9282_v40 = vld [vmem:[%s6728_s23 + $0xa8] sm:$0xff] }
 0x3b8   : > { %3980 = vrot.lane.b32.xlu0 %v9224_v41, %s6643_s27  ;;  %5255 = vmatprep.subr.bf16.mxu0 %v4809_v4 }
 0x3b9   : > { %5350 = vmatpush1.bf16.msra.mxu1 %v4698_v6  ;;  %v4399_v20 = vsel %vm537_vm0, %v10358_v16, %v6549_v0  ;;  %v9256_v16 = vld [vmem:[%s6728_s23 + $0xa0] sm:$0xff]  ;;  %v4402_v38 = vsel %vm537_vm0, %v10361_v43, %v6550_v18  ;;  %v9277_v43 = vld [vmem:[%s6728_s23 + $0xb0] sm:$0xff] }
 0x3ba   : > { %5351 = vmatprep.subr.bf16.mxu1 %v4702_v25  ;;  %v9248_v7 = vpop.permute.xlu1 %4803  ;;  %v4802_v36 = vpop.permute.xlu0 %4801  ;;  %5256 = vmatpush1.bf16.msra.mxu0 %v4399_v20 }
 0x3bb   : > { %5458 = vperm.xlu1 %6425, %v5448_v42   ;;  %v4812_v59 = vsel %vm537_vm0, %v4802_v36, %v9248_v7  ;;  %v9297_v42 = vld [vmem:[%s6728_s23 + $0xb8] sm:$0xff] }
 0x3bc   : > { %5453 = vperm.xlu0 %6424, %v5447_v63   ;;  %5257 = vmatprep.subr.bf16.mxu0 %v4812_v59 }
 0x3bd   : > { %5352 = vmatpush1.bf16.msra.mxu1 %v4701_v21  ;;  %v9319_v21 = vld [vmem:[%s6728_s23 + $0xc8] sm:$0xff] }
 0x3be   : > { %5353 = vmatprep.subr.bf16.mxu1 %v4749_v8  ;;  %v9265_v5 = vpop.permute.xlu1 %4845  ;;  %v4844_v50 = vpop.permute.xlu0 %4843  ;;  %5258 = vmatpush1.bf16.msra.mxu0 %v4402_v38  ;;  %v9326_v38 = vld [vmem:[%s6728_s23 + $0xc0] sm:$0xff] }
 0x3bf   : > { %3986 = vrot.lane.b32.xlu1 %v9256_v16, %s6643_s27  ;;  %v4859_v37 = vsel %vm2643_vm13, %v4844_v50, %v9265_v5 }
 0x3c0   : > { %3984 = vrot.lane.b32.xlu0 %v9263_v52, %s6643_s27  ;;  %5259 = vmatprep.subr.bf16.mxu0 %v4859_v37 }
 0x3c1   : > { %5354 = vmatpush1.bf16.msra.mxu1 %v4748_v33 }
 0x3c2   : > { %5355 = vmatprep.subr.bf16.mxu1 %v4752_v61  ;;  %v4798_v0 = vpop.permute.xlu1 %4797  ;;  %v6553_v4 = vpop.permute.xlu0 %6552 }
 0x3c3   : > { %v6554_v6 = vunpack.i.l.bf16 %v6553_v4  ;;  %3990 = vrot.lane.b32.xlu1 %v9277_v43, %s6643_s27  ;;  %v6555_v26 = vunpack.i.h.bf16 %v6553_v4  ;;  %v4810_v4 = vsel %vm537_vm0, %v9227_v15, %v4798_v0 }
 0x3c4   : > { %3988 = vrot.lane.b32.xlu0 %v9282_v40, %s6643_s27 }
 0x3c5   : > { %5356 = vmatpush1.bf16.msra.mxu1 %v4751_v24  ;;  %v4449_v49 = vsel %vm2643_vm13, %v10364_v51, %v6554_v6  ;;  %v9343_v6 = vld [vmem:[%s6728_s23 + $0xd8] sm:$0xff] }
 0x3c6   : > { %5357 = vmatprep.subr.bf16.mxu1 %v8065_v27  ;;  %v4852_v18 = vpop.permute.xlu1 %4851  ;;  %v6558_v25 = vpop.permute.xlu0 %6557  ;;  %5260 = vmatpush1.bf16.msra.mxu0 %v4449_v49  ;;  %v5495_v27 = vld [vmem:[%s10195_s8 + $0x20] sm:$0xff] }
 0x3c7   : > { %5463 = vperm.xlu1 %6425, %v5449_v45   ;;  %v6559_v20 = vunpack.i.l.bf16 %v6558_v25  ;;  %v9347_v45 = vld [vmem:[%s6728_s23 + $0xd0] sm:$0xff] }
 0x3c8   : > { %3992 = vrot.lane.b32.xlu0 %v9297_v42, %s6643_s27 }
 0x3c9   : > { %5358 = vmatpush1.bf16.msra.mxu1 %v8059_v3  ;;  %v4452_v3 = vsel %vm2643_vm13, %v10367_v11, %v6555_v26  ;;  %v6560_v11 = vunpack.i.h.bf16 %v6558_v25 }
 0x3ca   : > { %5359 = vmatprep.subr.bf16.mxu1 %v8105_v54  ;;  %v4806_v51 = vpop.permute.xlu1 %4805  ;;  %v9310_v63 = vpop.permute.xlu0 %4853  ;;  %v4811_v54 = vsel %vm537_vm0, %v4798_v0, %v6559_v20  ;;  %v5497_v0 = vld [vmem:[%s10195_s8 + $0x30] sm:$0xff] }
 0x3cb   : > { %5506 = vperm.xlu1 %6425, %v5496_v30   ;;  %v4862_v36 = vsel %vm2643_vm13, %v4852_v18, %v9310_v63  ;;  %v9314_v59 = vpop.f32.mrb[16].mxu1  ;;  %v4814_v24 = vsel %vm537_vm0, %v4806_v51, %v6560_v11  ;;  %v4813_v15 = vsel %vm537_vm0, %v9248_v7, %v4806_v51  ;;  %v9372_v11 = vld [vmem:[%s6728_s23 + $0xe8] sm:$0xff] }
 0x3cc   : > { %5501 = vperm.xlu0 %6424, %v5495_v27   ;;  %5261 = vmatprep.subr.bf16.mxu0 %v4862_v36  ;;  %v9321_v8 = vpop.f32.mrb[17].mxu1  ;;  %v5450_v27 = vld [vmem:[%s10194_s7 + $0x38] sm:$0xff] }
 0x3cd   : > { %5360 = vmatpush1.bf16.msra.mxu1 %v8101_v9  ;;  %5262 = vmatpush1.bf16.msra.mxu0 %v4452_v3  ;;  %v9328_v50 = vpop.f32.mrb[18].mxu1 }
 0x3ce   : > { %5361 = vmatprep.subr.bf16.mxu1 %v4811_v54  ;;  %v9330_v37 = vpop.permute.xlu1 %4895  ;;  %v4894_v33 = vpop.permute.xlu0 %4893 }
 0x3cf   : > { %3996 = vrot.lane.b32.xlu1 %v9319_v21, %s6643_s27  ;;  %v4909_v61 = vsel %vm639_vm2, %v4894_v33, %v9330_v37  ;;  %v9336_v9 = vpop.f32.mrb[19].mxu1 }
 0x3d0   : > { %3994 = vrot.lane.b32.xlu0 %v9326_v38, %s6643_s27  ;;  %5263 = vmatprep.subr.bf16.mxu0 %v4909_v61 }
 0x3d1   : > { %5362 = vmatpush1.bf16.msra.mxu1 %v4810_v4  ;;  %v9376_v4 = vld [vmem:[%s6728_s23 + $0xe0] sm:$0xff] }
 0x3d2   : > { %5363 = vmatprep.subr.bf16.mxu1 %v4814_v24  ;;  %v4848_v49 = vpop.permute.xlu1 %4847  ;;  %v6563_v18 = vpop.permute.xlu0 %6562 }
 0x3d3   : > { %v6564_v25 = vunpack.i.l.bf16 %v6563_v18  ;;  %4000 = vrot.lane.b32.xlu1 %v9343_v6, %s6643_s27  ;;  %v9351_v26 = vpop.f32.mrb[20].mxu1  ;;  %v6565_v33 = vunpack.i.h.bf16 %v6563_v18  ;;  %v4860_v24 = vsel %vm2643_vm13, %v9265_v5, %v4848_v49  ;;  %v9392_v5 = vld [vmem:[%s6728_s23 + $0xf0] sm:$0xff] }
 0x3d4   : > { %3998 = vrot.lane.b32.xlu0 %v9347_v45, %s6643_s27  ;;  %v9360_v30 = vpop.f32.mrb[21].mxu1 }
 0x3d5   : > { %5364 = vmatpush1.bf16.msra.mxu1 %v4813_v15  ;;  %v4499_v20 = vsel %vm639_vm2, %v8575_v17, %v6564_v25  ;;  %v9367_v7 = vpop.f32.mrb[22].mxu1 }
 0x3d6   : > { %v4902_v51 = vpop.permute.xlu1 %4901  ;;  %v6568_v36 = vpop.permute.xlu0 %6567  ;;  %5264 = vmatpush1.bf16.msra.mxu0 %v4499_v20  ;;  %v4502_v20 = vsel %vm639_vm2, %v8699_v53, %v6565_v33  ;;  %v5498_v33 = vld [vmem:[%s10195_s8 + $0x38] sm:$0xff] }
 0x3d7   : > { %v6569_v3 = vunpack.i.l.bf16 %v6568_v36  ;;  %5511 = vperm.xlu1 %6425, %v5497_v0   ;;  %v9369_v54 = vpop.f32.mrb[23].mxu1  ;;  %v6570_v61 = vunpack.i.h.bf16 %v6568_v36 }
 0x3d8   : > { %5468 = vperm.xlu0 %6424, %v5450_v27   ;;  %v9389_v27 = vld [vmem:[%s6728_s23 + $0xf8] sm:$0xff] }
 0x3d9   : > { %v4861_v17 = vsel %vm2643_vm13, %v4848_v49, %v6569_v3 }
 0x3da   : > { %v4856_v25 = vpop.permute.xlu1 %4855  ;;  %v4904_v15 = vpop.permute.xlu0 %4903  ;;  %5365 = vmatprep.subr.bf16.mxu1 %v4861_v17 }
 0x3db   : > { %5366 = vmatpush1.bf16.msra.mxu1 %v4860_v24  ;;  %v4912_v0 = vsel %vm639_vm2, %v4902_v51, %v4904_v15  ;;  %v4864_v18 = vsel %vm2643_vm13, %v4856_v25, %v6570_v61  ;;  %4004 = vrot.lane.b32.xlu1 %v9372_v11, %s6643_s27  ;;  %v4863_v49 = vsel %vm2643_vm13, %v9310_v63, %v4856_v25 }
 0x3dc   : > { %4002 = vrot.lane.b32.xlu0 %v9376_v4, %s6643_s27  ;;  %5265 = vmatprep.subr.bf16.mxu0 %v4912_v0 }
 0x3dd   : > { %5367 = vmatprep.subr.bf16.mxu1 %v4864_v18  ;;  %5266 = vmatpush1.bf16.msra.mxu0 %v4502_v20 }
 0x3de   : > { %v6573_v51 = vpop.permute.xlu1 %6572  ;;  %v4898_v36 = vpop.permute.xlu0 %4897 }
 0x3df   : > { %v6575_v3 = vunpack.i.h.bf16 %v6573_v51  ;;  %v6574_v61 = vunpack.i.l.bf16 %v6573_v51  ;;  %5368 = vmatpush1.bf16.msra.mxu1 %v4863_v49  ;;  %4008 = vrot.lane.b32.xlu1 %v9389_v27, %s6643_s27  ;;  %v4910_v63 = vsel %vm639_vm2, %v9330_v37, %v4898_v36 }
 0x3e0   : > { %4006 = vrot.lane.b32.xlu0 %v9392_v5, %s6643_s27  ;;  %5268 = vmatmul.mubr.bf16.vlgmr.msra.gmra.mrb[56].mxu0 %v9014_v47 }
 0x3e1   : > { %v4911_v53 = vsel %vm639_vm2, %v4898_v36, %v6574_v61  ;;  %5277 = vmatprep.mubr.bf16.mxu0 %v9046_v31 }
 0x3e2   : > { %v4944_v17 = vpop.permute.xlu1 %4943  ;;  %v4906_v24 = vpop.permute.xlu0 %4905  ;;  %5369 = vmatprep.subr.bf16.mxu1 %v4911_v53 }
 0x3e3   : > { %5370 = vmatpush1.bf16.msra.mxu1 %v4910_v63  ;;  %v4914_v25 = vsel %vm639_vm2, %v4906_v24, %v6575_v3  ;;  %5575 = vrot.lane.b32.xlu1 %v8987_v19, %s6643_s27  ;;  %v4913_v0 = vsel %vm639_vm2, %v4904_v15, %v4906_v24 }
 0x3e4   : > { %5516 = vperm.xlu0 %6424, %v5498_v33   ;;  %5371 = vmatprep.subr.bf16.mxu1 %v4914_v25 }
 0x3e6   : > { %v4538_v18 = vpop.permute.xlu1 %4537  ;;  %v4946_v20 = vpop.permute.xlu0 %4945 }
 0x3e7   : > { %v4549_v49 = vsel %vm690_vm3, %v8779_v32, %v4538_v18  ;;  %5372 = vmatpush1.bf16.msra.mxu1 %v4913_v0  ;;  %v4959_v37 = vsel %vm690_vm3, %v4944_v17, %v4946_v20  ;;  %5579 = vrot.lane.b32.xlu1 %v9017_v58, %s6643_s27 }
 0x3e8   : > { %5288 = vmatprep.subr.bf16.mxu0 %v4959_v37  ;;  %5278 = vmatmul.mubr.bf16.gmra.mrb[60].mxu0 %v9075_v55 }
 0x3e9   : > { %5289 = vmatpush1.bf16.msra.mxu0 %v4549_v49  ;;  %5320 = vmatprep.mubr.bf16.mxu0 %v10278_v10 }
 0x3ea   : > { %v4954_v19 = vpop.permute.xlu1 %4953  ;;  %v4952_v51 = vpop.permute.xlu0 %4951  ;;  %5374 = vmatmul.mubr.bf16.vlgmr.msra.gmra.mrb[40].mxu1 %v9014_v47  ;;  %5577 = vrot.lane.b32.xlu0 %v9025_v60, %s6643_s27 }
 0x3eb   : > { %v4962_v32 = vsel %vm690_vm3, %v4952_v51, %v4954_v19  ;;  %5383 = vmatprep.mubr.bf16.mxu1 %v9046_v31  ;;  %5583 = vrot.lane.b32.xlu1 %v9041_v48, %s6643_s27 }
 0x3ec   : > { %5290 = vmatprep.subr.bf16.mxu0 %v4962_v32 }
 0x3ee   : > { %v4546_v58 = vpop.permute.xlu0 %4545  ;;  %5581 = vrot.lane.b32.xlu0 %v9057_v29, %s6643_s27  ;;  %v4948_v15 = vpop.permute.xlu1 %4947 }
 0x3ef   : > { %v4552_v36 = vsel %vm690_vm3, %v8841_v62, %v4546_v58  ;;  %5587 = vrot.lane.b32.xlu1 %v9078_v46, %s6643_s27  ;;  %v4960_v48 = vsel %vm690_vm3, %v4946_v20, %v4948_v15 }
 0x3f0   : > { %5291 = vmatpush1.bf16.msra.mxu0 %v4552_v36 }
 0x3f2   : > { %v4950_v47 = vpop.permute.xlu0 %4949  ;;  %5384 = vmatmul.mubr.bf16.gmra.mrb[44].mxu1 %v9075_v55  ;;  %5585 = vrot.lane.b32.xlu0 %v9087_v34, %s6643_s27  ;;  %v4956_v62 = vpop.permute.xlu1 %4955 }
 0x3f3   : > { %6246 = vmatmul.mubr.msk.bf16.vlgmr.msra.gmra.mrb[56].mxu0 %vm1509_vm8, %v9123_v57  ;;  %v4961_v60 = vsel %vm690_vm3, %v4948_v15, %v4950_v47  ;;  %5426 = vmatprep.mubr.bf16.mxu1 %v10278_v10  ;;  %v4963_v55 = vsel %vm690_vm3, %v4954_v19, %v4956_v62 }
 0x3f4   : > { %5394 = vmatprep.subr.bf16.mxu1 %v4961_v60  ;;  %5330 = vmatprep.mubr.bf16.mxu0 %v10278_v10 }
 0x3f5   : > { %5395 = vmatpush1.bf16.msra.mxu1 %v4960_v48  ;;  %5591 = vrot.lane.b32.xlu1 %v9101_v14, %s6643_s27 }
 0x3f6   : > { %v4958_v31 = vpop.permute.xlu0 %4957  ;;  %5589 = vrot.lane.b32.xlu0 %v9107_v2, %s6643_s27 }
 0x3f7   : > { %v4964_v29 = vsel %vm690_vm3, %v4956_v62, %v4958_v31 }
 0x3f8   : > { %5396 = vmatprep.subr.bf16.mxu1 %v4964_v29 }
 0x3f9   : > { %5397 = vmatpush1.bf16.msra.mxu1 %v4963_v55  ;;  %5595 = vrot.lane.b32.xlu1 %v9126_v22, %s6643_s27 }
 0x3fa   : > { %5593 = vrot.lane.b32.xlu0 %v9132_v44, %s6643_s27 }
 0x3fb   : > { %6247 = vmatmul.mubr.msk.bf16.gmra.mrb[60].mxu0 %vm1509_vm8, %v9173_v23 }
 0x3fc   : > { %6248 = vmatmul.mubr.msk.bf16.vlgmr.msra.gmra.mrb[40].mxu1 %vm1509_vm8, %v9123_v57 }
 0x3fd   : > { %5436 = vmatprep.mubr.bf16.mxu1 %v10278_v10  ;;  %5599 = vrot.lane.b32.xlu1 %v9148_v12, %s6643_s27 }
 0x3fe   : > { %5597 = vrot.lane.b32.xlu0 %v9156_v28, %s6643_s27 }
 0x401   : > { %5603 = vrot.lane.b32.xlu1 %v9176_v56, %s6643_s27 }
 0x402   : > { %v9462_v46 = vpop.permute.xlu1 %3650  ;;  %5601 = vrot.lane.b32.xlu0 %v9184_v35, %s6643_s27 }
 0x403   : > { %v3668_v56 = vmul.f32 %v9462_v46, %v9314_v59  ;;  %v3669_v35 = vmul.f32 %v9462_v46, %v9321_v8 }
 0x404   : > { %6249 = vmatmul.mubr.msk.bf16.gmra.mrb[44].mxu1 %vm1509_vm8, %v9173_v23 }
 0x405   : > { %5804 = vrot.lane.b32.xlu1 %v9199_v13, %s6643_s27 }
 0x406   : > { %v9470_v10 = vpop.permute.xlu1 %3660  ;;  %5605 = vrot.lane.b32.xlu0 %v9205_v1, %s6643_s27 }
 0x407   : > { %v9474_v34 = vpop.permute.xlu0 %3655  ;;  %v3680_v24 = vmul.f32 %v9470_v10, %v9351_v26  ;;  %v3681_v25 = vmul.f32 %v9470_v10, %v9360_v30 }
 0x408   : > { %v3675_v59 = vmul.f32 %v9474_v34, %v9336_v9 }
 0x409   : > { %5808 = vrot.lane.b32.xlu1 %v9218_v39, %s6643_s27 }
 0x40a   : > { %v9478_v14 = vpop.permute.xlu1 %3698  ;;  %5806 = vrot.lane.b32.xlu0 %v9224_v41, %s6643_s27 }
 0x40b   : > { %v9482_v2 = vpop.permute.xlu0 %3665  ;;  %v3716_v41 = vadd.f32 %v9478_v14, %v3668_v56 }
 0x40c   : > { %v3686_v29 = vmul.f32 %v9482_v2, %v9367_v7 }
 0x40d   : > { %5812 = vrot.lane.b32.xlu1 %v9256_v16, %s6643_s27  ;;  %v3717_v16 = vadd.f32 %v9478_v14, %v3669_v35  ;;  %v3687_v35 = vmul.f32 %v9482_v2, %v9369_v54 }
 0x40e   : > { %v9486_v57 = vpop.permute.xlu1 %3708  ;;  %5810 = vrot.lane.b32.xlu0 %v9263_v52, %s6643_s27 }
 0x40f   : > { %v9490_v22 = vpop.permute.xlu0 %3703  ;;  %v3728_v30 = vadd.f32 %v9486_v57, %v3680_v24  ;;  %v3729_v37 = vadd.f32 %v9486_v57, %v3681_v25 }
 0x411   : > { %5816 = vrot.lane.b32.xlu1 %v9277_v43, %s6643_s27 }
 0x412   : > { %v3773_v44 = vpop.permute.xlu1 %3772  ;;  %5814 = vrot.lane.b32.xlu0 %v9282_v40, %s6643_s27 }
 0x413   : > { %v9496_v12 = vpop.permute.xlu0 %3713 }
 0x414   : > { %v3734_v7 = vadd.f32 %v9496_v12, %v3686_v29 }
 0x415   : > { %5820 = vrot.lane.b32.xlu1 %v9326_v38, %s6643_s27  ;;  %v3723_v38 = vadd.f32 %v9490_v22, %v3675_v59 }
 0x416   : > { %v3777_v28 = vpop.permute.xlu1 %3776  ;;  %5818 = vrot.lane.b32.xlu0 %v9297_v42, %s6643_s27  ;;  %v3674_v42 = vmul.f32 %v9474_v34, %v9328_v50 }
 0x417   : > { %v3775_v23 = vpop.permute.xlu0 %3774 }
 0x418   : > { %v3805_v13 = vsel %vm690_vm3, %v3773_v44, %v3775_v23  ;;  %v3806_v1 = vsel %vm690_vm3, %v3775_v23, %v3777_v28 }
 0x419   : > { %5824 = vrot.lane.b32.xlu1 %v9347_v45, %s6643_s27  ;;  %v3829_v43 = vadd.f32 %v3805_v13, %v3716_v41  ;;  %v3830_v40 = vadd.f32 %v3806_v1, %v3717_v16 }
 0x41a   : > { %v3781_v39 = vpop.permute.xlu1 %3780  ;;  %5822 = vrot.lane.b32.xlu0 %v9319_v21, %s6643_s27  ;;  %v3722_v21 = vadd.f32 %v9490_v22, %v3674_v42 }
 0x41b   : > { %v3779_v52 = vpop.permute.xlu0 %3778  ;;  %v9526_v50 = vmax.f32 %v3829_v43, 0.0  ;;  %v9528_v53 = vmax.f32 %v3830_v40, 0.0  ;;  %v3735_v43 = vadd.f32 %v9496_v12, %v3687_v35 }
 0x41c   : > { %v3807_v55 = vsel %vm690_vm3, %v3777_v28, %v3779_v52 }
 0x41d   : > { %5828 = vrot.lane.b32.xlu1 %v9376_v4, %s6643_s27  ;;  %v3853_v0 = vmul.f32 %v9526_v50, %v9526_v50 }
 0x41e   : > { %v3785_v8 = vpop.permute.xlu1 %3784  ;;  %5826 = vrot.lane.b32.xlu0 %v9343_v6, %s6643_s27 }
 0x41f   : > { %v3783_v45 = vpop.permute.xlu0 %3782 }
 0x420   : > { %v3808_v3 = vsel %vm690_vm3, %v3781_v39, %v3783_v45  ;;  %v3809_v61 = vsel %vm690_vm3, %v3783_v45, %v3785_v8 }
 0x421   : > { %v3832_v9 = vadd.f32 %v3808_v3, %v3722_v21  ;;  %v3833_v33 = vadd.f32 %v3809_v61, %v3723_v38  ;;  %5832 = vrot.lane.b32.xlu1 %v9392_v5, %s6643_s27  ;;  %v3854_v5 = vmul.f32 %v9528_v53, %v9528_v53 }
 0x422   : > { %v3789_v4 = vpop.permute.xlu1 %3788  ;;  %5830 = vrot.lane.b32.xlu0 %v9372_v11, %s6643_s27 }
 0x423   : > { %v9534_v6 = vmax.f32 %v3832_v9, 0.0  ;;  %v9536_v63 = vmax.f32 %v3833_v33, 0.0  ;;  %v3787_v17 = vpop.permute.xlu0 %3786 }
 0x424   : > { %v3810_v28 = vsel %vm690_vm3, %v3785_v8, %v3787_v17 }
 0x425   : > { %v3856_v11 = vmul.f32 %v9534_v6, %v9534_v6  ;;  %v3857_v18 = vmul.f32 %v9536_v63, %v9536_v63 }
 0x426   : > { %v3793_v20 = vpop.permute.xlu1 %3792  ;;  %5834 = vrot.lane.b32.xlu0 %v9389_v27, %s6643_s27  ;;  %s9653_s27 = smul.u32 96, %s10375_s19 }
 0x427   : > { %v3865_v26 = vadd.f32 %v3856_v11, %v3853_v0  ;;  %v3874_v49 = vadd.f32 %v3857_v18, %v3854_v5  ;;  %v3791_v19 = vpop.permute.xlu0 %3790 }
 0x428   : > { %v3811_v51 = vsel %vm690_vm3, %v3789_v4, %v3791_v19  ;;  %v3812_v32 = vsel %vm690_vm3, %v3791_v19, %v3793_v20  ;;  %s9664_s24 = scalar_lea.vmem %s10196_s9, %s9653_s27  ;;  %s9676_s26 = scalar_lea.vmem %s10198_s11, %s9653_s27 }
 0x429   : > { %v3835_v58 = vadd.f32 %v3811_v51, %v3728_v30  ;;  %v3836_v15 = vadd.f32 %v3812_v32, %v3729_v37  ;;  %s9943_s29 = scalar_lea.vmem %s10197_s10, %s9653_s27 }
 0x42a   : > { %v3797_v36 = vpop.permute.xlu1 %3796 }
 0x42b   : > { %v9556_v47 = vmax.f32 %v3835_v58, 0.0  ;;  %v9558_v60 = vmax.f32 %v3836_v15, 0.0  ;;  %v3519_v48 = vpop.f32.mrb[24].mxu1  ;;  %v3795_v27 = vpop.permute.xlu0 %3794 }
 0x42c   : > { %v3670_v62 = vmul.f32 %v9462_v46, %v3519_v48  ;;  %v3521_v31 = vpop.f32.mrb[25].mxu1  ;;  %v3813_v5 = vsel %vm690_vm3, %v3793_v20, %v3795_v27 }
 0x42d   : > { %v3859_v44 = vmul.f32 %v9556_v47, %v9556_v47  ;;  %v3860_v23 = vmul.f32 %v9558_v60, %v9558_v60  ;;  %v3523_v56 = vpop.f32.mrb[26].mxu1  ;;  %v3671_v35 = vmul.f32 %v9462_v46, %v3521_v31 }
 0x42e   : > { %v3718_v13 = vadd.f32 %v9478_v14, %v3670_v62  ;;  %v3676_v1 = vmul.f32 %v9474_v34, %v3523_v56  ;;  %v3525_v39 = vpop.f32.mrb[27].mxu1  ;;  %v3801_v41 = vpop.permute.xlu1 %3800 }
 0x42f   : > { %v3866_v16 = vadd.f32 %v3865_v26, %v3859_v44  ;;  %v3875_v52 = vadd.f32 %v3874_v49, %v3860_v23  ;;  %v3799_v40 = vpop.permute.xlu0 %3798  ;;  %v3719_v31 = vadd.f32 %v9478_v14, %v3671_v35 }
 0x430   : > { %v3831_v42 = vadd.f32 %v3807_v55, %v3718_v13  ;;  %v3724_v59 = vadd.f32 %v9490_v22, %v3676_v1  ;;  %v3814_v54 = vsel %vm690_vm3, %v3797_v36, %v3799_v40  ;;  %v3815_v21 = vsel %vm690_vm3, %v3799_v40, %v3801_v41 }
 0x431   : > { %v3838_v38 = vadd.f32 %v3814_v54, %v3734_v7  ;;  %v3839_v45 = vadd.f32 %v3815_v21, %v3735_v43  ;;  %v3677_v54 = vmul.f32 %v9474_v34, %v3525_v39 }
 0x432   : > { %v9578_v3 = vmax.f32 %v3831_v42, 0.0  ;;  %v3834_v61 = vadd.f32 %v3810_v28, %v3724_v59  ;;  %v3979_v9 = vpop.permute.xlu1 %3978 }
 0x433   : > { %v9580_v33 = vmax.f32 %v3838_v38, 0.0  ;;  %v9582_v8 = vmax.f32 %v3839_v45, 0.0  ;;  %v3529_v4 = vpop.f32.mrb[28].mxu1  ;;  %v3803_v17 = vpop.permute.xlu0 %3802 }
 0x434   : > { %v9584_v24 = vmax.f32 %v3834_v61, 0.0  ;;  %v3682_v25 = vmul.f32 %v9470_v10, %v3529_v4  ;;  %v9587_v0 = vpop.f32.mrb[29].mxu1  ;;  %v3855_v49 = vmul.f32 %v9578_v3, %v9578_v3  ;;  %v3816_v15 = vsel %vm690_vm3, %v3801_v41, %v3803_v17 }
 0x435   : > { %v3862_v11 = vmul.f32 %v9580_v33, %v9580_v33  ;;  %v3863_v18 = vmul.f32 %v9582_v8, %v9582_v8  ;;  %v3533_v26 = vpop.f32.mrb[30].mxu1 }
 0x436   : > { %v3858_v30 = vmul.f32 %v9584_v24, %v9584_v24  ;;  %v3730_v37 = vadd.f32 %v9486_v57, %v3682_v25  ;;  %v3688_v19 = vmul.f32 %v9482_v2, %v3533_v26  ;;  %v9600_v51 = vpop.f32.mrb[31].mxu1  ;;  %v9602_v20 = vpop.permute.xlu1 %3982 }
 0x437   : > { %v3867_v32 = vadd.f32 %v3866_v16, %v3862_v11  ;;  %v3876_v58 = vadd.f32 %v3875_v52, %v3863_v18  ;;  %v9605_v36 = vpop.permute.xlu0 %3980  ;;  %v3725_v18 = vadd.f32 %v9490_v22, %v3677_v54 }
 0x438   : > { %v3883_v48 = vadd.f32 %v3858_v30, %v3855_v49  ;;  %v3837_v27 = vadd.f32 %v3813_v5, %v3730_v37  ;;  %v3736_v62 = vadd.f32 %v9496_v12, %v3688_v19  ;;  %v4010_v42 = vsel %vm690_vm3, %v3979_v9, %v9605_v36 }
 0x439   : > { %v3868_v29 = vrot.slane %v3867_v32, 4  ;;  %v3877_v55 = vrot.slane %v3876_v58, 4  ;;  %v4034_v25 = vadd.f32 %v4010_v42, %v3719_v31 }
 0x43a   : > { %v9608_v44 = vmax.f32 %v3837_v27, 0.0  ;;  %v3840_v23 = vadd.f32 %v3816_v15, %v3736_v62  ;;  %v9610_v56 = vpop.permute.xlu1 %5458 }
 0x43b   : > { %v3869_v13 = vadd.f32 %v3868_v29, %v3867_v32  ;;  %v3878_v1 = vadd.f32 %v3877_v55, %v3876_v58  ;;  %v9613_v7 = vpop.permute.xlu0 %5453  ;;  %v9634_v32 = vmax.f32 %v4034_v25, 0.0 }
 0x43c   : > { %v3861_v41 = vmul.f32 %v9608_v44, %v9608_v44  ;;  %v9617_v28 = vmax.f32 %v3840_v23, 0.0 }
 0x43d   : > { %v3870_v16 = vrot.slane %v3869_v13, 2  ;;  %v3879_v52 = vrot.slane %v3878_v1, 2  ;;  %v4058_v55 = vmul.f32 %v9634_v32, %v9634_v32 }
 0x43e   : > { %v3884_v43 = vadd.f32 %v3883_v48, %v3861_v41  ;;  %v3864_v40 = vmul.f32 %v9617_v28, %v9617_v28  ;;  %v3987_v59 = vpop.permute.xlu1 %3986 }
 0x43f   : > { %v3871_v21 = vadd.f32 %v3870_v16, %v3869_v13  ;;  %v3880_v38 = vadd.f32 %v3879_v52, %v3878_v1  ;;  %v9625_v45 = vpop.permute.xlu0 %3984  ;;  %v3683_v1 = vmul.f32 %v9470_v10, %v9587_v0 }
 0x440   : > { %v3885_v61 = vadd.f32 %v3884_v43, %v3864_v40 }
 0x441   : > { %v3872_v4 = vrot.slane %v3871_v21, 1  ;;  %v3881_v17 = vrot.slane %v3880_v38, 1  ;;  %v3731_v42 = vadd.f32 %v9486_v57, %v3683_v1 }
 0x442   : > { %v3886_v5 = vrot.slane %v3885_v61, 4  ;;  %v9627_v11 = vpop.permute.xlu1 %3990 }
 0x443   : > { %v3873_v26 = vadd.f32 %v3872_v4, %v3871_v21  ;;  %v3882_v9 = vadd.f32 %v3881_v17, %v3880_v38  ;;  %v9630_v49 = vpop.permute.xlu0 %3988 }
 0x444   : > { %v3887_v30 = vadd.f32 %v3886_v5, %v3885_v61  ;;  %v4013_v39 = vsel %vm690_vm3, %v3987_v59, %v9630_v49 }
 0x445   : > { %v3892_v37 = vmax.f32 %v3873_v26, 1e-24  ;;  %v3893_v19 = vmax.f32 %v3882_v9, 1e-24  ;;  %v4037_v58 = vadd.f32 %v4013_v39, %v3725_v18 }
 0x446   : > { %v3888_v15 = vrot.slane %v3887_v30, 2  ;;  %v9636_v48 = vpop.permute.xlu1 %5463 }
 0x447   : > { %6608 = vrsqrt.f32 %v3892_v37  ;;  %v9638_v27 = vmax.f32 %v4037_v58, 0.0  ;;  %v9640_v62 = vpop.permute.xlu0 %3992  ;;  %v3689_v58 = vmul.f32 %v9482_v2, %v9600_v51 }
 0x448   : > { %6610 = vrsqrt.f32 %v3893_v19  ;;  %v3889_v29 = vadd.f32 %v3888_v15, %v3887_v30 }
 0x449   : > { %v4061_v23 = vmul.f32 %v9638_v27, %v9638_v27  ;;  %v3737_v51 = vadd.f32 %v9496_v12, %v3689_v58 }
 0x44a   : > { %v3890_v35 = vrot.slane %v3889_v29, 1  ;;  %v9646_v13 = vpop.permute.xlu1 %5506 }
 0x44b   : > { %v4070_v41 = vadd.f32 %v4061_v23, %v4058_v55  ;;  %v9650_v16 = vpop.permute.xlu0 %5501 }
 0x44c   : > { %v3891_v52 = vadd.f32 %v3890_v35, %v3889_v29 }
 0x44e   : > { %v3894_v43 = vmax.f32 %v3891_v52, 1e-24  ;;  %v9655_v40 = vpop.permute.xlu1 %3996 }
 0x44f   : > { %v3995_v59 = vpop.permute.xlu0 %3994 }
 0x450   : > { %6612 = vrsqrt.f32 %v3894_v43  ;;  %v4016_v31 = vsel %vm690_vm3, %v3995_v59, %v9655_v40 }
 0x451   : > { %v6609_v54 = vpop.eup %6608  ;;  %v4040_v0 = vadd.f32 %v4016_v31, %v3731_v42 }
 0x452   : > { %v6611_v21 = vpop.eup %6610  ;;  %v3898_v38 = vmul.f32 %v6609_v54, %v9526_v50  ;;  %v3901_v61 = vmul.f32 %v6609_v54, %v9534_v6  ;;  %v3904_v4 = vmul.f32 %v6609_v54, %v9556_v47  ;;  %v3907_v17 = vmul.f32 %v6609_v54, %v9580_v33  ;;  %v9670_v25 = vpop.permute.xlu1 %4000 }
 0x453   : > { %v3899_v5 = vmul.f32 %v6611_v21, %v9528_v53  ;;  %v3902_v50 = vmul.f32 %v6611_v21, %v9536_v63  ;;  %v3905_v6 = vmul.f32 %v6611_v21, %v9558_v60  ;;  %v3908_v47 = vmul.f32 %v6611_v21, %v9582_v8  ;;  %v9682_v33 = vpop.permute.xlu0 %3998 }
 0x454   : > { %3910 = vst [vmem:[%s9664_s24] sm:$0xff] %v3898_v38  ;;  %3913 = vst [vmem:[%s9664_s24 + $0x18] sm:$0xff] %v3901_v61  ;;  %v3922_v18 = vmul.f32 0.5, %v3898_v38  ;;  %v3925_v26 = vmul.f32 0.5, %v3901_v61  ;;  %v3928_v53 = vmul.f32 0.5, %v3904_v4  ;;  %v3931_v9 = vmul.f32 0.5, %v3907_v17 }
 0x455   : > { %3916 = vst [vmem:[%s9664_s24 + $0x30] sm:$0xff] %v3904_v4  ;;  %3919 = vst [vmem:[%s9664_s24 + $0x48] sm:$0xff] %v3907_v17  ;;  %v3923_v63 = vmul.f32 0.5, %v3899_v5  ;;  %v3926_v60 = vmul.f32 0.5, %v3902_v50  ;;  %v3929_v8 = vmul.f32 0.5, %v3905_v6  ;;  %v3932_v30 = vmul.f32 0.5, %v3908_v47 }
 0x456   : > { %3911 = vst [vmem:[%s9664_s24 + $0x8] sm:$0xff] %v3899_v5  ;;  %3914 = vst [vmem:[%s9664_s24 + $0x20] sm:$0xff] %v3902_v50  ;;  %v9696_v39 = vmax.f32 %v4040_v0, 0.0  ;;  %v9698_v37 = vpop.permute.xlu1 %5511 }
 0x457   : > { %3917 = vst [vmem:[%s9664_s24 + $0x38] sm:$0xff] %v3905_v6  ;;  %3920 = vst [vmem:[%s9664_s24 + $0x50] sm:$0xff] %v3908_v47  ;;  %v9704_v19 = vpop.permute.xlu0 %5468 }
 0x458   : > { %3934 = vst [vmem:[%s9676_s26] sm:$0xff] %v3922_v18  ;;  %3937 = vst [vmem:[%s9676_s26 + $0x18] sm:$0xff] %v3925_v26  ;;  %v4064_v15 = vmul.f32 %v9696_v39, %v9696_v39  ;;  %v4012_v18 = vsel %vm690_vm3, %v9602_v20, %v9625_v45 }
 0x459   : > { %3940 = vst [vmem:[%s9676_s26 + $0x30] sm:$0xff] %v3928_v53  ;;  %3943 = vst [vmem:[%s9676_s26 + $0x48] sm:$0xff] %v3931_v9 }
 0x45a   : > { %3935 = vst [vmem:[%s9676_s26 + $0x8] sm:$0xff] %v3923_v63  ;;  %3938 = vst [vmem:[%s9676_s26 + $0x20] sm:$0xff] %v3926_v60  ;;  %v6613_v29 = vpop.eup %6612  ;;  %v4071_v55 = vadd.f32 %v4070_v41, %v4064_v15  ;;  %v9710_v23 = vpop.permute.xlu1 %4004  ;;  %v4015_v15 = vsel %vm690_vm3, %v9627_v11, %v9640_v62 }
 0x45b   : > { %3941 = vst [vmem:[%s9676_s26 + $0x38] sm:$0xff] %v3929_v8  ;;  %3944 = vst [vmem:[%s9676_s26 + $0x50] sm:$0xff] %v3932_v30  ;;  %v3900_v35 = vmul.f32 %v6613_v29, %v9578_v3  ;;  %v3903_v1 = vmul.f32 %v6613_v29, %v9584_v24  ;;  %v3906_v52 = vmul.f32 %v6613_v29, %v9608_v44  ;;  %v4003_v42 = vpop.permute.xlu0 %4002 }
 0x45c   : > { %v3909_v43 = vmul.f32 %v6613_v29, %v9617_v28  ;;  %v4019_v41 = vsel %vm690_vm3, %v4003_v42, %v9710_v23  ;;  %v4011_v8 = vsel %vm690_vm3, %v9605_v36, %v9602_v20 }
 0x45d   : > { %3912 = vst [vmem:[%s9664_s24 + $0x10] sm:$0xff] %v3900_v35  ;;  %3915 = vst [vmem:[%s9664_s24 + $0x28] sm:$0xff] %v3903_v1  ;;  %v3924_v3 = vmul.f32 0.5, %v3900_v35  ;;  %v3927_v24 = vmul.f32 0.5, %v3903_v1  ;;  %v3930_v59 = vmul.f32 0.5, %v3906_v52  ;;  %v4043_v44 = vadd.f32 %v4019_v41, %v3737_v51 }
 0x45e   : > { %3918 = vst [vmem:[%s9664_s24 + $0x40] sm:$0xff] %v3906_v52  ;;  %3921 = vst [vmem:[%s9664_s24 + $0x58] sm:$0xff] %v3909_v43  ;;  %v3933_v31 = vmul.f32 0.5, %v3909_v43  ;;  %v9723_v54 = vpop.permute.xlu1 %4008 }
 0x45f   : > { %3936 = vst [vmem:[%s9676_s26 + $0x10] sm:$0xff] %v3924_v3  ;;  %3939 = vst [vmem:[%s9676_s26 + $0x28] sm:$0xff] %v3927_v24  ;;  %v9729_v28 = vpop.permute.xlu0 %4006  ;;  %v9731_v0 = vmax.f32 %v4043_v44, 0.0  ;;  %v4018_v3 = vsel %vm690_vm3, %v9682_v33, %v9670_v25 }
 0x460   : > { %3942 = vst [vmem:[%s9676_s26 + $0x40] sm:$0xff] %v3930_v59  ;;  %3945 = vst [vmem:[%s9676_s26 + $0x58] sm:$0xff] %v3933_v31  ;;  %v4020_v24 = vsel %vm690_vm3, %v9710_v23, %v9729_v28 }
 0x461   : > { %v4067_v21 = vmul.f32 %v9731_v0, %v9731_v0 }
 0x462   : > { %v9735_v38 = vpop.permute.xlu1 %5575 }
 0x463   : > { %v9737_v61 = vpop.permute.xlu0 %5516  ;;  %v3625_v4 = vpop.f32.mrb[48].mxu0  ;;  %v4072_v17 = vadd.f32 %v4071_v55, %v4067_v21 }
 0x464   : > { %v3672_v5 = vmul.f32 %v9462_v46, %v3625_v4  ;;  %v3627_v50 = vpop.f32.mrb[49].mxu0 }
 0x465   : > { %v3673_v6 = vmul.f32 %v9462_v46, %v3627_v50  ;;  %v3629_v47 = vpop.f32.mrb[50].mxu0  ;;  %v4073_v26 = vrot.slane %v4072_v17, 4  ;;  %v4014_v46 = vsel %vm690_vm3, %v9630_v49, %v9627_v11  ;;  %v4017_v11 = vsel %vm690_vm3, %v9655_v40, %v9682_v33 }
 0x466   : > { %v3720_v53 = vadd.f32 %v9478_v14, %v3672_v5  ;;  %v3678_v9 = vmul.f32 %v9474_v34, %v3629_v47  ;;  %v3631_v63 = vpop.f32.mrb[51].mxu0  ;;  %v9746_v60 = vpop.permute.xlu1 %5579 }
 0x467   : > { %v3721_v30 = vadd.f32 %v9478_v14, %v3673_v6  ;;  %v3679_v45 = vmul.f32 %v9474_v34, %v3631_v63  ;;  %v9756_v58 = vpop.permute.xlu0 %5577  ;;  %v4074_v29 = vadd.f32 %v4073_v26, %v4072_v17 }
 0x468   : > { %v4035_v55 = vadd.f32 %v4011_v8, %v3720_v53  ;;  %v3726_v35 = vadd.f32 %v9490_v22, %v3678_v9  ;;  %v4021_v8 = vsel %vm690_vm3, %v9729_v28, %v9723_v54 }
 0x469   : > { %v4036_v1 = vadd.f32 %v4012_v18, %v3721_v30  ;;  %v3727_v20 = vadd.f32 %v9490_v22, %v3679_v45  ;;  %v4075_v36 = vrot.slane %v4074_v29, 2 }
 0x46a   : > { %v9763_v52 = vmax.f32 %v4035_v55, 0.0  ;;  %v4038_v49 = vadd.f32 %v4014_v46, %v3726_v35  ;;  %v9765_v14 = vpop.permute.xlu1 %5583 }
 0x46b   : > { %v9767_v34 = vmax.f32 %v4036_v1, 0.0  ;;  %v4039_v43 = vadd.f32 %v4015_v15, %v3727_v20  ;;  %v5582_v42 = vpop.permute.xlu0 %5581  ;;  %v4076_v62 = vadd.f32 %v4075_v36, %v4074_v29 }
 0x46c   : > { %v9772_v51 = vmax.f32 %v4038_v49, 0.0  ;;  %v3635_v41 = vpop.f32.mrb[52].mxu0  ;;  %v9776_v22 = vsel %vm690_vm3, %v9746_v60, %v5582_v42  ;;  %v4059_v21 = vmul.f32 %v9763_v52, %v9763_v52 }
 0x46d   : > { %v9784_v59 = vmax.f32 %v4039_v43, 0.0  ;;  %v3684_v40 = vmul.f32 %v9470_v10, %v3635_v41  ;;  %v3637_v31 = vpop.f32.mrb[53].mxu0  ;;  %v4077_v44 = vrot.slane %v4076_v62, 1  ;;  %v4060_v33 = vmul.f32 %v9767_v34, %v9767_v34 }
 0x46e   : > { %v4062_v4 = vmul.f32 %v9772_v51, %v9772_v51  ;;  %v3685_v17 = vmul.f32 %v9470_v10, %v3637_v31  ;;  %v3639_v5 = vpop.f32.mrb[54].mxu0  ;;  %v5588_v25 = vpop.permute.xlu1 %5587 }
 0x46f   : > { %v4063_v23 = vmul.f32 %v9784_v59, %v9784_v59  ;;  %v3732_v50 = vadd.f32 %v9486_v57, %v3684_v40  ;;  %v3690_v6 = vmul.f32 %v9482_v2, %v3639_v5  ;;  %v3641_v47 = vpop.f32.mrb[55].mxu0  ;;  %v5586_v18 = vpop.permute.xlu0 %5585  ;;  %v4078_v26 = vadd.f32 %v4077_v44, %v4076_v62 }
 0x470   : > { %v4079_v53 = vadd.f32 %v4062_v4, %v4059_v21  ;;  %v3733_v9 = vadd.f32 %v9486_v57, %v3685_v17  ;;  %v3691_v10 = vmul.f32 %v9482_v2, %v3641_v47  ;;  %v5607_v21 = vsel %vm690_vm3, %v9735_v38, %v9756_v58 }
 0x471   : > { %v4088_v63 = vadd.f32 %v4063_v23, %v4060_v33  ;;  %v4041_v46 = vadd.f32 %v4017_v11, %v3732_v50  ;;  %v3738_v30 = vadd.f32 %v9496_v12, %v3690_v6  ;;  %v4097_v45 = vmax.f32 %v4078_v26, 1e-24 }
 0x472   : > { %v4042_v15 = vadd.f32 %v4018_v3, %v3733_v9  ;;  %v3739_v29 = vadd.f32 %v9496_v12, %v3691_v10  ;;  %v5592_v55 = vpop.permute.xlu1 %5591  ;;  %v5608_v33 = vsel %vm690_vm3, %v9756_v58, %v9746_v60  ;;  %v5610_v26 = vsel %vm690_vm3, %v9765_v14, %v5586_v18 }
 0x473   : > { %v9805_v35 = vmax.f32 %v4041_v46, 0.0  ;;  %v4044_v1 = vadd.f32 %v4020_v24, %v3738_v30  ;;  %v5590_v20 = vpop.permute.xlu0 %5589  ;;  %6614 = vrsqrt.f32 %v4097_v45 }
 0x474   : > { %v9807_v57 = vmax.f32 %v4042_v15, 0.0  ;;  %v4045_v2 = vadd.f32 %v4021_v8, %v3739_v29  ;;  %v9810_v36 = vsel %vm690_vm3, %v5588_v25, %v5590_v20 }
 0x475   : > { %v4065_v54 = vmul.f32 %v9805_v35, %v9805_v35  ;;  %v9814_v28 = vmax.f32 %v4044_v1, 0.0 }
 0x476   : > { %v4066_v12 = vmul.f32 %v9807_v57, %v9807_v57  ;;  %v9818_v49 = vmax.f32 %v4045_v2, 0.0  ;;  %v5596_v43 = vpop.permute.xlu1 %5595 }
 0x477   : > { %v4080_v42 = vadd.f32 %v4079_v53, %v4065_v54  ;;  %v4068_v11 = vmul.f32 %v9814_v28, %v9814_v28  ;;  %v5594_v62 = vpop.permute.xlu0 %5593  ;;  %v5611_v53 = vsel %vm690_vm3, %v5586_v18, %v5588_v25 }
 0x478   : > { %v4089_v41 = vadd.f32 %v4088_v63, %v4066_v12  ;;  %v4069_v3 = vmul.f32 %v9818_v49, %v9818_v49  ;;  %v5613_v46 = vsel %vm690_vm3, %v5592_v55, %v5594_v62 }
 0x479   : > { %v4081_v24 = vadd.f32 %v4080_v42, %v4068_v11 }
 0x47a   : > { %v4090_v40 = vadd.f32 %v4089_v41, %v4069_v3  ;;  %v5600_v31 = vpop.permute.xlu1 %5599  ;;  %v5614_v3 = vsel %vm690_vm3, %v5594_v62, %v5596_v43 }
 0x47b   : > { %v4082_v44 = vrot.slane %v4081_v24, 4  ;;  %v5216_v4 = vpop.f32.mrb[32].mxu1  ;;  %v5598_v17 = vpop.permute.xlu0 %5597 }
 0x47c   : > { %v4091_v5 = vrot.slane %v4090_v40, 4  ;;  %v5471_v23 = vmul.f32 %v9613_v7, %v5216_v4  ;;  %v5218_v50 = vpop.f32.mrb[33].mxu1  ;;  %v9832_v6 = vsel %vm690_vm3, %v5596_v43, %v5598_v17 }
 0x47d   : > { %v4083_v47 = vadd.f32 %v4082_v44, %v4081_v24  ;;  %v5472_v38 = vmul.f32 %v9613_v7, %v5218_v50  ;;  %v5220_v9 = vpop.f32.mrb[34].mxu1  ;;  %v6615_v10 = vpop.eup %6614 }
 0x47e   : > { %v4092_v63 = vadd.f32 %v4091_v5, %v4090_v40  ;;  %v5519_v60 = vadd.f32 %v9650_v16, %v5471_v23  ;;  %v5477_v58 = vmul.f32 %v9610_v56, %v5220_v9  ;;  %v5222_v8 = vpop.f32.mrb[35].mxu1  ;;  %v4103_v14 = vmul.f32 %v6615_v10, %v9634_v32  ;;  %v9850_v2 = vpop.permute.xlu1 %5603 }
 0x47f   : > { %v4106_v25 = vmul.f32 %v6615_v10, %v9638_v27  ;;  %v4109_v18 = vmul.f32 %v6615_v10, %v9696_v39  ;;  %v4112_v30 = vmul.f32 %v6615_v10, %v9731_v0  ;;  %v4084_v45 = vrot.slane %v4083_v47, 2  ;;  %v5602_v20 = vpop.permute.xlu0 %5601 }
 0x480   : > { %v4093_v15 = vrot.slane %v4092_v63, 2  ;;  %v5631_v29 = vadd.f32 %v5607_v21, %v5519_v60  ;;  %v5520_v1 = vadd.f32 %v9650_v16, %v5472_v38  ;;  %6214 = vst [vmem:[%s9664_s24 + $0x60] sm:$0xff] %v4103_v14  ;;  %v4128_v32 = vmul.f32 0.5, %v4103_v14 }
 0x481   : > { %6217 = vst [vmem:[%s9664_s24 + $0x78] sm:$0xff] %v4106_v25  ;;  %6220 = vst [vmem:[%s9664_s24 + $0x90] sm:$0xff] %v4109_v18  ;;  %v4131_v27 = vmul.f32 0.5, %v4106_v25  ;;  %v4134_v55 = vmul.f32 0.5, %v4109_v18  ;;  %v4137_v39 = vmul.f32 0.5, %v4112_v30  ;;  %v4085_v0 = vadd.f32 %v4084_v45, %v4083_v47 }
 0x482   : > { %6223 = vst [vmem:[%s9664_s24 + $0xa8] sm:$0xff] %v4112_v30  ;;  %v4094_v54 = vadd.f32 %v4093_v15, %v4092_v63  ;;  %v9852_v12 = vmax.f32 %v5631_v29, 0.0  ;;  %v5632_v42 = vadd.f32 %v5608_v33, %v5520_v1  ;;  %6226 = vst [vmem:[%s9676_s26 + $0x60] sm:$0xff] %v4128_v32  ;;  %v5525_v11 = vadd.f32 %v9646_v13, %v5477_v58 }
 0x483   : > { %6229 = vst [vmem:[%s9676_s26 + $0x78] sm:$0xff] %v4131_v27  ;;  %6232 = vst [vmem:[%s9676_s26 + $0x90] sm:$0xff] %v4134_v55  ;;  %v5478_v41 = vmul.f32 %v9610_v56, %v5222_v8  ;;  %v5226_v24 = vpop.f32.mrb[36].mxu1  ;;  %v5616_v40 = vsel %vm690_vm3, %v5600_v31, %v5602_v20  ;;  %v4086_v44 = vrot.slane %v4085_v0, 1  ;;  %v5617_v5 = vsel %vm690_vm3, %v5602_v20, %v9850_v2 }
 0x484   : > { %6235 = vst [vmem:[%s9676_s26 + $0xa8] sm:$0xff] %v4137_v39  ;;  %v4095_v21 = vrot.slane %v4094_v54, 1  ;;  %v5655_v4 = vmul.f32 %v9852_v12, %v9852_v12  ;;  %v5228_v17 = vpop.f32.mrb[37].mxu1  ;;  %v5634_v33 = vadd.f32 %v5610_v26, %v5525_v11  ;;  %v5483_v50 = vmul.f32 %v9636_v48, %v5226_v24 }
 0x485   : > { %v5526_v23 = vadd.f32 %v9646_v13, %v5478_v41  ;;  %v5484_v47 = vmul.f32 %v9636_v48, %v5228_v17  ;;  %v5230_v43 = vpop.f32.mrb[38].mxu1  ;;  %v4087_v62 = vadd.f32 %v4086_v44, %v4085_v0  ;;  %v9869_v31 = vmax.f32 %v5632_v42, 0.0 }
 0x486   : > { %v4096_v38 = vadd.f32 %v4095_v21, %v4094_v54  ;;  %v5489_v9 = vmul.f32 %v9704_v19, %v5230_v43  ;;  %v5232_v10 = vpop.f32.mrb[39].mxu1  ;;  %v9872_v63 = vmax.f32 %v5634_v33, 0.0  ;;  %v5531_v58 = vadd.f32 %v9698_v37, %v5483_v50 }
 0x487   : > { %v5635_v60 = vadd.f32 %v5611_v53, %v5526_v23  ;;  %v5532_v26 = vadd.f32 %v9698_v37, %v5484_v47  ;;  %v4098_v8 = vmax.f32 %v4087_v62, 1e-24  ;;  %v5490_v18 = vmul.f32 %v9704_v19, %v5232_v10 }
 0x488   : > { %v4099_v14 = vmax.f32 %v4096_v38, 1e-24  ;;  %v5537_v25 = vadd.f32 %v9737_v61, %v5489_v9  ;;  %v5658_v30 = vmul.f32 %v9872_v63, %v9872_v63  ;;  %v5637_v15 = vadd.f32 %v5613_v46, %v5531_v58 }
 0x489   : > { %v9880_v45 = vmax.f32 %v5635_v60, 0.0  ;;  %v5638_v29 = vadd.f32 %v5614_v3, %v5532_v26  ;;  %6616 = vrsqrt.f32 %v4098_v8  ;;  %v5656_v53 = vmul.f32 %v9869_v31, %v9869_v31 }
 0x48a   : > { %v5538_v1 = vadd.f32 %v9737_v61, %v5490_v18  ;;  %v5640_v20 = vadd.f32 %v5616_v40, %v5537_v25  ;;  %6618 = vrsqrt.f32 %v4099_v14  ;;  %v5667_v32 = vadd.f32 %v5658_v30, %v5655_v4  ;;  %v9927_v30 = vpop.permute.xlu0 %5605 }
 0x48b   : > { %v5659_v27 = vmul.f32 %v9880_v45, %v9880_v45  ;;  %v9887_v55 = vmax.f32 %v5637_v15, 0.0  ;;  %v9889_v39 = vmax.f32 %v5638_v29, 0.0 }
 0x48c   : > { %v9891_v0 = vmax.f32 %v5640_v20, 0.0  ;;  %v5641_v46 = vadd.f32 %v5617_v5, %v5538_v1  ;;  %v9929_v20 = vpop.permute.xlu1 %5804 }
 0x48d   : > { %v5676_v54 = vadd.f32 %v5659_v27, %v5656_v53  ;;  %v5661_v42 = vmul.f32 %v9887_v55, %v9887_v55  ;;  %v5662_v11 = vmul.f32 %v9889_v39, %v9889_v39 }
 0x48e   : > { %v5664_v41 = vmul.f32 %v9891_v0, %v9891_v0  ;;  %v9899_v3 = vmax.f32 %v5641_v46, 0.0  ;;  %v9931_v46 = vpop.permute.xlu0 %5806 }
 0x48f   : > { %v5668_v24 = vadd.f32 %v5667_v32, %v5661_v42  ;;  %v5677_v40 = vadd.f32 %v5676_v54, %v5662_v11 }
 0x490   : > { %v5665_v44 = vmul.f32 %v9899_v3, %v9899_v3  ;;  %v9933_v54 = vpop.permute.xlu1 %5808 }
 0x491   : > { %v5669_v21 = vadd.f32 %v5668_v24, %v5664_v41 }
 0x492   : > { %v5678_v4 = vadd.f32 %v5677_v40, %v5665_v44  ;;  %v9935_v42 = vpop.permute.xlu0 %5810 }
 0x493   : > { %v6617_v17 = vpop.eup %6616  ;;  %v5670_v5 = vrot.slane %v5669_v21, 4 }
 0x494   : > { %v5679_v33 = vrot.slane %v5678_v4, 4  ;;  %v6619_v23 = vpop.eup %6618  ;;  %v4104_v50 = vmul.f32 %v6617_v17, %v9763_v52  ;;  %v4107_v47 = vmul.f32 %v6617_v17, %v9772_v51  ;;  %v4110_v43 = vmul.f32 %v6617_v17, %v9805_v35  ;;  %v9937_v11 = vpop.permute.xlu1 %5812 }
 0x495   : > { %v4113_v62 = vmul.f32 %v6617_v17, %v9814_v28  ;;  %v4105_v38 = vmul.f32 %v6619_v23, %v9767_v34  ;;  %v4108_v9 = vmul.f32 %v6619_v23, %v9784_v59  ;;  %v4111_v10 = vmul.f32 %v6619_v23, %v9807_v57 }
 0x496   : > { %v4114_v60 = vmul.f32 %v6619_v23, %v9818_v49  ;;  %6215 = vst [vmem:[%s9664_s24 + $0x68] sm:$0xff] %v4104_v50  ;;  %6218 = vst [vmem:[%s9664_s24 + $0x80] sm:$0xff] %v4107_v47  ;;  %v4129_v52 = vmul.f32 0.5, %v4104_v50  ;;  %v4132_v51 = vmul.f32 0.5, %v4107_v47  ;;  %v4135_v35 = vmul.f32 0.5, %v4110_v43  ;;  %v9949_v17 = vpop.permute.xlu0 %5814 }
 0x497   : > { %6221 = vst [vmem:[%s9664_s24 + $0x98] sm:$0xff] %v4110_v43  ;;  %6224 = vst [vmem:[%s9664_s24 + $0xb0] sm:$0xff] %v4113_v62  ;;  %v4138_v28 = vmul.f32 0.5, %v4113_v62  ;;  %v4130_v34 = vmul.f32 0.5, %v4105_v38  ;;  %v4133_v59 = vmul.f32 0.5, %v4108_v9  ;;  %v4136_v57 = vmul.f32 0.5, %v4111_v10 }
 0x498   : > { %6216 = vst [vmem:[%s9664_s24 + $0x70] sm:$0xff] %v4105_v38  ;;  %6219 = vst [vmem:[%s9664_s24 + $0x88] sm:$0xff] %v4108_v9  ;;  %v4139_v49 = vmul.f32 0.5, %v4114_v60  ;;  %v5671_v58 = vadd.f32 %v5670_v5, %v5669_v21  ;;  %v5680_v26 = vadd.f32 %v5679_v33, %v5678_v4  ;;  %v5724_v5 = vld [vmem:[%s9676_s26] sm:$0xff]  ;;  %v5733_v62 = vld [vmem:[%s9676_s26 + $0x48] sm:$0xff] }
 0x499   : > { %6222 = vst [vmem:[%s9664_s24 + $0xa0] sm:$0xff] %v4111_v10  ;;  %6225 = vst [vmem:[%s9664_s24 + $0xb8] sm:$0xff] %v4114_v60  ;;  %v5817_v10 = vpop.permute.xlu1 %5816 }
 0x49a   : > { %6227 = vst [vmem:[%s9676_s26 + $0x68] sm:$0xff] %v4129_v52  ;;  %6230 = vst [vmem:[%s9676_s26 + $0x80] sm:$0xff] %v4132_v51  ;;  %v5672_v8 = vrot.slane %v5671_v58, 2  ;;  %v5681_v14 = vrot.slane %v5680_v26, 2 }
 0x49b   : > { %6233 = vst [vmem:[%s9676_s26 + $0x98] sm:$0xff] %v4135_v35  ;;  %6236 = vst [vmem:[%s9676_s26 + $0xb0] sm:$0xff] %v4138_v28  ;;  %v5728_v28 = vld [vmem:[%s9676_s26 + $0x20] sm:$0xff] }
 0x49c   : > { %6228 = vst [vmem:[%s9676_s26 + $0x70] sm:$0xff] %v4130_v34  ;;  %6231 = vst [vmem:[%s9676_s26 + $0x88] sm:$0xff] %v4133_v59  ;;  %v5673_v25 = vadd.f32 %v5672_v8, %v5671_v58  ;;  %v5682_v18 = vadd.f32 %v5681_v14, %v5680_v26  ;;  %v5731_v34 = vld [vmem:[%s9676_s26 + $0x38] sm:$0xff]  ;;  %v5734_v59 = vld [vmem:[%s9676_s26 + $0x50] sm:$0xff]  ;;  %v5819_v8 = vpop.permute.xlu0 %5818 }
 0x49d   : > { %6234 = vst [vmem:[%s9676_s26 + $0xa0] sm:$0xff] %v4136_v57  ;;  %6237 = vst [vmem:[%s9676_s26 + $0xb8] sm:$0xff] %v4139_v49  ;;  %v5821_v14 = vpop.permute.xlu1 %5820 }
 0x49e   : > { %v5674_v15 = vrot.slane %v5673_v25, 1  ;;  %v5683_v29 = vrot.slane %v5682_v18, 1 }
 0x4a0   : > { %v5675_v53 = vadd.f32 %v5674_v15, %v5673_v25  ;;  %v5684_v1 = vadd.f32 %v5683_v29, %v5682_v18  ;;  %v5823_v25 = vpop.permute.xlu0 %5822 }
 0x4a1   : > { %v5825_v18 = vpop.permute.xlu1 %5824 }
 0x4a2   : > { %v5694_v32 = vmax.f32 %v5675_v53, 1e-24  ;;  %v5695_v27 = vmax.f32 %v5684_v1, 1e-24 }
 0x4a4   : > { %6620 = vrsqrt.f32 %v5694_v32  ;;  %v5827_v15 = vpop.permute.xlu0 %5826 }
 0x4a5   : > { %6622 = vrsqrt.f32 %v5695_v27  ;;  %v5829_v29 = vpop.permute.xlu1 %5828 }
 0x4ae   : > { %v6621_v41 = vpop.eup %6620 }
 0x4af   : > { %v6623_v24 = vpop.eup %6622  ;;  %v5700_v40 = vmul.f32 %v6621_v41, %v9852_v12  ;;  %v5703_v44 = vmul.f32 %v6621_v41, %v9872_v63  ;;  %v5706_v21 = vmul.f32 %v6621_v41, %v9887_v55  ;;  %v5709_v4 = vmul.f32 %v6621_v41, %v9891_v0  ;;  %v5727_v63 = vld [vmem:[%s9676_s26 + $0x18] sm:$0xff]  ;;  %v5730_v55 = vld [vmem:[%s9676_s26 + $0x30] sm:$0xff] }
 0x4b0   : > { %v5701_v33 = vmul.f32 %v6623_v24, %v9869_v31  ;;  %v5704_v23 = vmul.f32 %v6623_v24, %v9880_v45  ;;  %v5707_v50 = vmul.f32 %v6623_v24, %v9889_v39  ;;  %v5710_v12 = vmul.f32 %v6623_v24, %v9899_v3  ;;  %v5725_v45 = vld [vmem:[%s9676_s26 + $0x8] sm:$0xff]  ;;  %v5831_v24 = vpop.permute.xlu0 %5830 }
 0x4b1   : > { %5712 = vst [vmem:[%s9943_s29] sm:$0xff] %v5700_v40  ;;  %5715 = vst [vmem:[%s9943_s29 + $0x18] sm:$0xff] %v5703_v44  ;;  %v5736_v0 = vmul.f32 0.5, %v5700_v40  ;;  %v5739_v47 = vmul.f32 0.5, %v5703_v44  ;;  %v5742_v43 = vmul.f32 0.5, %v5706_v21  ;;  %v5745_v31 = vmul.f32 0.5, %v5709_v4 }
 0x4b2   : > { %5718 = vst [vmem:[%s9943_s29 + $0x30] sm:$0xff] %v5706_v21  ;;  %5721 = vst [vmem:[%s9943_s29 + $0x48] sm:$0xff] %v5709_v4  ;;  %v5737_v39 = vmul.f32 0.5, %v5701_v33  ;;  %v5740_v3 = vmul.f32 0.5, %v5704_v23  ;;  %v5743_v38 = vmul.f32 0.5, %v5707_v50  ;;  %v5746_v9 = vmul.f32 0.5, %v5710_v12 }
 0x4b3   : > { %5713 = vst [vmem:[%s9943_s29 + $0x8] sm:$0xff] %v5701_v33  ;;  %5716 = vst [vmem:[%s9943_s29 + $0x20] sm:$0xff] %v5704_v23  ;;  %v5748_v60 = vadd.f32 %v5736_v0, %v5724_v5  ;;  %v5751_v52 = vadd.f32 %v5739_v47, %v5727_v63  ;;  %v5754_v51 = vadd.f32 %v5742_v43, %v5730_v55  ;;  %v5833_v63 = vpop.permute.xlu1 %5832 }
 0x4b4   : > { %5719 = vst [vmem:[%s9943_s29 + $0x38] sm:$0xff] %v5707_v50  ;;  %5722 = vst [vmem:[%s9943_s29 + $0x50] sm:$0xff] %v5710_v12  ;;  %v5757_v35 = vadd.f32 %v5745_v31, %v5733_v62  ;;  %v5749_v57 = vadd.f32 %v5737_v39, %v5725_v45  ;;  %v5752_v49 = vadd.f32 %v5740_v3, %v5728_v28  ;;  %v5835_v47 = vpop.permute.xlu0 %5834 }
 0x4b5   : > { %v5755_v58 = vadd.f32 %v5743_v38, %v5731_v34  ;;  %v5758_v26 = vadd.f32 %v5746_v9, %v5734_v59  ;;  %5760 = vst [vmem:[%s9676_s26] sm:$0xff] %v5748_v60  ;;  %5763 = vst [vmem:[%s9676_s26 + $0x18] sm:$0xff] %v5751_v52  ;;  %v5618_v40 = vsel %vm690_vm3, %v9850_v2, %v9927_v30 }
 0x4b6   : > { %5766 = vst [vmem:[%s9676_s26 + $0x30] sm:$0xff] %v5754_v51  ;;  %5769 = vst [vmem:[%s9676_s26 + $0x48] sm:$0xff] %v5757_v35  ;;  %v5836_v44 = vsel %vm690_vm3, %v9929_v20, %v9931_v46  ;;  %v5837_v33 = vsel %vm690_vm3, %v9931_v46, %v9933_v54  ;;  %v5838_v23 = vsel %vm690_vm3, %v9933_v54, %v9935_v42 }
 0x4b7   : > { %5761 = vst [vmem:[%s9676_s26 + $0x8] sm:$0xff] %v5749_v57  ;;  %5764 = vst [vmem:[%s9676_s26 + $0x20] sm:$0xff] %v5752_v49  ;;  %v5839_v30 = vsel %vm690_vm3, %v9937_v11, %v9949_v17  ;;  %v10003_v12 = vsel %vm690_vm3, %v9949_v17, %v5817_v10  ;;  %v10007_v54 = vsel %vm690_vm3, %v5817_v10, %v5819_v8 }
 0x4b8   : > { %5767 = vst [vmem:[%s9676_s26 + $0x38] sm:$0xff] %v5755_v58  ;;  %5770 = vst [vmem:[%s9676_s26 + $0x50] sm:$0xff] %v5758_v26  ;;  %v5842_v0 = vsel %vm690_vm3, %v5821_v14, %v5823_v25  ;;  %v10015_v11 = vsel %vm690_vm3, %v5823_v25, %v5825_v18  ;;  %v10018_v17 = vsel %vm690_vm3, %v5825_v18, %v5827_v15 }
 0x4b9   : > { %v5845_v39 = vsel %vm690_vm3, %v5829_v29, %v5831_v24  ;;  %v10024_v3 = vsel %vm690_vm3, %v5831_v24, %v5833_v63  ;;  %v10032_v52 = vsel %vm690_vm3, %v5833_v63, %v5835_v47 }
 0x4c6   : > { %v5322_v53 = vpop.f32.mrb[56].mxu0 }
 0x4c7   : > { %v5473_v1 = vmul.f32 %v9613_v7, %v5322_v53  ;;  %v5324_v32 = vpop.f32.mrb[57].mxu0 }
 0x4c8   : > { %v5474_v27 = vmul.f32 %v9613_v7, %v5324_v32  ;;  %v5326_v41 = vpop.f32.mrb[58].mxu0 }
 0x4c9   : > { %v5521_v21 = vadd.f32 %v9650_v16, %v5473_v1  ;;  %v5479_v4 = vmul.f32 %v9610_v56, %v5326_v41  ;;  %v5328_v5 = vpop.f32.mrb[59].mxu0 }
 0x4ca   : > { %v5522_v50 = vadd.f32 %v9650_v16, %v5474_v27  ;;  %v5480_v2 = vmul.f32 %v9610_v56, %v5328_v5 }
 0x4cb   : > { %v5633_v20 = vadd.f32 %v9776_v22, %v5521_v21  ;;  %v5527_v46 = vadd.f32 %v9646_v13, %v5479_v4 }
 0x4cc   : > { %v5860_v55 = vadd.f32 %v5836_v44, %v5522_v50  ;;  %v5528_v42 = vadd.f32 %v9646_v13, %v5480_v2 }
 0x4cd   : > { %v10011_v43 = vmax.f32 %v5633_v20, 0.0  ;;  %v5636_v22 = vadd.f32 %v9810_v36, %v5527_v46 }
 0x4ce   : > { %v10020_v31 = vmax.f32 %v5860_v55, 0.0  ;;  %v5863_v62 = vadd.f32 %v5839_v30, %v5528_v42  ;;  %v5332_v45 = vpop.f32.mrb[60].mxu0 }
 0x4cf   : > { %v5657_v38 = vmul.f32 %v10011_v43, %v10011_v43  ;;  %v10028_v9 = vmax.f32 %v5636_v22, 0.0  ;;  %v5485_v36 = vmul.f32 %v9636_v48, %v5332_v45  ;;  %v5334_v10 = vpop.f32.mrb[61].mxu0  ;;  %v5428_v60 = vpop.f32.mrb[40].mxu1 }
 0x4d0   : > { %v5884_v51 = vmul.f32 %v10020_v31, %v10020_v31  ;;  %v10036_v35 = vmax.f32 %v5863_v62, 0.0  ;;  %v5486_v28 = vmul.f32 %v9636_v48, %v5334_v10  ;;  %v5475_v34 = vmul.f32 %v9613_v7, %v5428_v60  ;;  %v5336_v59 = vpop.f32.mrb[62].mxu0  ;;  %v5430_v57 = vpop.f32.mrb[41].mxu1 }
 0x4d1   : > { %v5660_v49 = vmul.f32 %v10028_v9, %v10028_v9  ;;  %v5533_v58 = vadd.f32 %v9698_v37, %v5485_v36  ;;  %v5491_v26 = vmul.f32 %v9704_v19, %v5336_v59  ;;  %v5476_v8 = vmul.f32 %v9613_v7, %v5430_v57  ;;  %v5338_v14 = vpop.f32.mrb[63].mxu0  ;;  %v5432_v25 = vpop.f32.mrb[42].mxu1 }
 0x4d2   : > { %v5887_v18 = vmul.f32 %v10036_v35, %v10036_v35  ;;  %v5534_v15 = vadd.f32 %v9698_v37, %v5486_v28  ;;  %v5523_v29 = vadd.f32 %v9650_v16, %v5475_v34  ;;  %v5492_v53 = vmul.f32 %v9704_v19, %v5338_v14  ;;  %v5434_v1 = vpop.f32.mrb[43].mxu1 }
 0x4d3   : > { %v5685_v32 = vadd.f32 %v5660_v49, %v5657_v38  ;;  %v5639_v27 = vadd.f32 %v9832_v6, %v5533_v58  ;;  %v5539_v41 = vadd.f32 %v9737_v61, %v5491_v26  ;;  %v5524_v24 = vadd.f32 %v9650_v16, %v5476_v8 }
 0x4d4   : > { %v5896_v7 = vadd.f32 %v5887_v18, %v5884_v51  ;;  %v5866_v44 = vadd.f32 %v5842_v0, %v5534_v15  ;;  %v5861_v21 = vadd.f32 %v5837_v33, %v5523_v29  ;;  %v5540_v4 = vadd.f32 %v9737_v61, %v5492_v53 }
 0x4d5   : > { %v10054_v5 = vmax.f32 %v5639_v27, 0.0  ;;  %v5642_v50 = vadd.f32 %v5618_v40, %v5539_v41  ;;  %v5862_v2 = vadd.f32 %v5838_v23, %v5524_v24  ;;  %v5481_v30 = vmul.f32 %v9610_v56, %v5432_v25 }
 0x4d6   : > { %v10057_v20 = vmax.f32 %v5866_v44, 0.0  ;;  %v10059_v46 = vmax.f32 %v5861_v21, 0.0  ;;  %v5482_v6 = vmul.f32 %v9610_v56, %v5434_v1  ;;  %v5869_v63 = vadd.f32 %v5845_v39, %v5540_v4 }
 0x4d7   : > { %v5663_v16 = vmul.f32 %v10054_v5, %v10054_v5  ;;  %v10064_v55 = vmax.f32 %v5642_v50, 0.0  ;;  %v10066_v33 = vmax.f32 %v5862_v2, 0.0  ;;  %v5529_v42 = vadd.f32 %v9646_v13, %v5481_v30  ;;  %v5438_v40 = vpop.f32.mrb[44].mxu1 }
 0x4d8   : > { %v5890_v23 = vmul.f32 %v10057_v20, %v10057_v20  ;;  %v5885_v0 = vmul.f32 %v10059_v46, %v10059_v46  ;;  %v5530_v47 = vadd.f32 %v9646_v13, %v5482_v6  ;;  %v10074_v56 = vmax.f32 %v5869_v63, 0.0  ;;  %v5440_v22 = vpop.f32.mrb[45].mxu1 }
 0x4d9   : > { %v5686_v62 = vadd.f32 %v5685_v32, %v5663_v16  ;;  %v5666_v45 = vmul.f32 %v10064_v55, %v10064_v55  ;;  %v5886_v39 = vmul.f32 %v10066_v33, %v10066_v33  ;;  %v5864_v38 = vadd.f32 %v10003_v12, %v5529_v42  ;;  %v5442_v36 = vpop.f32.mrb[46].mxu1 }
 0x4da   : > { %v5897_v10 = vadd.f32 %v5896_v7, %v5890_v23  ;;  %v5865_v60 = vadd.f32 %v10007_v54, %v5530_v47  ;;  %v5893_v51 = vmul.f32 %v10074_v56, %v10074_v56  ;;  %v5487_v13 = vmul.f32 %v9636_v48, %v5438_v40  ;;  %v5444_v28 = vpop.f32.mrb[47].mxu1 }
 0x4db   : > { %v5687_v34 = vadd.f32 %v5686_v62, %v5666_v45  ;;  %v10085_v59 = vmax.f32 %v5864_v38, 0.0  ;;  %v5488_v57 = vmul.f32 %v9636_v48, %v5440_v22  ;;  %v5493_v49 = vmul.f32 %v9704_v19, %v5442_v36 }
 0x4dc   : > { %v10089_v58 = vmax.f32 %v5865_v60, 0.0  ;;  %v5898_v12 = vadd.f32 %v5897_v10, %v5893_v51  ;;  %v5535_v26 = vadd.f32 %v9698_v37, %v5487_v13  ;;  %v5494_v54 = vmul.f32 %v9704_v19, %v5444_v28 }
 0x4dd   : > { %v5688_v8 = vrot.slane %v5687_v34, 4  ;;  %v5888_v14 = vmul.f32 %v10085_v59, %v10085_v59  ;;  %v5536_v25 = vadd.f32 %v9698_v37, %v5488_v57  ;;  %v5541_v18 = vadd.f32 %v9737_v61, %v5493_v49 }
 0x4de   : > { %v5889_v48 = vmul.f32 %v10089_v58, %v10089_v58  ;;  %v5899_v15 = vrot.slane %v5898_v12, 4  ;;  %v5867_v29 = vadd.f32 %v10015_v11, %v5535_v26  ;;  %v5542_v53 = vadd.f32 %v9737_v61, %v5494_v54 }
 0x4df   : > { %v5689_v1 = vadd.f32 %v5688_v8, %v5687_v34  ;;  %v5905_v32 = vadd.f32 %v5888_v14, %v5885_v0  ;;  %v5868_v19 = vadd.f32 %v10018_v17, %v5536_v25  ;;  %v5870_v27 = vadd.f32 %v10024_v3, %v5541_v18 }
 0x4e0   : > { %v5914_v41 = vadd.f32 %v5889_v48, %v5886_v39  ;;  %v5900_v24 = vadd.f32 %v5899_v15, %v5898_v12  ;;  %v10103_v7 = vmax.f32 %v5867_v29, 0.0  ;;  %v5871_v37 = vadd.f32 %v10032_v52, %v5542_v53  ;;  %v5726_v15 = vld [vmem:[%s9676_s26 + $0x10] sm:$0xff] }
 0x4e1   : > { %v5690_v44 = vrot.slane %v5689_v1, 2  ;;  %v10106_v21 = vmax.f32 %v5868_v19, 0.0  ;;  %v10108_v4 = vmax.f32 %v5870_v27, 0.0 }
 0x4e2   : > { %v5901_v11 = vrot.slane %v5900_v24, 2  ;;  %v5891_v61 = vmul.f32 %v10103_v7, %v10103_v7  ;;  %v10112_v50 = vmax.f32 %v5871_v37, 0.0 }
 0x4e3   : > { %v5691_v17 = vadd.f32 %v5690_v44, %v5689_v1  ;;  %v5892_v3 = vmul.f32 %v10106_v21, %v10106_v21  ;;  %v5894_v2 = vmul.f32 %v10108_v4, %v10108_v4 }
 0x4e4   : > { %v5902_v30 = vadd.f32 %v5901_v11, %v5900_v24  ;;  %v5906_v52 = vadd.f32 %v5905_v32, %v5891_v61  ;;  %v5895_v6 = vmul.f32 %v10112_v50, %v10112_v50 }
 0x4e5   : > { %v5692_v63 = vrot.slane %v5691_v17, 1  ;;  %v5915_v16 = vadd.f32 %v5914_v41, %v5892_v3  ;;  %v6284_v3 = vld [vmem:[%s9676_s26 + $0x90] sm:$0xff] }
 0x4e6   : > { %v5903_v42 = vrot.slane %v5902_v30, 1  ;;  %v5907_v40 = vadd.f32 %v5906_v52, %v5894_v2  ;;  %v6287_v2 = vld [vmem:[%s9676_s26 + $0xa8] sm:$0xff] }
 0x4e7   : > { %v5693_v23 = vadd.f32 %v5692_v63, %v5691_v17  ;;  %v5916_v0 = vadd.f32 %v5915_v16, %v5895_v6  ;;  %v6281_v17 = vld [vmem:[%s9676_s26 + $0x78] sm:$0xff] }
 0x4e8   : > { %v5904_v47 = vadd.f32 %v5903_v42, %v5902_v30  ;;  %v5908_v22 = vrot.slane %v5907_v40, 4 }
 0x4e9   : > { %v5696_v62 = vmax.f32 %v5693_v23, 1e-24  ;;  %v5917_v45 = vrot.slane %v5916_v0, 4 }
 0x4ea   : > { %v5923_v39 = vmax.f32 %v5904_v47, 1e-24  ;;  %v5909_v38 = vadd.f32 %v5908_v22, %v5907_v40  ;;  %v6279_v22 = vld [vmem:[%s9676_s26 + $0x68] sm:$0xff] }
 0x4eb   : > { %6624 = vrsqrt.f32 %v5696_v62  ;;  %v5918_v36 = vadd.f32 %v5917_v45, %v5916_v0  ;;  %v6282_v62 = vld [vmem:[%s9676_s26 + $0x80] sm:$0xff] }
 0x4ec   : > { %6626 = vrsqrt.f32 %v5923_v39  ;;  %v5910_v10 = vrot.slane %v5909_v38, 2 }
 0x4ed   : > { %v5919_v60 = vrot.slane %v5918_v36, 2 }
 0x4ee   : > { %v5911_v51 = vadd.f32 %v5910_v10, %v5909_v38 }
 0x4ef   : > { %v5920_v13 = vadd.f32 %v5919_v60, %v5918_v36  ;;  %v6289_v60 = vld [vmem:[%s9676_s26 + $0xb8] sm:$0xff] }
 0x4f0   : > { %v5912_v28 = vrot.slane %v5911_v51, 1 }
 0x4f1   : > { %v5921_v34 = vrot.slane %v5920_v13, 1 }
 0x4f2   : > { %v5913_v57 = vadd.f32 %v5912_v28, %v5911_v51  ;;  %v6285_v51 = vld [vmem:[%s9676_s26 + $0x98] sm:$0xff] }
 0x4f3   : > { %v5922_v49 = vadd.f32 %v5921_v34, %v5920_v13 }
 0x4f4   : > { %v5924_v26 = vmax.f32 %v5913_v57, 1e-24 }
 0x4f5   : > { %v6625_v12 = vpop.eup %6624  ;;  %v5925_v54 = vmax.f32 %v5922_v49, 1e-24 }
 0x4f6   : > { %v6627_v8 = vpop.eup %6626  ;;  %v5702_v14 = vmul.f32 %v6625_v12, %v10011_v43  ;;  %v5705_v25 = vmul.f32 %v6625_v12, %v10028_v9  ;;  %v5708_v18 = vmul.f32 %v6625_v12, %v10054_v5  ;;  %v5711_v48 = vmul.f32 %v6625_v12, %v10064_v55  ;;  %v5729_v9 = vld [vmem:[%s9676_s26 + $0x28] sm:$0xff]  ;;  %v5732_v5 = vld [vmem:[%s9676_s26 + $0x40] sm:$0xff] }
 0x4f7   : > { %v5929_v29 = vmul.f32 %v6627_v8, %v10020_v31  ;;  %v5932_v53 = vmul.f32 %v6627_v8, %v10036_v35  ;;  %v5935_v1 = vmul.f32 %v6627_v8, %v10057_v20  ;;  %v5938_v43 = vmul.f32 %v6627_v8, %v10074_v56  ;;  %v5735_v35 = vld [vmem:[%s9676_s26 + $0x58] sm:$0xff]  ;;  %v6278_v20 = vld [vmem:[%s9676_s26 + $0x60] sm:$0xff] }
 0x4f8   : > { %5714 = vst [vmem:[%s9943_s29 + $0x10] sm:$0xff] %v5702_v14  ;;  %5717 = vst [vmem:[%s9943_s29 + $0x28] sm:$0xff] %v5705_v25  ;;  %v5738_v55 = vmul.f32 0.5, %v5702_v14  ;;  %v5741_v32 = vmul.f32 0.5, %v5705_v25  ;;  %v5744_v19 = vmul.f32 0.5, %v5708_v18  ;;  %v5747_v31 = vmul.f32 0.5, %v5711_v48 }
 0x4f9   : > { %5720 = vst [vmem:[%s9943_s29 + $0x40] sm:$0xff] %v5708_v18  ;;  %5723 = vst [vmem:[%s9943_s29 + $0x58] sm:$0xff] %v5711_v48  ;;  %v5966_v56 = vmul.f32 0.5, %v5929_v29  ;;  %v5969_v27 = vmul.f32 0.5, %v5932_v53  ;;  %v5972_v41 = vmul.f32 0.5, %v5935_v1  ;;  %v5975_v24 = vmul.f32 0.5, %v5938_v43 }
 0x4fa   : > { %6266 = vst [vmem:[%s9943_s29 + $0x60] sm:$0xff] %v5929_v29  ;;  %6269 = vst [vmem:[%s9943_s29 + $0x78] sm:$0xff] %v5932_v53  ;;  %v5750_v37 = vadd.f32 %v5738_v55, %v5726_v15  ;;  %v5753_v44 = vadd.f32 %v5741_v32, %v5729_v9  ;;  %v5756_v11 = vadd.f32 %v5744_v19, %v5732_v5  ;;  %6628 = vrsqrt.f32 %v5924_v26 }
 0x4fb   : > { %6272 = vst [vmem:[%s9943_s29 + $0x90] sm:$0xff] %v5935_v1  ;;  %6275 = vst [vmem:[%s9943_s29 + $0xa8] sm:$0xff] %v5938_v43  ;;  %v5759_v61 = vadd.f32 %v5747_v31, %v5735_v35  ;;  %v5978_v30 = vadd.f32 %v6278_v20, %v5966_v56  ;;  %v5981_v52 = vadd.f32 %v6281_v17, %v5969_v27  ;;  %6630 = vrsqrt.f32 %v5925_v54 }
 0x4fc   : > { %v5984_v6 = vadd.f32 %v6284_v3, %v5972_v41  ;;  %v5987_v63 = vadd.f32 %v6287_v2, %v5975_v24  ;;  %5762 = vst [vmem:[%s9676_s26 + $0x10] sm:$0xff] %v5750_v37  ;;  %5765 = vst [vmem:[%s9676_s26 + $0x28] sm:$0xff] %v5753_v44 }
 0x4fd   : > { %5768 = vst [vmem:[%s9676_s26 + $0x40] sm:$0xff] %v5756_v11  ;;  %5771 = vst [vmem:[%s9676_s26 + $0x58] sm:$0xff] %v5759_v61 }
 0x4fe   : > { %6290 = vst [vmem:[%s9676_s26 + $0x60] sm:$0xff] %v5978_v30  ;;  %6293 = vst [vmem:[%s9676_s26 + $0x78] sm:$0xff] %v5981_v52 }
 0x4ff   : > { %6296 = vst [vmem:[%s9676_s26 + $0x90] sm:$0xff] %v5984_v6  ;;  %6299 = vst [vmem:[%s9676_s26 + $0xa8] sm:$0xff] %v5987_v63 }
 0x504   : > { %v6629_v16 = vpop.eup %6628 }
 0x505   : > { %v6631_v42 = vpop.eup %6630  ;;  %v5930_v40 = vmul.f32 %v6629_v16, %v10059_v46  ;;  %v5933_v23 = vmul.f32 %v6629_v16, %v10085_v59  ;;  %v5936_v0 = vmul.f32 %v6629_v16, %v10103_v7  ;;  %v5939_v47 = vmul.f32 %v6629_v16, %v10108_v4  ;;  %v6280_v59 = vld [vmem:[%s9676_s26 + $0x70] sm:$0xff]  ;;  %v6283_v7 = vld [vmem:[%s9676_s26 + $0x88] sm:$0xff] }
 0x506   : > { %v5931_v45 = vmul.f32 %v6631_v42, %v10066_v33  ;;  %v5934_v39 = vmul.f32 %v6631_v42, %v10089_v58  ;;  %v5937_v38 = vmul.f32 %v6631_v42, %v10106_v21  ;;  %v5940_v46 = vmul.f32 %v6631_v42, %v10112_v50  ;;  %v6286_v58 = vld [vmem:[%s9676_s26 + $0xa0] sm:$0xff]  ;;  %v6288_v21 = vld [vmem:[%s9676_s26 + $0xb0] sm:$0xff] }
 0x507   : > { %6267 = vst [vmem:[%s9943_s29 + $0x68] sm:$0xff] %v5930_v40  ;;  %6270 = vst [vmem:[%s9943_s29 + $0x80] sm:$0xff] %v5933_v23  ;;  %v5967_v4 = vmul.f32 0.5, %v5930_v40  ;;  %v5970_v33 = vmul.f32 0.5, %v5933_v23  ;;  %v5973_v36 = vmul.f32 0.5, %v5936_v0  ;;  %v5976_v10 = vmul.f32 0.5, %v5939_v47 }
 0x508   : > { %6273 = vst [vmem:[%s9943_s29 + $0x98] sm:$0xff] %v5936_v0  ;;  %6276 = vst [vmem:[%s9943_s29 + $0xb0] sm:$0xff] %v5939_v47  ;;  %v5968_v50 = vmul.f32 0.5, %v5931_v45  ;;  %v5971_v13 = vmul.f32 0.5, %v5934_v39  ;;  %v5974_v28 = vmul.f32 0.5, %v5937_v38  ;;  %v5977_v34 = vmul.f32 0.5, %v5940_v46 }
 0x509   : > { %6268 = vst [vmem:[%s9943_s29 + $0x70] sm:$0xff] %v5931_v45  ;;  %6271 = vst [vmem:[%s9943_s29 + $0x88] sm:$0xff] %v5934_v39  ;;  %v5979_v57 = vadd.f32 %v6279_v22, %v5967_v4  ;;  %v5982_v49 = vadd.f32 %v6282_v62, %v5970_v33  ;;  %v5985_v12 = vadd.f32 %v6285_v51, %v5973_v36 }
 0x50a   : > { %6274 = vst [vmem:[%s9943_s29 + $0xa0] sm:$0xff] %v5937_v38  ;;  %6277 = vst [vmem:[%s9943_s29 + $0xb8] sm:$0xff] %v5940_v46  ;;  %v5988_v26 = vadd.f32 %v6288_v21, %v5976_v10  ;;  %v5980_v54 = vadd.f32 %v6280_v59, %v5968_v50  ;;  %v5983_v8 = vadd.f32 %v6283_v7, %v5971_v13 }
 0x50b   : > { %v5986_v14 = vadd.f32 %v6286_v58, %v5974_v28  ;;  %v5989_v25 = vadd.f32 %v6289_v60, %v5977_v34  ;;  %6291 = vst [vmem:[%s9676_s26 + $0x68] sm:$0xff] %v5979_v57  ;;  %6294 = vst [vmem:[%s9676_s26 + $0x80] sm:$0xff] %v5982_v49 }
 0x50c   : > { %6297 = vst [vmem:[%s9676_s26 + $0x98] sm:$0xff] %v5985_v12  ;;  %6300 = vst [vmem:[%s9676_s26 + $0xb0] sm:$0xff] %v5988_v26 }
 0x50d   : > { %6292 = vst [vmem:[%s9676_s26 + $0x70] sm:$0xff] %v5980_v54  ;;  %6295 = vst [vmem:[%s9676_s26 + $0x88] sm:$0xff] %v5983_v8 }
 0x50e   : > { %6298 = vst [vmem:[%s9676_s26 + $0xa0] sm:$0xff] %v5986_v14  ;;  %6301 = vst [vmem:[%s9676_s26 + $0xb8] sm:$0xff] %v5989_v25 }
 0x50f PF: > { %s22_s17 = sadd.s32 1, %s6638_s17  }
 0x510   : > { %p19_p4 = scmp.ge.s32.totalorder %s22_s17, 4  }
 0x512   :  { %21 = sbr.rel (!%p19_p4) target bundleno = 1 (0x1), region = 116 }

</bundles_post_ra>
